<compile_context>
chip_gen: v7x
topology: tpu7x:2x2x1
jax: 0.10.0
libtpu: 0.0.40
codegen_flags: <defaults>
</compile_context>

<pallas_src>
import functools

import jax
import jax.numpy as jnp
from jax.experimental import pallas as pl
from jax.experimental.pallas import tpu as pltpu

NEG_SLOPE = 0.1  # LeakyReLU slope used by model_utils.conv (no batchnorm branch)


def _round_up(v, m):
    return (v + m - 1) // m * m


def _conv_mm_kernel(p_ref, w_ref, b_ref, o_ref):
    """Fused (im2col-patch tile @ weight) + bias + LeakyReLU(0.1).

    p_ref: (TM, K) bf16   w_ref: (K, Co) bf16   b_ref: (1, Co) f32   o_ref: (TM, Co) bf16
    Accumulation is f32 on the MXU; bias add + LeakyReLU run on the VPU as filler.
    """
    acc = jnp.dot(p_ref[...], w_ref[...], preferred_element_type=jnp.float32)
    acc = acc + b_ref[...]  # (1, Co) broadcasts over rows
    o_ref[...] = jnp.where(acc >= 0, acc, NEG_SLOPE * acc).astype(o_ref.dtype)


def conv_leaky(x_nhwc, w, b, stride, *, tile_m=512):
    """3x3 conv (pad=1, given stride) + bias + LeakyReLU(0.1).

    x_nhwc: (N, H, W, C) bf16    w: (k, k, C_in, C_out) f32    b: (C_out,) f32
    Returns (N, Ho, Wo, C_out) bf16.
    """
    k = w.shape[0]
    pad = 1
    N, H, W, C = x_nhwc.shape
    C_out = w.shape[-1]

    xp = jnp.pad(x_nhwc, ((0, 0), (pad, pad), (pad, pad), (0, 0)))
    Ho = (H + 2 * pad - k) // stride + 1
    Wo = (W + 2 * pad - k) // stride + 1

    # im2col glue (XLA side, bf16): gather the 9 shifted views -> (M, 9*C_in)
    cols = []
    for dy in range(k):
        for dx in range(k):
            cols.append(
                xp[:, dy:dy + stride * (Ho - 1) + 1:stride,
                      dx:dx + stride * (Wo - 1) + 1:stride, :]
            )
    K = k * k * C
    patches = jnp.stack(cols, axis=3).reshape(N * Ho * Wo, K)

    M = N * Ho * Wo

    # Pad K only to a multiple of 8 (sublane alignment for the weight block); never to 128.
    Kp = _round_up(K, 8)
    # Lane-dense output: pad C_out up to a multiple of 128 (only affects conv1's 64).
    Co = _round_up(C_out, 128)

    w_mat = w.reshape(K, C_out).astype(jnp.bfloat16)
    b_row = b.reshape(1, C_out).astype(jnp.float32)
    if Kp != K:
        patches = jnp.pad(patches, ((0, 0), (0, Kp - K)))
        w_mat = jnp.pad(w_mat, ((0, Kp - K), (0, 0)))
    if Co != C_out:
        w_mat = jnp.pad(w_mat, ((0, 0), (0, Co - C_out)))
        b_row = jnp.pad(b_row, ((0, 0), (0, Co - C_out)))

    # M tile: 512 (multiple of 256 for v6e/v7x MXU, of 128 for v5e), shrunk for tiny layers.
    tm = min(tile_m, _round_up(M, 8))
    Mp = _round_up(M, tm)
    if Mp != M:
        patches = jnp.pad(patches, ((0, Mp - M), (0, 0)))

    out = pl.pallas_call(
        _conv_mm_kernel,
        out_shape=jax.ShapeDtypeStruct((Mp, Co), jnp.bfloat16),
        grid=(Mp // tm,),
        in_specs=[
            pl.BlockSpec((tm, Kp), lambda i: (i, 0)),   # patch tiles, pipelined over M
            pl.BlockSpec((Kp, Co), lambda i: (0, 0)),   # weights: same block -> fetched once
            pl.BlockSpec((1, Co), lambda i: (0, 0)),    # bias: resident
        ],
        out_specs=pl.BlockSpec((tm, Co), lambda i: (i, 0)),
        compiler_params=pltpu.CompilerParams(
            dimension_semantics=("parallel",),          # shard M across v7x's 2 TensorCores
        ),
    )(patches.astype(jnp.bfloat16), w_mat, b_row)

    return out[:M, :C_out].reshape(N, Ho, Wo, C_out)


# (c_in, c_out, stride) for conv1..conv7
def _layer_cfg(c_in):
    return [
        (c_in, 64, 2),
        (64, 128, 2),
        (128, 128, 1),
        (128, 128, 2),
        (128, 128, 1),
        (128, 256, 2),
        (256, 256, 1),
    ]


def init_params(key, c_in):
    """Deterministic kaiming-normal-like init (fan_in, gain=sqrt(2)), biases ~N(0, 0.01)."""
    params = []
    for (ci, co, _s) in _layer_cfg(c_in):
        key, kw, kb = jax.random.split(key, 3)
        fan_in = ci * 3 * 3
        std = (2.0 / fan_in) ** 0.5
        w = jax.random.normal(kw, (3, 3, ci, co), jnp.float32) * std
        b = jax.random.normal(kb, (co,), jnp.float32) * 0.01
        params.append((w, b))
    return params


@functools.partial(jax.jit, static_argnums=(2,))
def feat_extractor(x_nchw, params, c_in):
    # NCHW -> NHWC; activations carried in bf16 (f32 accumulation inside the kernel).
    x = jnp.transpose(x_nchw, (0, 2, 3, 1)).astype(jnp.bfloat16)
    for (w, b), (_ci, _co, stride) in zip(params, _layer_cfg(c_in)):
        x = conv_leaky(x, w, b, stride)
    # back to NCHW f32 to match the torch module's output convention
    return jnp.transpose(x, (0, 3, 1, 2)).astype(jnp.float32)


if __name__ == "__main__":
    key = jax.random.PRNGKey(0)
    k_x, k_p = jax.random.split(key)

    batch, c_in, h, w = 2, 4, 16, 16
    x = jax.random.normal(k_x, (batch, c_in, h, w), jnp.float32)
    params = init_params(k_p, c_in)

    out = feat_extractor(x, params, c_in)
    out = jax.block_until_ready(out)

    # Expected: 16 -> 8 -> 4 -> 4 -> 2 -> 2 -> 1 -> 1 spatial, 256 channels
    assert out.shape == (batch, 256, 1, 1), out.shape
    assert jnp.all(jnp.isfinite(out))
    print("KERNEL_OK")
</pallas_src>

<mosaic_0001>
module attributes {stable_mosaic.version = 11 : i64} {
  func.func @_conv_mm_kernel(%arg0: i32, %arg1: memref<128x40xbf16, #tpu.memory_space<vmem>>, %arg2: memref<40x128xbf16, #tpu.memory_space<vmem>>, %arg3: memref<1x128xf32, #tpu.memory_space<vmem>>, %arg4: memref<128x128xbf16, #tpu.memory_space<vmem>>) attributes {dimension_semantics = [#tpu.dimension_semantics<parallel>], iteration_bounds = array<i64: 1>, scalar_prefetch = 0 : i64, scratch_operands = 0 : i64, tpu.core_type = #tpu.core_type<tc>, window_params = [{transform_indices = @transform_0, window_bounds = array<i64: 128, 40>}, {pipeline_mode = #tpu.pipeline_mode<synchronous>, transform_indices = @transform_1, window_bounds = array<i64: 40, 128>}, {pipeline_mode = #tpu.pipeline_mode<synchronous>, transform_indices = @transform_2, window_bounds = array<i64: 1, 128>}, {transform_indices = @transform_3, window_bounds = array<i64: 128, 128>}]} {
    %c0 = arith.constant 0 : index
    %c0_0 = arith.constant 0 : index
    %0 = vector.load %arg1[%c0, %c0_0] : memref<128x40xbf16, #tpu.memory_space<vmem>>, vector<128x40xbf16>
    %c0_1 = arith.constant 0 : index
    %c0_2 = arith.constant 0 : index
    %1 = vector.load %arg2[%c0_1, %c0_2] : memref<40x128xbf16, #tpu.memory_space<vmem>>, vector<40x128xbf16>
    %cst = arith.constant dense<0.000000e+00> : vector<128x128xf32>
    %2 = tpu.matmul %0, %1, %cst {dimension_numbers = #tpu.dot_dimension_numbers<[1], [0], [0], [1], [0, 0, 1, 1], [], []>} : vector<128x40xbf16>, vector<40x128xbf16>, vector<128x128xf32> -> vector<128x128xf32>
    %c0_3 = arith.constant 0 : index
    %c0_4 = arith.constant 0 : index
    %3 = vector.load %arg3[%c0_3, %c0_4] : memref<1x128xf32, #tpu.memory_space<vmem>>, vector<1x128xf32>
    %4 = vector.broadcast %3 : vector<1x128xf32> to vector<128x128xf32>
    %5 = arith.addf %2, %4 : vector<128x128xf32>
    %cst_5 = arith.constant 0.000000e+00 : f32
    %6 = vector.broadcast %cst_5 : f32 to vector<128x128xf32>
    %7 = arith.cmpf oge, %5, %6 : vector<128x128xf32>
    %cst_6 = arith.constant 1.000000e-01 : f32
    %8 = vector.broadcast %cst_6 : f32 to vector<128x128xf32>
    %9 = arith.mulf %8, %5 : vector<128x128xf32>
    %10 = arith.select %7, %5, %9 : vector<128x128xi1>, vector<128x128xf32>
    %11 = arith.truncf %10 : vector<128x128xf32> to vector<128x128xbf16>
    %c0_7 = arith.constant 0 : index
    %c0_8 = arith.constant 0 : index
    %12 = vector.load %arg4[%c0_7, %c0_8] : memref<128x128xbf16, #tpu.memory_space<vmem>>, vector<128x128xbf16>
    tpu.vector_store %arg4[%c0_7, %c0_8], %11 {strides = array<i32>} : memref<128x128xbf16, #tpu.memory_space<vmem>>, vector<128x128xbf16>,
    return
  }
  func.func @transform_0(%arg0: i32) -> (i32, i32) {
    %c0_i32 = arith.constant 0 : i32
    %c0_i32_0 = arith.constant 0 : i32
    return %arg0, %c0_i32 : i32, i32
  }
  func.func @transform_1(%arg0: i32) -> (i32, i32) {
    %c0_i32 = arith.constant 0 : i32
    %c0_i32_0 = arith.constant 0 : i32
    %c0_i32_1 = arith.constant 0 : i32
    return %c0_i32, %c0_i32_0 : i32, i32
  }
  func.func @transform_2(%arg0: i32) -> (i32, i32) {
    %c0_i32 = arith.constant 0 : i32
    %c0_i32_0 = arith.constant 0 : i32
    %c0_i32_1 = arith.constant 0 : i32
    return %c0_i32, %c0_i32_0 : i32, i32
  }
  func.func @transform_3(%arg0: i32) -> (i32, i32) {
    %c0_i32 = arith.constant 0 : i32
    %c0_i32_0 = arith.constant 0 : i32
    return %arg0, %c0_i32 : i32, i32
  }
}

module attributes {stable_mosaic.version = 11 : i64} {
  func.func @_conv_mm_kernel(%arg0: i32, %arg1: memref<32x576xbf16, #tpu.memory_space<vmem>>, %arg2: memref<576x128xbf16, #tpu.memory_space<vmem>>, %arg3: memref<1x128xf32, #tpu.memory_space<vmem>>, %arg4: memref<32x128xbf16, #tpu.memory_space<vmem>>) attributes {dimension_semantics = [#tpu.dimension_semantics<parallel>], iteration_bounds = array<i64: 1>, scalar_prefetch = 0 : i64, scratch_operands = 0 : i64, tpu.core_type = #tpu.core_type<tc>, window_params = [{transform_indices = @transform_0, window_bounds = array<i64: 32, 576>}, {pipeline_mode = #tpu.pipeline_mode<synchronous>, transform_indices = @transform_1, window_bounds = array<i64: 576, 128>}, {pipeline_mode = #tpu.pipeline_mode<synchronous>, transform_indices = @transform_2, window_bounds = array<i64: 1, 128>}, {transform_indices = @transform_3, window_bounds = array<i64: 32, 128>}]} {
    %c0 = arith.constant 0 : index
    %c0_0 = arith.constant 0 : index
    %0 = vector.load %arg1[%c0, %c0_0] : memref<32x576xbf16, #tpu.memory_space<vmem>>, vector<32x576xbf16>
    %c0_1 = arith.constant 0 : index
    %c0_2 = arith.constant 0 : index
    %1 = vector.load %arg2[%c0_1, %c0_2] : memref<576x128xbf16, #tpu.memory_space<vmem>>, vector<576x128xbf16>
    %cst = arith.constant dense<0.000000e+00> : vector<32x128xf32>
    %2 = tpu.matmul %0, %1, %cst {dimension_numbers = #tpu.dot_dimension_numbers<[1], [0], [0], [1], [0, 0, 1, 1], [], []>} : vector<32x576xbf16>, vector<576x128xbf16>, vector<32x128xf32> -> vector<32x128xf32>
    %c0_3 = arith.constant 0 : index
    %c0_4 = arith.constant 0 : index
    %3 = vector.load %arg3[%c0_3, %c0_4] : memref<1x128xf32, #tpu.memory_space<vmem>>, vector<1x128xf32>
    %4 = vector.broadcast %3 : vector<1x128xf32> to vector<32x128xf32>
    %5 = arith.addf %2, %4 : vector<32x128xf32>
    %cst_5 = arith.constant 0.000000e+00 : f32
    %6 = vector.broadcast %cst_5 : f32 to vector<32x128xf32>
    %7 = arith.cmpf oge, %5, %6 : vector<32x128xf32>
    %cst_6 = arith.constant 1.000000e-01 : f32
    %8 = vector.broadcast %cst_6 : f32 to vector<32x128xf32>
    %9 = arith.mulf %8, %5 : vector<32x128xf32>
    %10 = arith.select %7, %5, %9 : vector<32x128xi1>, vector<32x128xf32>
    %11 = arith.truncf %10 : vector<32x128xf32> to vector<32x128xbf16>
    %c0_7 = arith.constant 0 : index
    %c0_8 = arith.constant 0 : index
    %12 = vector.load %arg4[%c0_7, %c0_8] : memref<32x128xbf16, #tpu.memory_space<vmem>>, vector<32x128xbf16>
    tpu.vector_store %arg4[%c0_7, %c0_8], %11 {strides = array<i32>} : memref<32x128xbf16, #tpu.memory_space<vmem>>, vector<32x128xbf16>,
    return
  }
  func.func @transform_0(%arg0: i32) -> (i32, i32) {
    %c0_i32 = arith.constant 0 : i32
    %c0_i32_0 = arith.constant 0 : i32
    return %arg0, %c0_i32 : i32, i32
  }
  func.func @transform_1(%arg0: i32) -> (i32, i32) {
    %c0_i32 = arith.constant 0 : i32
    %c0_i32_0 = arith.constant 0 : i32
    %c0_i32_1 = arith.constant 0 : i32
    return %c0_i32, %c0_i32_0 : i32, i32
  }
  func.func @transform_2(%arg0: i32) -> (i32, i32) {
    %c0_i32 = arith.constant 0 : i32
    %c0_i32_0 = arith.constant 0 : i32
    %c0_i32_1 = arith.constant 0 : i32
    return %c0_i32, %c0_i32_0 : i32, i32
  }
  func.func @transform_3(%arg0: i32) -> (i32, i32) {
    %c0_i32 = arith.constant 0 : i32
    %c0_i32_0 = arith.constant 0 : i32
    return %arg0, %c0_i32 : i32, i32
  }
}

module attributes {stable_mosaic.version = 11 : i64} {
  func.func @_conv_mm_kernel(%arg0: i32, %arg1: memref<32x1152xbf16, #tpu.memory_space<vmem>>, %arg2: memref<1152x128xbf16, #tpu.memory_space<vmem>>, %arg3: memref<1x128xf32, #tpu.memory_space<vmem>>, %arg4: memref<32x128xbf16, #tpu.memory_space<vmem>>) attributes {dimension_semantics = [#tpu.dimension_semantics<parallel>], iteration_bounds = array<i64: 1>, scalar_prefetch = 0 : i64, scratch_operands = 0 : i64, tpu.core_type = #tpu.core_type<tc>, window_params = [{transform_indices = @transform_0, window_bounds = array<i64: 32, 1152>}, {pipeline_mode = #tpu.pipeline_mode<synchronous>, transform_indices = @transform_1, window_bounds = array<i64: 1152, 128>}, {pipeline_mode = #tpu.pipeline_mode<synchronous>, transform_indices = @transform_2, window_bounds = array<i64: 1, 128>}, {transform_indices = @transform_3, window_bounds = array<i64: 32, 128>}]} {
    %c0 = arith.constant 0 : index
    %c0_0 = arith.constant 0 : index
    %0 = vector.load %arg1[%c0, %c0_0] : memref<32x1152xbf16, #tpu.memory_space<vmem>>, vector<32x1152xbf16>
    %c0_1 = arith.constant 0 : index
    %c0_2 = arith.constant 0 : index
    %1 = vector.load %arg2[%c0_1, %c0_2] : memref<1152x128xbf16, #tpu.memory_space<vmem>>, vector<1152x128xbf16>
    %cst = arith.constant dense<0.000000e+00> : vector<32x128xf32>
    %2 = tpu.matmul %0, %1, %cst {dimension_numbers = #tpu.dot_dimension_numbers<[1], [0], [0], [1], [0, 0, 1, 1], [], []>} : vector<32x1152xbf16>, vector<1152x128xbf16>, vector<32x128xf32> -> vector<32x128xf32>
    %c0_3 = arith.constant 0 : index
    %c0_4 = arith.constant 0 : index
    %3 = vector.load %arg3[%c0_3, %c0_4] : memref<1x128xf32, #tpu.memory_space<vmem>>, vector<1x128xf32>
    %4 = vector.broadcast %3 : vector<1x128xf32> to vector<32x128xf32>
    %5 = arith.addf %2, %4 : vector<32x128xf32>
    %cst_5 = arith.constant 0.000000e+00 : f32
    %6 = vector.broadcast %cst_5 : f32 to vector<32x128xf32>
    %7 = arith.cmpf oge, %5, %6 : vector<32x128xf32>
    %cst_6 = arith.constant 1.000000e-01 : f32
    %8 = vector.broadcast %cst_6 : f32 to vector<32x128xf32>
    %9 = arith.mulf %8, %5 : vector<32x128xf32>
    %10 = arith.select %7, %5, %9 : vector<32x128xi1>, vector<32x128xf32>
    %11 = arith.truncf %10 : vector<32x128xf32> to vector<32x128xbf16>
    %c0_7 = arith.constant 0 : index
    %c0_8 = arith.constant 0 : index
    %12 = vector.load %arg4[%c0_7, %c0_8] : memref<32x128xbf16, #tpu.memory_space<vmem>>, vector<32x128xbf16>
    tpu.vector_store %arg4[%c0_7, %c0_8], %11 {strides = array<i32>} : memref<32x128xbf16, #tpu.memory_space<vmem>>, vector<32x128xbf16>,
    return
  }
  func.func @transform_0(%arg0: i32) -> (i32, i32) {
    %c0_i32 = arith.constant 0 : i32
    %c0_i32_0 = arith.constant 0 : i32
    return %arg0, %c0_i32 : i32, i32
  }
  func.func @transform_1(%arg0: i32) -> (i32, i32) {
    %c0_i32 = arith.constant 0 : i32
    %c0_i32_0 = arith.constant 0 : i32
    %c0_i32_1 = arith.constant 0 : i32
    return %c0_i32, %c0_i32_0 : i32, i32
  }
  func.func @transform_2(%arg0: i32) -> (i32, i32) {
    %c0_i32 = arith.constant 0 : i32
    %c0_i32_0 = arith.constant 0 : i32
    %c0_i32_1 = arith.constant 0 : i32
    return %c0_i32, %c0_i32_0 : i32, i32
  }
  func.func @transform_3(%arg0: i32) -> (i32, i32) {
    %c0_i32 = arith.constant 0 : i32
    %c0_i32_0 = arith.constant 0 : i32
    return %arg0, %c0_i32 : i32, i32
  }
}

module attributes {stable_mosaic.version = 11 : i64} {
  func.func @_conv_mm_kernel(%arg0: i32, %arg1: memref<8x1152xbf16, #tpu.memory_space<vmem>>, %arg2: memref<1152x128xbf16, #tpu.memory_space<vmem>>, %arg3: memref<1x128xf32, #tpu.memory_space<vmem>>, %arg4: memref<8x128xbf16, #tpu.memory_space<vmem>>) attributes {dimension_semantics = [#tpu.dimension_semantics<parallel>], iteration_bounds = array<i64: 1>, scalar_prefetch = 0 : i64, scratch_operands = 0 : i64, tpu.core_type = #tpu.core_type<tc>, window_params = [{transform_indices = @transform_0, window_bounds = array<i64: 8, 1152>}, {pipeline_mode = #tpu.pipeline_mode<synchronous>, transform_indices = @transform_1, window_bounds = array<i64: 1152, 128>}, {pipeline_mode = #tpu.pipeline_mode<synchronous>, transform_indices = @transform_2, window_bounds = array<i64: 1, 128>}, {transform_indices = @transform_3, window_bounds = array<i64: 8, 128>}]} {
    %c0 = arith.constant 0 : index
    %c0_0 = arith.constant 0 : index
    %0 = vector.load %arg1[%c0, %c0_0] : memref<8x1152xbf16, #tpu.memory_space<vmem>>, vector<8x1152xbf16>
    %c0_1 = arith.constant 0 : index
    %c0_2 = arith.constant 0 : index
    %1 = vector.load %arg2[%c0_1, %c0_2] : memref<1152x128xbf16, #tpu.memory_space<vmem>>, vector<1152x128xbf16>
    %cst = arith.constant dense<0.000000e+00> : vector<8x128xf32>
    %2 = tpu.matmul %0, %1, %cst {dimension_numbers = #tpu.dot_dimension_numbers<[1], [0], [0], [1], [0, 0, 1, 1], [], []>} : vector<8x1152xbf16>, vector<1152x128xbf16>, vector<8x128xf32> -> vector<8x128xf32>
    %c0_3 = arith.constant 0 : index
    %c0_4 = arith.constant 0 : index
    %3 = vector.load %arg3[%c0_3, %c0_4] : memref<1x128xf32, #tpu.memory_space<vmem>>, vector<1x128xf32>
    %4 = vector.broadcast %3 : vector<1x128xf32> to vector<8x128xf32>
    %5 = arith.addf %2, %4 : vector<8x128xf32>
    %cst_5 = arith.constant 0.000000e+00 : f32
    %6 = vector.broadcast %cst_5 : f32 to vector<8x128xf32>
    %7 = arith.cmpf oge, %5, %6 : vector<8x128xf32>
    %cst_6 = arith.constant 1.000000e-01 : f32
    %8 = vector.broadcast %cst_6 : f32 to vector<8x128xf32>
    %9 = arith.mulf %8, %5 : vector<8x128xf32>
    %10 = arith.select %7, %5, %9 : vector<8x128xi1>, vector<8x128xf32>
    %11 = arith.truncf %10 : vector<8x128xf32> to vector<8x128xbf16>
    %c0_7 = arith.constant 0 : index
    %c0_8 = arith.constant 0 : index
    %12 = vector.load %arg4[%c0_7, %c0_8] : memref<8x128xbf16, #tpu.memory_space<vmem>>, vector<8x128xbf16>
    tpu.vector_store %arg4[%c0_7, %c0_8], %11 {strides = array<i32>} : memref<8x128xbf16, #tpu.memory_space<vmem>>, vector<8x128xbf16>,
    return
  }
  func.func @transform_0(%arg0: i32) -> (i32, i32) {
    %c0_i32 = arith.constant 0 : i32
    %c0_i32_0 = arith.constant 0 : i32
    return %arg0, %c0_i32 : i32, i32
  }
  func.func @transform_1(%arg0: i32) -> (i32, i32) {
    %c0_i32 = arith.constant 0 : i32
    %c0_i32_0 = arith.constant 0 : i32
    %c0_i32_1 = arith.constant 0 : i32
    return %c0_i32, %c0_i32_0 : i32, i32
  }
  func.func @transform_2(%arg0: i32) -> (i32, i32) {
    %c0_i32 = arith.constant 0 : i32
    %c0_i32_0 = arith.constant 0 : i32
    %c0_i32_1 = arith.constant 0 : i32
    return %c0_i32, %c0_i32_0 : i32, i32
  }
  func.func @transform_3(%arg0: i32) -> (i32, i32) {
    %c0_i32 = arith.constant 0 : i32
    %c0_i32_0 = arith.constant 0 : i32
    return %arg0, %c0_i32 : i32, i32
  }
}

module attributes {stable_mosaic.version = 11 : i64} {
  func.func @_conv_mm_kernel(%arg0: i32, %arg1: memref<8x1152xbf16, #tpu.memory_space<vmem>>, %arg2: memref<1152x256xbf16, #tpu.memory_space<vmem>>, %arg3: memref<1x256xf32, #tpu.memory_space<vmem>>, %arg4: memref<8x256xbf16, #tpu.memory_space<vmem>>) attributes {dimension_semantics = [#tpu.dimension_semantics<parallel>], iteration_bounds = array<i64: 1>, scalar_prefetch = 0 : i64, scratch_operands = 0 : i64, tpu.core_type = #tpu.core_type<tc>, window_params = [{transform_indices = @transform_0, window_bounds = array<i64: 8, 1152>}, {pipeline_mode = #tpu.pipeline_mode<synchronous>, transform_indices = @transform_1, window_bounds = array<i64: 1152, 256>}, {pipeline_mode = #tpu.pipeline_mode<synchronous>, transform_indices = @transform_2, window_bounds = array<i64: 1, 256>}, {transform_indices = @transform_3, window_bounds = array<i64: 8, 256>}]} {
    %c0 = arith.constant 0 : index
    %c0_0 = arith.constant 0 : index
    %0 = vector.load %arg1[%c0, %c0_0] : memref<8x1152xbf16, #tpu.memory_space<vmem>>, vector<8x1152xbf16>
    %c0_1 = arith.constant 0 : index
    %c0_2 = arith.constant 0 : index
    %1 = vector.load %arg2[%c0_1, %c0_2] : memref<1152x256xbf16, #tpu.memory_space<vmem>>, vector<1152x256xbf16>
    %cst = arith.constant dense<0.000000e+00> : vector<8x256xf32>
    %2 = tpu.matmul %0, %1, %cst {dimension_numbers = #tpu.dot_dimension_numbers<[1], [0], [0], [1], [0, 0, 1, 1], [], []>} : vector<8x1152xbf16>, vector<1152x256xbf16>, vector<8x256xf32> -> vector<8x256xf32>
    %c0_3 = arith.constant 0 : index
    %c0_4 = arith.constant 0 : index
    %3 = vector.load %arg3[%c0_3, %c0_4] : memref<1x256xf32, #tpu.memory_space<vmem>>, vector<1x256xf32>
    %4 = vector.broadcast %3 : vector<1x256xf32> to vector<8x256xf32>
    %5 = arith.addf %2, %4 : vector<8x256xf32>
    %cst_5 = arith.constant 0.000000e+00 : f32
    %6 = vector.broadcast %cst_5 : f32 to vector<8x256xf32>
    %7 = arith.cmpf oge, %5, %6 : vector<8x256xf32>
    %cst_6 = arith.constant 1.000000e-01 : f32
    %8 = vector.broadcast %cst_6 : f32 to vector<8x256xf32>
    %9 = arith.mulf %8, %5 : vector<8x256xf32>
    %10 = arith.select %7, %5, %9 : vector<8x256xi1>, vector<8x256xf32>
    %11 = arith.truncf %10 : vector<8x256xf32> to vector<8x256xbf16>
    %c0_7 = arith.constant 0 : index
    %c0_8 = arith.constant 0 : index
    %12 = vector.load %arg4[%c0_7, %c0_8] : memref<8x256xbf16, #tpu.memory_space<vmem>>, vector<8x256xbf16>
    tpu.vector_store %arg4[%c0_7, %c0_8], %11 {strides = array<i32>} : memref<8x256xbf16, #tpu.memory_space<vmem>>, vector<8x256xbf16>,
    return
  }
  func.func @transform_0(%arg0: i32) -> (i32, i32) {
    %c0_i32 = arith.constant 0 : i32
    %c0_i32_0 = arith.constant 0 : i32
    return %arg0, %c0_i32 : i32, i32
  }
  func.func @transform_1(%arg0: i32) -> (i32, i32) {
    %c0_i32 = arith.constant 0 : i32
    %c0_i32_0 = arith.constant 0 : i32
    %c0_i32_1 = arith.constant 0 : i32
    return %c0_i32, %c0_i32_0 : i32, i32
  }
  func.func @transform_2(%arg0: i32) -> (i32, i32) {
    %c0_i32 = arith.constant 0 : i32
    %c0_i32_0 = arith.constant 0 : i32
    %c0_i32_1 = arith.constant 0 : i32
    return %c0_i32, %c0_i32_0 : i32, i32
  }
  func.func @transform_3(%arg0: i32) -> (i32, i32) {
    %c0_i32 = arith.constant 0 : i32
    %c0_i32_0 = arith.constant 0 : i32
    return %arg0, %c0_i32 : i32, i32
  }
}

module attributes {stable_mosaic.version = 11 : i64} {
  func.func @_conv_mm_kernel(%arg0: i32, %arg1: memref<8x2304xbf16, #tpu.memory_space<vmem>>, %arg2: memref<2304x256xbf16, #tpu.memory_space<vmem>>, %arg3: memref<1x256xf32, #tpu.memory_space<vmem>>, %arg4: memref<8x256xbf16, #tpu.memory_space<vmem>>) attributes {dimension_semantics = [#tpu.dimension_semantics<parallel>], iteration_bounds = array<i64: 1>, scalar_prefetch = 0 : i64, scratch_operands = 0 : i64, tpu.core_type = #tpu.core_type<tc>, window_params = [{transform_indices = @transform_0, window_bounds = array<i64: 8, 2304>}, {pipeline_mode = #tpu.pipeline_mode<synchronous>, transform_indices = @transform_1, window_bounds = array<i64: 2304, 256>}, {pipeline_mode = #tpu.pipeline_mode<synchronous>, transform_indices = @transform_2, window_bounds = array<i64: 1, 256>}, {transform_indices = @transform_3, window_bounds = array<i64: 8, 256>}]} {
    %c0 = arith.constant 0 : index
    %c0_0 = arith.constant 0 : index
    %0 = vector.load %arg1[%c0, %c0_0] : memref<8x2304xbf16, #tpu.memory_space<vmem>>, vector<8x2304xbf16>
    %c0_1 = arith.constant 0 : index
    %c0_2 = arith.constant 0 : index
    %1 = vector.load %arg2[%c0_1, %c0_2] : memref<2304x256xbf16, #tpu.memory_space<vmem>>, vector<2304x256xbf16>
    %cst = arith.constant dense<0.000000e+00> : vector<8x256xf32>
    %2 = tpu.matmul %0, %1, %cst {dimension_numbers = #tpu.dot_dimension_numbers<[1], [0], [0], [1], [0, 0, 1, 1], [], []>} : vector<8x2304xbf16>, vector<2304x256xbf16>, vector<8x256xf32> -> vector<8x256xf32>
    %c0_3 = arith.constant 0 : index
    %c0_4 = arith.constant 0 : index
    %3 = vector.load %arg3[%c0_3, %c0_4] : memref<1x256xf32, #tpu.memory_space<vmem>>, vector<1x256xf32>
    %4 = vector.broadcast %3 : vector<1x256xf32> to vector<8x256xf32>
    %5 = arith.addf %2, %4 : vector<8x256xf32>
    %cst_5 = arith.constant 0.000000e+00 : f32
    %6 = vector.broadcast %cst_5 : f32 to vector<8x256xf32>
    %7 = arith.cmpf oge, %5, %6 : vector<8x256xf32>
    %cst_6 = arith.constant 1.000000e-01 : f32
    %8 = vector.broadcast %cst_6 : f32 to vector<8x256xf32>
    %9 = arith.mulf %8, %5 : vector<8x256xf32>
    %10 = arith.select %7, %5, %9 : vector<8x256xi1>, vector<8x256xf32>
    %11 = arith.truncf %10 : vector<8x256xf32> to vector<8x256xbf16>
    %c0_7 = arith.constant 0 : index
    %c0_8 = arith.constant 0 : index
    %12 = vector.load %arg4[%c0_7, %c0_8] : memref<8x256xbf16, #tpu.memory_space<vmem>>, vector<8x256xbf16>
    tpu.vector_store %arg4[%c0_7, %c0_8], %11 {strides = array<i32>} : memref<8x256xbf16, #tpu.memory_space<vmem>>, vector<8x256xbf16>,
    return
  }
  func.func @transform_0(%arg0: i32) -> (i32, i32) {
    %c0_i32 = arith.constant 0 : i32
    %c0_i32_0 = arith.constant 0 : i32
    return %arg0, %c0_i32 : i32, i32
  }
  func.func @transform_1(%arg0: i32) -> (i32, i32) {
    %c0_i32 = arith.constant 0 : i32
    %c0_i32_0 = arith.constant 0 : i32
    %c0_i32_1 = arith.constant 0 : i32
    return %c0_i32, %c0_i32_0 : i32, i32
  }
  func.func @transform_2(%arg0: i32) -> (i32, i32) {
    %c0_i32 = arith.constant 0 : i32
    %c0_i32_0 = arith.constant 0 : i32
    %c0_i32_1 = arith.constant 0 : i32
    return %c0_i32, %c0_i32_0 : i32, i32
  }
  func.func @transform_3(%arg0: i32) -> (i32, i32) {
    %c0_i32 = arith.constant 0 : i32
    %c0_i32_0 = arith.constant 0 : i32
    return %arg0, %c0_i32 : i32, i32
  }
}

</mosaic_0001>

<bundles_post_ra>
// kernel: feat_extractor.7
= control target key start
LH: loop header
LB: loop body
LE: loop exit
PB: predicated region body
PF: predicated region fallthrough
CT: control target
= control target key end

     0   :  { %vm98_vm0 = vcmask 326656   ;;  %vm123_vm1 = vcmask 1043456   ;;  %s617_s1 = inlined_call_operand.vmem [shape: bf16[40,128], index: 1, kind: input, shape index: {}]   ;;  %s618_s0 = inlined_call_operand.vmem [shape: bf16[128,40], index: 0, kind: input, shape index: {}]   ;;  %s619_s2 = inlined_call_operand.vmem [shape: f32[1,128], index: 2, kind: input, shape index: {}]   ;;  %s620_s3 = inlined_call_operand.vmem [shape: bf16[128,128], index: 3, kind: output, shape index: {}]  }
   0x1   :  { %v496_v0 = vld [vmem:[%s617_s1] sm:$0xff]   ;;  %v497_v1 = vld [vmem:[%s617_s1 + $0x8] sm:$0xff]   ;;  %v498_v2 = vld [vmem:[%s617_s1 + $0x10] ss:$0 sps:$4 sm:$0xff]  }
   0x2   :  { %466 = vmatprep.subr.bf16.mxu0 %v496_v0  ;;  %488 = vmatprep.subr.bf16.mxu1 %v496_v0  ;;  %v499_v3 = vld [vmem:[%s618_s0] sm:$0xff]   ;;  %v125_v5 = vsel %vm123_vm1, %v498_v2, 0  ;;  %v501_v6 = vld [vmem:[%s618_s0 + $0x8] sm:$0xff]   ;;  %v503_v8 = vld [vmem:[%s618_s0 + $0x10] sm:$0xff]  }
   0x3   :  { %467 = vmatpush3.bf16.msra.mxu0 %v496_v0  ;;  %491 = vmatpush3.bf16.msra.mxu1 %v496_v0  ;;  %v500_v4 = vld [vmem:[%s618_s0 + $0x20] sm:$0xff]   ;;  %v502_v7 = vld [vmem:[%s618_s0 + $0x28] sm:$0xff]   ;;  %v504_v9 = vld [vmem:[%s618_s0 + $0x30] sm:$0xff]  }
   0x4   :  { %468 = vmatprep.subr.bf16.mxu0 %v497_v1  ;;  %489 = vmatprep.subr.bf16.mxu1 %v497_v1  ;;  %v505_v10 = vld [vmem:[%s618_s0 + $0x18] sm:$0xff]   ;;  %v571_v12 = vld [vmem:[%s619_s2] ss:$0 sm:$0xff] }
   0x5   :  { %472 = vmatprep.mubr.msk.bf16.mxu0 %vm98_vm0, %v499_v3  ;;  %480 = vmatprep.mubr.msk.bf16.mxu1 %vm98_vm0, %v500_v4  ;;  %v506_v11 = vld [vmem:[%s618_s0 + $0x38] sm:$0xff]  }
   0x7   :  { %469 = vmatpush3.bf16.msra.mxu0 %v497_v1  ;;  %492 = vmatpush3.bf16.msra.mxu1 %v497_v1 }
   0x8   :  { %494 = vmatprep.subr.msk.bf16.mxu0 %vm123_vm1, %v498_v2  ;;  %495 = vmatprep.subr.msk.bf16.mxu1 %vm123_vm1, %v498_v2 }
   0xb   :  { %471 = vmatpush3.bf16.msra.mxu0 %v125_v5  ;;  %493 = vmatpush3.bf16.msra.mxu1 %v125_v5 }
   0xe   :  { %473 = vmatmul.mubr.msk.bf16.vlgmr.msra.gmra.mrb[0].mxu0 %vm98_vm0, %v501_v6  ;;  %481 = vmatmul.mubr.msk.bf16.vlgmr.msra.gmra.mrb[0].mxu1 %vm98_vm0, %v502_v7 }
   0xf   :  { %476 = vmatprep.mubr.msk.bf16.mxu0 %vm98_vm0, %v503_v8  ;;  %484 = vmatprep.mubr.msk.bf16.mxu1 %vm98_vm0, %v504_v9 }
  0x16   :  { %477 = vmatmul.mubr.msk.bf16.gmra.mrb[4].mxu0 %vm98_vm0, %v505_v10  ;;  %485 = vmatmul.mubr.msk.bf16.gmra.mrb[4].mxu1 %vm98_vm0, %v506_v11 }
  0xe1   :  { %v474_v13 = vpop.f32.mrb[0].mxu0  ;;  %v482_v14 = vpop.f32.mrb[0].mxu1 }
  0xe2   :  { %v170_v15 = vadd.f32 %v474_v13, %v571_v12  ;;  %v202_v16 = vadd.f32 %v482_v14, %v571_v12  ;;  %v161_v17 = vpop.f32.mrb[1].mxu0  ;;  %v193_v18 = vpop.f32.mrb[1].mxu1 }
  0xe3   :  { %v162_v19 = vadd.f32 %v571_v12, %v161_v17  ;;  %v194_v20 = vadd.f32 %v571_v12, %v193_v18  ;;  %v475_v21 = vpop.f32.mrb[2].mxu0  ;;  %v483_v22 = vpop.f32.mrb[2].mxu1 }
  0xe4   :  { %vm226_vm2 = vcmp.ge.f32.partialorder %v170_v15, 0.0  ;;  %v242_v23 = vmul.f32 0.1, %v170_v15  ;;  %vm234_vm3 = vcmp.ge.f32.partialorder %v202_v16, 0.0  ;;  %v250_v24 = vmul.f32 0.1, %v202_v16 }
  0xe5   :  { %vm224_vm4 = vcmp.ge.f32.partialorder %v162_v19, 0.0  ;;  %v240_v25 = vmul.f32 0.1, %v162_v19  ;;  %vm232_vm5 = vcmp.ge.f32.partialorder %v194_v20, 0.0  ;;  %v248_v26 = vmul.f32 0.1, %v194_v20 }
  0xe6   :  { %v173_v27 = vadd.f32 %v475_v21, %v571_v12  ;;  %v205_v28 = vadd.f32 %v483_v22, %v571_v12  ;;  %v164_v29 = vpop.f32.mrb[3].mxu0  ;;  %v196_v30 = vpop.f32.mrb[3].mxu1  ;;  %v258_v31 = vsel %vm226_vm2, %v170_v15, %v242_v23  ;;  %v266_v32 = vsel %vm234_vm3, %v202_v16, %v250_v24 }
  0xe7   :  { %v165_v33 = vadd.f32 %v571_v12, %v164_v29  ;;  %v197_v34 = vadd.f32 %v571_v12, %v196_v30  ;;  %v256_v39 = vsel %vm224_vm4, %v162_v19, %v240_v25  ;;  %v264_v40 = vsel %vm232_vm5, %v194_v20, %v248_v26 }
  0xe8   :  { %vm227_vm6 = vcmp.ge.f32.partialorder %v173_v27, 0.0  ;;  %v243_v35 = vmul.f32 0.1, %v173_v27  ;;  %vm235_vm7 = vcmp.ge.f32.partialorder %v205_v28, 0.0  ;;  %v251_v36 = vmul.f32 0.1, %v205_v28 }
  0xe9   :  { %vm225_vm8 = vcmp.ge.f32.partialorder %v165_v33, 0.0  ;;  %v241_v37 = vmul.f32 0.1, %v165_v33  ;;  %vm233_vm9 = vcmp.ge.f32.partialorder %v197_v34, 0.0  ;;  %v249_v38 = vmul.f32 0.1, %v197_v34 }
  0xea   :  { %v259_v41 = vsel %vm227_vm6, %v173_v27, %v243_v35  ;;  %v267_v42 = vsel %vm235_vm7, %v205_v28, %v251_v36  ;;  %v478_v43 = vpop.f32.mrb[4].mxu0  ;;  %v486_v44 = vpop.f32.mrb[4].mxu1 }
  0xeb   :  { %v416_v45 = vpack.c.bf16 %v259_v41, %v258_v31  ;;  %v436_v46 = vpack.c.bf16 %v267_v42, %v266_v32  ;;  %v257_v47 = vsel %vm225_vm8, %v165_v33, %v241_v37  ;;  %v265_v48 = vsel %vm233_vm9, %v197_v34, %v249_v38  ;;  %v177_v49 = vpop.f32.mrb[5].mxu0  ;;  %v209_v50 = vpop.f32.mrb[5].mxu1 }
  0xec   :  { %v411_v51 = vpack.c.bf16 %v257_v47, %v256_v39  ;;  %v431_v52 = vpack.c.bf16 %v265_v48, %v264_v40  ;;  %v186_v53 = vadd.f32 %v478_v43, %v571_v12  ;;  %v218_v54 = vadd.f32 %v486_v44, %v571_v12  ;;  %v479_v55 = vpop.f32.mrb[6].mxu0  ;;  %v487_v56 = vpop.f32.mrb[6].mxu1 }
  0xed   :  { %448 = vst [vmem:[%s620_s3 + $0x8] sm:$0xff] %v416_v45   ;;  %452 = vst [vmem:[%s620_s3 + $0x28] sm:$0xff] %v436_v46   ;;  %v178_v57 = vadd.f32 %v571_v12, %v177_v49  ;;  %v210_v58 = vadd.f32 %v571_v12, %v209_v50  ;;  %v189_v59 = vadd.f32 %v479_v55, %v571_v12  ;;  %v180_v61 = vpop.f32.mrb[7].mxu0  ;;  %v212_v62 = vpop.f32.mrb[7].mxu1 }
  0xee   :  { %v221_v60 = vadd.f32 %v487_v56, %v571_v12  ;;  %412 = vst [vmem:[%s620_s3] sm:$0xff] %v411_v51   ;;  %451 = vst [vmem:[%s620_s3 + $0x20] sm:$0xff] %v431_v52   ;;  %v246_v63 = vmul.f32 0.1, %v186_v53  ;;  %vm230_vm10 = vcmp.ge.f32.partialorder %v186_v53, 0.0  ;;  %v254_v0 = vmul.f32 0.1, %v218_v54 }
  0xef   :  { %vm238_vm11 = vcmp.ge.f32.partialorder %v218_v54, 0.0  ;;  %vm228_vm12 = vcmp.ge.f32.partialorder %v178_v57, 0.0  ;;  %vm231_vm13 = vcmp.ge.f32.partialorder %v189_v59, 0.0  ;;  %v247_v1 = vmul.f32 0.1, %v189_v59 }
  0xf0   :  { %v244_v2 = vmul.f32 0.1, %v178_v57  ;;  %vm236_vm14 = vcmp.ge.f32.partialorder %v210_v58, 0.0  ;;  %vm239_vm15 = vcmp.ge.f32.partialorder %v221_v60, 0.0  ;;  %v255_v3 = vmul.f32 0.1, %v221_v60 }
  0xf1   :  { %v262_v4 = vsel %vm230_vm10, %v186_v53, %v246_v63  ;;  %v263_v5 = vsel %vm231_vm13, %v189_v59, %v247_v1  ;;  %v181_v6 = vadd.f32 %v571_v12, %v180_v61  ;;  %v213_v7 = vadd.f32 %v571_v12, %v212_v62 }
  0xf2   :  { %v270_v8 = vsel %vm238_vm11, %v218_v54, %v254_v0  ;;  %v252_v9 = vmul.f32 0.1, %v210_v58  ;;  %v426_v10 = vpack.c.bf16 %v263_v5, %v262_v4  ;;  %v271_v11 = vsel %vm239_vm15, %v221_v60, %v255_v3 }
  0xf3   :  { %v446_v13 = vpack.c.bf16 %v271_v11, %v270_v8  ;;  %vm229_vm0 = vcmp.ge.f32.partialorder %v181_v6, 0.0  ;;  %v245_v14 = vmul.f32 0.1, %v181_v6  ;;  %vm237_vm1 = vcmp.ge.f32.partialorder %v213_v7, 0.0 }
  0xf4   :  { %450 = vst [vmem:[%s620_s3 + $0x18] sm:$0xff] %v426_v10   ;;  %v253_v15 = vmul.f32 0.1, %v213_v7  ;;  %v260_v16 = vsel %vm228_vm12, %v178_v57, %v244_v2  ;;  %v268_v17 = vsel %vm236_vm14, %v210_v58, %v252_v9 }
  0xf5   :  { %454 = vst [vmem:[%s620_s3 + $0x38] sm:$0xff] %v446_v13   ;;  %v261_v12 = vsel %vm229_vm0, %v181_v6, %v245_v14 }
  0xf6   :  { %v421_v18 = vpack.c.bf16 %v261_v12, %v260_v16  ;;  %v269_v19 = vsel %vm237_vm1, %v213_v7, %v253_v15 }
  0xf7   :  { %v441_v20 = vpack.c.bf16 %v269_v19, %v268_v17 }
  0xf8   :  { %449 = vst [vmem:[%s620_s3 + $0x10] sm:$0xff] %v421_v18  }
  0xf9   :  { %453 = vst [vmem:[%s620_s3 + $0x30] sm:$0xff] %v441_v20  }

// kernel: feat_extractor.8
= control target key start
LH: loop header
LB: loop body
LE: loop exit
PB: predicated region body
PF: predicated region fallthrough
CT: control target
= control target key end

     0   :  { %vm372_vm0 = vcmask 523264   ;;  %s921_s1 = inlined_call_operand.vmem [shape: bf16[576,128], index: 1, kind: input, shape index: {}]   ;;  %s922_s0 = inlined_call_operand.vmem [shape: bf16[32,576], index: 0, kind: input, shape index: {}]   ;;  %s923_s2 = inlined_call_operand.vmem [shape: f32[1,128], index: 2, kind: input, shape index: {}]   ;;  %s924_s3 = inlined_call_operand.vmem [shape: bf16[32,128], index: 3, kind: output, shape index: {}]  }
   0x1   :  { %v704_v0 = vld [vmem:[%s921_s1 + $0x40] sm:$0xff]   ;;  %v708_v4 = vld [vmem:[%s921_s1 + $0x48] sm:$0xff]   ;;  %v712_v8 = vld [vmem:[%s921_s1 + $0x50] sm:$0xff]  }
   0x2   :  { %v705_v1 = vld [vmem:[%s921_s1] sm:$0xff]   ;;  %630 = vmatprep.subr.bf16.mxu0 %v704_v0  ;;  %v709_v5 = vld [vmem:[%s921_s1 + $0x8] sm:$0xff]   ;;  %v713_v9 = vld [vmem:[%s921_s1 + $0x10] sm:$0xff]  }
   0x3   :  { %v706_v2 = vld [vmem:[%s921_s1 + $0xc0] sm:$0xff]   ;;  %631 = vmatpush3.bf16.msra.mxu0 %v705_v1  ;;  %v710_v6 = vld [vmem:[%s921_s1 + $0xc8] sm:$0xff]   ;;  %v714_v10 = vld [vmem:[%s921_s1 + $0xd0] sm:$0xff]  }
   0x4   :  { %v707_v3 = vld [vmem:[%s921_s1 + $0x80] sm:$0xff]   ;;  %658 = vmatprep.subr.bf16.mxu1 %v706_v2  ;;  %632 = vmatprep.subr.bf16.mxu0 %v708_v4  ;;  %v711_v7 = vld [vmem:[%s921_s1 + $0x88] sm:$0xff]   ;;  %v715_v11 = vld [vmem:[%s921_s1 + $0x90] sm:$0xff]  }
   0x5   :  { %659 = vmatpush3.bf16.msra.mxu1 %v707_v3  ;;  %v716_v12 = vld [vmem:[%s921_s1 + $0x58] sm:$0xff]   ;;  %v720_v16 = vld [vmem:[%s921_s1 + $0x60] sm:$0xff]   ;;  %v724_v20 = vld [vmem:[%s921_s1 + $0x68] sm:$0xff]  }
   0x6   :  { %660 = vmatprep.subr.bf16.mxu1 %v710_v6  ;;  %v717_v13 = vld [vmem:[%s921_s1 + $0x18] sm:$0xff]   ;;  %v721_v17 = vld [vmem:[%s921_s1 + $0x20] sm:$0xff]   ;;  %v725_v21 = vld [vmem:[%s921_s1 + $0x28] sm:$0xff]  }
   0x7   :  { %633 = vmatpush3.bf16.msra.mxu0 %v709_v5  ;;  %v718_v14 = vld [vmem:[%s921_s1 + $0xd8] sm:$0xff]   ;;  %v722_v18 = vld [vmem:[%s921_s1 + $0xe0] sm:$0xff]   ;;  %v726_v22 = vld [vmem:[%s921_s1 + $0xe8] sm:$0xff]  }
   0x8   :  { %634 = vmatprep.subr.bf16.mxu0 %v712_v8  ;;  %v719_v15 = vld [vmem:[%s921_s1 + $0x98] sm:$0xff]   ;;  %v723_v19 = vld [vmem:[%s921_s1 + $0xa0] sm:$0xff]   ;;  %v727_v23 = vld [vmem:[%s921_s1 + $0xa8] sm:$0xff]  }
   0x9   :  { %661 = vmatpush3.bf16.msra.mxu1 %v711_v7  ;;  %v728_v24 = vld [vmem:[%s921_s1 + $0x70] sm:$0xff]   ;;  %v732_v28 = vld [vmem:[%s921_s1 + $0x78] sm:$0xff]   ;;  %v739_v34 = vld [vmem:[%s921_s1 + $0x100] sm:$0xff]  }
   0xa   :  { %662 = vmatprep.subr.bf16.mxu1 %v714_v10  ;;  %v729_v25 = vld [vmem:[%s921_s1 + $0x30] sm:$0xff]   ;;  %v733_v29 = vld [vmem:[%s921_s1 + $0x38] sm:$0xff]   ;;  %v742_v36 = vld [vmem:[%s922_s0 + $0xc] ss:$20 sps:$4 sm:$0xff]  }
   0xb   :  { %635 = vmatpush3.bf16.msra.mxu0 %v713_v9  ;;  %v730_v26 = vld [vmem:[%s921_s1 + $0xf0] sm:$0xff]   ;;  %v734_v30 = vld [vmem:[%s921_s1 + $0xf8] sm:$0xff]   ;;  %v743_v37 = vld [vmem:[%s921_s1 + $0x108] sm:$0xff]   ;;  %460 = vmatprep.mubr.bf16.mxu1 %v742_v36 }
   0xc   :  { %636 = vmatprep.subr.bf16.mxu0 %v716_v12  ;;  %v731_v27 = vld [vmem:[%s921_s1 + $0xb0] sm:$0xff]   ;;  %v737_v32 = vld [vmem:[%s922_s0 + $0x4] ss:$20 sps:$4 sm:$0xff]   ;;  %v740_v35 = vld [vmem:[%s922_s0 + $0x8] ss:$20 sps:$4 sm:$0xff]  }
   0xd   :  { %663 = vmatpush3.bf16.msra.mxu1 %v715_v11  ;;  %v735_v31 = vld [vmem:[%s922_s0] ss:$20 sps:$4 sm:$0xff]   ;;  %v738_v33 = vld [vmem:[%s921_s1 + $0xb8] sm:$0xff]   ;;  %411 = vmatprep.mubr.bf16.mxu0 %v737_v32  ;;  %v750_v42 = vld [vmem:[%s922_s0 + $0x30] ss:$20 sps:$4 sm:$0xff]  }
   0xe   :  { %664 = vmatprep.subr.bf16.mxu1 %v718_v14  ;;  %v744_v38 = vld [vmem:[%s922_s0 + $0x2c] ss:$20 sps:$4 sm:$0xff]   ;;  %v746_v39 = vld [vmem:[%s922_s0 + $0x28] ss:$20 sps:$4 sm:$0xff]   ;;  %v747_v40 = vld [vmem:[%s921_s1 + $0x110] sm:$0xff]  }
   0xf   :  { %637 = vmatpush3.bf16.msra.mxu0 %v717_v13  ;;  %v748_v41 = vld [vmem:[%s922_s0 + $0x34] ss:$20 sps:$4 sm:$0xff]   ;;  %v751_v43 = vld [vmem:[%s921_s1 + $0x118] sm:$0xff]   ;;  %v752_v44 = vld [vmem:[%s922_s0 + $0x10] ss:$20 sps:$4 sm:$0xff]  }
  0x10   :  { %638 = vmatprep.subr.bf16.mxu0 %v720_v16  ;;  %v753_v45 = vld [vmem:[%s922_s0 + $0x38] ss:$20 sps:$4 sm:$0xff]   ;;  %v562_v47 = vld [vmem:[%s923_s2] ss:$0 sm:$0xff] }
  0x11   :  { %665 = vmatpush3.bf16.msra.mxu1 %v719_v15 }
  0x12   :  { %666 = vmatprep.subr.bf16.mxu1 %v722_v18 }
  0x13   :  { %639 = vmatpush3.bf16.msra.mxu0 %v721_v17 }
  0x14   :  { %640 = vmatprep.subr.bf16.mxu0 %v724_v20 }
  0x15   :  { %667 = vmatpush3.bf16.msra.mxu1 %v723_v19 }
  0x16   :  { %668 = vmatprep.subr.bf16.mxu1 %v726_v22 }
  0x17   :  { %641 = vmatpush3.bf16.msra.mxu0 %v725_v21 }
  0x18   :  { %642 = vmatprep.subr.bf16.mxu0 %v728_v24 }
  0x19   :  { %669 = vmatpush3.bf16.msra.mxu1 %v727_v23 }
  0x1a   :  { %670 = vmatprep.subr.bf16.mxu1 %v730_v26 }
  0x1b   :  { %643 = vmatpush3.bf16.msra.mxu0 %v729_v25 }
  0x1c   :  { %644 = vmatprep.subr.bf16.mxu0 %v732_v28 }
  0x1d   :  { %671 = vmatpush3.bf16.msra.mxu1 %v731_v27 }
  0x1e   :  { %672 = vmatprep.subr.bf16.mxu1 %v734_v30 }
  0x1f   :  { %645 = vmatpush3.bf16.msra.mxu0 %v733_v29 }
  0x20   :  { %692 = vmatprep.subr.bf16.mxu0 %v739_v34 }
  0x21   :  { %673 = vmatpush3.bf16.msra.mxu1 %v738_v33 }
  0x22   :  { %412 = vmatmul.mubr.bf16.vlgmr.msra.gmra.mrb[0].mxu0 %v735_v31 }
  0x23   :  { %693 = vmatpush3.bf16.msra.mxu0 %v739_v34  ;;  %419 = vmatprep.mubr.bf16.mxu0 %v744_v38 }
  0x24   :  { %461 = vmatmul.mubr.bf16.vlgmr.msra.gmra.mrb[0].mxu1 %v740_v35  ;;  %694 = vmatprep.subr.bf16.mxu0 %v743_v37 }
  0x25   :  { %468 = vmatprep.mubr.bf16.mxu1 %v748_v41 }
  0x27   :  { %695 = vmatpush3.bf16.msra.mxu0 %v743_v37 }
  0x28   :  { %696 = vmatprep.subr.bf16.mxu0 %v747_v40 }
  0x2a   :  { %420 = vmatmul.mubr.bf16.gmra.mrb[4].mxu0 %v746_v39 }
  0x2b   :  { %700 = vmatprep.mubr.msk.bf16.mxu0 %vm372_vm0, %v752_v44  ;;  %697 = vmatpush3.bf16.msra.mxu0 %v747_v40 }
  0x2c   :  { %469 = vmatmul.mubr.bf16.gmra.mrb[4].mxu1 %v750_v42  ;;  %698 = vmatprep.subr.bf16.mxu0 %v751_v43 }
  0x2f   :  { %699 = vmatpush3.bf16.msra.mxu0 %v751_v43 }
  0x32   :  { %701 = vmatmul.mubr.msk.bf16.vlgmr.msra.gmra.mrb[8].mxu0 %vm372_vm0, %v753_v45 }
  0xf5   :  { %v646_v46 = vpop.f32.mrb[0].mxu0 }
  0xf6   :  { %v647_v48 = vpop.f32.mrb[1].mxu0 }
  0xf7   :  { %v648_v49 = vadd.f32 %v647_v48, %v646_v46  ;;  %v649_v50 = vpop.f32.mrb[2].mxu0  ;;  %v674_v51 = vpop.f32.mrb[0].mxu1 }
  0xf8   :  { %v650_v52 = vpop.f32.mrb[3].mxu0  ;;  %v675_v55 = vpop.f32.mrb[1].mxu1 }
  0xf9   :  { %v414_v53 = vadd.f32 %v648_v49, %v562_v47  ;;  %v651_v54 = vadd.f32 %v650_v52, %v649_v50  ;;  %v676_v56 = vadd.f32 %v675_v55, %v674_v51  ;;  %v677_v57 = vpop.f32.mrb[2].mxu1 }
  0xfa   :  { %v678_v59 = vpop.f32.mrb[3].mxu1 }
  0xfb   :  { %v417_v58 = vadd.f32 %v651_v54, %v562_v47  ;;  %v679_v60 = vadd.f32 %v678_v59, %v677_v57  ;;  %v463_v61 = vadd.f32 %v676_v56, %v414_v53 }
  0xfd   :  { %v652_v62 = vpop.f32.mrb[4].mxu0  ;;  %v466_v0 = vadd.f32 %v679_v60, %v417_v58 }
  0xfe   :  { %v653_v63 = vpop.f32.mrb[5].mxu0 }
  0xff   :  { %v654_v1 = vadd.f32 %v653_v63, %v652_v62  ;;  %v655_v2 = vpop.f32.mrb[6].mxu0  ;;  %v680_v3 = vpop.f32.mrb[4].mxu1 }
 0x100   :  { %v656_v4 = vpop.f32.mrb[7].mxu0  ;;  %v681_v7 = vpop.f32.mrb[5].mxu1 }
 0x101   :  { %v422_v5 = vadd.f32 %v654_v1, %v562_v47  ;;  %v657_v6 = vadd.f32 %v656_v4, %v655_v2  ;;  %v682_v8 = vadd.f32 %v681_v7, %v680_v3  ;;  %v683_v9 = vpop.f32.mrb[6].mxu1 }
 0x102   :  { %v684_v11 = vpop.f32.mrb[7].mxu1 }
 0x103   :  { %v425_v10 = vadd.f32 %v657_v6, %v562_v47  ;;  %v685_v12 = vadd.f32 %v684_v11, %v683_v9  ;;  %v471_v13 = vadd.f32 %v682_v8, %v422_v5 }
 0x105   :  { %v702_v14 = vpop.f32.mrb[8].mxu0  ;;  %v474_v15 = vadd.f32 %v685_v12, %v425_v10 }
 0x106   :  { %v520_v16 = vadd.f32 %v702_v14, %v471_v13  ;;  %v511_v17 = vpop.f32.mrb[9].mxu0 }
 0x107   :  { %v512_v18 = vadd.f32 %v511_v17, %v463_v61  ;;  %v703_v19 = vpop.f32.mrb[10].mxu0 }
 0x108   :  { %v532_v20 = vmul.f32 0.1, %v520_v16  ;;  %v523_v21 = vadd.f32 %v703_v19, %v474_v15  ;;  %v514_v22 = vpop.f32.mrb[11].mxu0  ;;  %vm528_vm1 = vcmp.ge.f32.partialorder %v520_v16, 0.0 }
 0x109   :  { %v530_v23 = vmul.f32 0.1, %v512_v18  ;;  %v515_v24 = vadd.f32 %v514_v22, %v466_v0  ;;  %vm526_vm2 = vcmp.ge.f32.partialorder %v512_v18, 0.0 }
 0x10a   :  { %vm529_vm3 = vcmp.ge.f32.partialorder %v523_v21, 0.0  ;;  %v533_v25 = vmul.f32 0.1, %v523_v21  ;;  %v536_v27 = vsel %vm528_vm1, %v520_v16, %v532_v20 }
 0x10b   :  { %vm527_vm4 = vcmp.ge.f32.partialorder %v515_v24, 0.0  ;;  %v531_v26 = vmul.f32 0.1, %v515_v24  ;;  %v534_v29 = vsel %vm526_vm2, %v512_v18, %v530_v23 }
 0x10c   :  { %v537_v28 = vsel %vm529_vm3, %v523_v21, %v533_v25 }
 0x10d   :  { %v627_v30 = vpack.c.bf16 %v537_v28, %v536_v27  ;;  %v535_v31 = vsel %vm527_vm4, %v515_v24, %v531_v26 }
 0x10e   :  { %v622_v32 = vpack.c.bf16 %v535_v31, %v534_v29 }
 0x10f   :  { %629 = vst [vmem:[%s924_s3 + $0x8] sm:$0xff] %v627_v30  }
 0x110   :  { %623 = vst [vmem:[%s924_s3] sm:$0xff] %v622_v32  }

// kernel: feat_extractor.9
= control target key start
LH: loop header
LB: loop body
LE: loop exit
PB: predicated region body
PF: predicated region fallthrough
CT: control target
= control target key end

     0   :  { %s1640_s1 = inlined_call_operand.vmem [shape: bf16[1152,128], index: 1, kind: input, shape index: {}]   ;;  %s1641_s0 = inlined_call_operand.vmem [shape: bf16[32,1152], index: 0, kind: input, shape index: {}]   ;;  %s1642_s2 = inlined_call_operand.vmem [shape: f32[1,128], index: 2, kind: input, shape index: {}]   ;;  %s1643_s3 = inlined_call_operand.vmem [shape: bf16[32,128], index: 3, kind: output, shape index: {}]  }
   0x1   :  { %v1243_v0 = vld [vmem:[%s1640_s1 + $0x40] sm:$0xff]   ;;  %v1247_v4 = vld [vmem:[%s1640_s1 + $0x48] sm:$0xff]   ;;  %v1251_v8 = vld [vmem:[%s1640_s1 + $0x50] sm:$0xff]  }
   0x2   :  { %v1244_v1 = vld [vmem:[%s1640_s1] sm:$0xff]   ;;  %1101 = vmatprep.subr.bf16.mxu0 %v1243_v0  ;;  %v1248_v5 = vld [vmem:[%s1640_s1 + $0x8] sm:$0xff]   ;;  %v1252_v9 = vld [vmem:[%s1640_s1 + $0x10] sm:$0xff]  }
   0x3   :  { %v1245_v2 = vld [vmem:[%s1640_s1 + $0xc0] sm:$0xff]   ;;  %1102 = vmatpush3.bf16.msra.mxu0 %v1244_v1  ;;  %v1249_v6 = vld [vmem:[%s1640_s1 + $0xc8] sm:$0xff]   ;;  %v1253_v10 = vld [vmem:[%s1640_s1 + $0xd0] sm:$0xff]  }
   0x4   :  { %v1246_v3 = vld [vmem:[%s1640_s1 + $0x80] sm:$0xff]   ;;  %1129 = vmatprep.subr.bf16.mxu1 %v1245_v2  ;;  %1103 = vmatprep.subr.bf16.mxu0 %v1247_v4  ;;  %v1250_v7 = vld [vmem:[%s1640_s1 + $0x88] sm:$0xff]   ;;  %v1254_v11 = vld [vmem:[%s1640_s1 + $0x90] sm:$0xff]  }
   0x5   :  { %1130 = vmatpush3.bf16.msra.mxu1 %v1246_v3  ;;  %v1255_v12 = vld [vmem:[%s1640_s1 + $0x58] sm:$0xff]   ;;  %v1259_v16 = vld [vmem:[%s1640_s1 + $0x60] sm:$0xff]   ;;  %v1263_v20 = vld [vmem:[%s1640_s1 + $0x68] sm:$0xff]  }
   0x6   :  { %1131 = vmatprep.subr.bf16.mxu1 %v1249_v6  ;;  %v1256_v13 = vld [vmem:[%s1640_s1 + $0x18] sm:$0xff]   ;;  %v1260_v17 = vld [vmem:[%s1640_s1 + $0x20] sm:$0xff]   ;;  %v1264_v21 = vld [vmem:[%s1640_s1 + $0x28] sm:$0xff]  }
   0x7   :  { %1104 = vmatpush3.bf16.msra.mxu0 %v1248_v5  ;;  %v1257_v14 = vld [vmem:[%s1640_s1 + $0xd8] sm:$0xff]   ;;  %v1261_v18 = vld [vmem:[%s1640_s1 + $0xe0] sm:$0xff]   ;;  %v1265_v22 = vld [vmem:[%s1640_s1 + $0xe8] sm:$0xff]  }
   0x8   :  { %1105 = vmatprep.subr.bf16.mxu0 %v1251_v8  ;;  %v1258_v15 = vld [vmem:[%s1640_s1 + $0x98] sm:$0xff]   ;;  %v1262_v19 = vld [vmem:[%s1640_s1 + $0xa0] sm:$0xff]   ;;  %v1266_v23 = vld [vmem:[%s1640_s1 + $0xa8] sm:$0xff]  }
   0x9   :  { %1132 = vmatpush3.bf16.msra.mxu1 %v1250_v7  ;;  %v1267_v24 = vld [vmem:[%s1640_s1 + $0x70] sm:$0xff]   ;;  %v1271_v28 = vld [vmem:[%s1640_s1 + $0x78] sm:$0xff]   ;;  %v1274_v31 = vld [vmem:[%s1641_s0] ss:$36 sps:$4 sm:$0xff]  }
   0xa   :  { %1133 = vmatprep.subr.bf16.mxu1 %v1253_v10  ;;  %v1268_v25 = vld [vmem:[%s1640_s1 + $0x30] sm:$0xff]   ;;  %v1272_v29 = vld [vmem:[%s1640_s1 + $0x38] sm:$0xff]   ;;  %v1276_v32 = vld [vmem:[%s1641_s0 + $0x4] ss:$36 sps:$4 sm:$0xff]  }
   0xb   :  { %1106 = vmatpush3.bf16.msra.mxu0 %v1252_v9  ;;  %v1269_v26 = vld [vmem:[%s1640_s1 + $0xf0] sm:$0xff]   ;;  %v1273_v30 = vld [vmem:[%s1640_s1 + $0xf8] sm:$0xff]   ;;  %742 = vmatprep.mubr.bf16.mxu0 %v1276_v32  ;;  %v1278_v34 = vld [vmem:[%s1640_s1 + $0x140] sm:$0xff]  }
   0xc   :  { %1107 = vmatprep.subr.bf16.mxu0 %v1255_v12  ;;  %v1270_v27 = vld [vmem:[%s1640_s1 + $0xb0] sm:$0xff]   ;;  %v1277_v33 = vld [vmem:[%s1640_s1 + $0xb8] sm:$0xff]   ;;  %v1279_v35 = vld [vmem:[%s1641_s0 + $0x8] ss:$36 sps:$4 sm:$0xff]  }
   0xd   :  { %1134 = vmatpush3.bf16.msra.mxu1 %v1254_v11  ;;  %v1281_v36 = vld [vmem:[%s1641_s0 + $0xc] ss:$36 sps:$4 sm:$0xff]   ;;  %v1282_v37 = vld [vmem:[%s1640_s1 + $0x100] sm:$0xff]   ;;  %v1293_v48 = vld [vmem:[%s1640_s1 + $0x158] sm:$0xff]  }
   0xe   :  { %1135 = vmatprep.subr.bf16.mxu1 %v1257_v14  ;;  %791 = vmatprep.mubr.bf16.mxu1 %v1281_v36  ;;  %v1283_v38 = vld [vmem:[%s1640_s1 + $0x1c0] sm:$0xff]   ;;  %v1285_v40 = vld [vmem:[%s1640_s1 + $0x148] sm:$0xff]   ;;  %v1289_v44 = vld [vmem:[%s1640_s1 + $0x150] sm:$0xff]  }
   0xf   :  { %1108 = vmatpush3.bf16.msra.mxu0 %v1256_v13  ;;  %v1284_v39 = vld [vmem:[%s1640_s1 + $0x180] sm:$0xff]   ;;  %v1286_v41 = vld [vmem:[%s1640_s1 + $0x108] sm:$0xff]   ;;  %v1290_v45 = vld [vmem:[%s1640_s1 + $0x110] sm:$0xff]  }
  0x10   :  { %1109 = vmatprep.subr.bf16.mxu0 %v1259_v16  ;;  %v1287_v42 = vld [vmem:[%s1640_s1 + $0x1c8] sm:$0xff]   ;;  %v1291_v46 = vld [vmem:[%s1640_s1 + $0x1d0] sm:$0xff]   ;;  %v1294_v49 = vld [vmem:[%s1640_s1 + $0x118] sm:$0xff]  }
  0x11   :  { %1136 = vmatpush3.bf16.msra.mxu1 %v1258_v15  ;;  %v1288_v43 = vld [vmem:[%s1640_s1 + $0x188] sm:$0xff]   ;;  %v1292_v47 = vld [vmem:[%s1640_s1 + $0x190] sm:$0xff]   ;;  %v1295_v50 = vld [vmem:[%s1640_s1 + $0x1d8] sm:$0xff]  }
  0x12   :  { %1137 = vmatprep.subr.bf16.mxu1 %v1261_v18  ;;  %v1296_v51 = vld [vmem:[%s1640_s1 + $0x198] sm:$0xff]   ;;  %v1297_v52 = vld [vmem:[%s1640_s1 + $0x160] sm:$0xff]   ;;  %v1301_v56 = vld [vmem:[%s1640_s1 + $0x168] sm:$0xff]  }
  0x13   :  { %1110 = vmatpush3.bf16.msra.mxu0 %v1260_v17  ;;  %v1298_v53 = vld [vmem:[%s1640_s1 + $0x120] sm:$0xff]   ;;  %v1302_v57 = vld [vmem:[%s1641_s0 + $0x4c] ss:$36 sps:$4 sm:$0xff]   ;;  %v1307_v61 = vld [vmem:[%s1641_s0 + $0x54] ss:$36 sps:$4 sm:$0xff]  }
  0x14   :  { %1111 = vmatprep.subr.bf16.mxu0 %v1263_v20  ;;  %v1299_v54 = vld [vmem:[%s1640_s1 + $0x1e0] sm:$0xff]   ;;  %v1304_v58 = vld [vmem:[%s1640_s1 + $0x128] sm:$0xff]   ;;  %v1310_v63 = vld [vmem:[%s1641_s0 + $0x50] ss:$36 sps:$4 sm:$0xff]  }
  0x15   :  { %1138 = vmatpush3.bf16.msra.mxu1 %v1262_v19  ;;  %v1300_v55 = vld [vmem:[%s1640_s1 + $0x1a0] sm:$0xff]   ;;  %v1305_v59 = vld [vmem:[%s1641_s0 + $0x48] ss:$36 sps:$4 sm:$0xff]   ;;  %v1311_v0 = vld [vmem:[%s1640_s1 + $0x170] sm:$0xff]  }
  0x16   :  { %1139 = vmatprep.subr.bf16.mxu1 %v1265_v22  ;;  %v1306_v60 = vld [vmem:[%s1640_s1 + $0x1e8] sm:$0xff]   ;;  %v1312_v1 = vld [vmem:[%s1640_s1 + $0x130] sm:$0xff]   ;;  %v1315_v4 = vld [vmem:[%s1640_s1 + $0x178] sm:$0xff]  }
  0x17   :  { %1112 = vmatpush3.bf16.msra.mxu0 %v1264_v21  ;;  %v1309_v62 = vld [vmem:[%s1640_s1 + $0x1a8] sm:$0xff]   ;;  %v1313_v2 = vld [vmem:[%s1640_s1 + $0x1f0] sm:$0xff]   ;;  %v1316_v5 = vld [vmem:[%s1640_s1 + $0x138] sm:$0xff]  }
  0x18   :  { %1113 = vmatprep.subr.bf16.mxu0 %v1267_v24  ;;  %v1314_v3 = vld [vmem:[%s1640_s1 + $0x1b0] sm:$0xff]   ;;  %v1317_v6 = vld [vmem:[%s1640_s1 + $0x1f8] sm:$0xff]   ;;  %v1322_v10 = vld [vmem:[%s1640_s1 + $0x200] sm:$0xff]  }
  0x19   :  { %1140 = vmatpush3.bf16.msra.mxu1 %v1266_v23  ;;  %v1318_v7 = vld [vmem:[%s1641_s0 + $0x10] ss:$36 sps:$4 sm:$0xff]   ;;  %v1321_v9 = vld [vmem:[%s1640_s1 + $0x1b8] sm:$0xff]   ;;  %v1326_v13 = vld [vmem:[%s1640_s1 + $0x208] sm:$0xff]  }
  0x1a   :  { %1141 = vmatprep.subr.bf16.mxu1 %v1269_v26  ;;  %v1320_v8 = vld [vmem:[%s1641_s0 + $0x14] ss:$36 sps:$4 sm:$0xff]   ;;  %v1325_v12 = vld [vmem:[%s1641_s0 + $0x1c] ss:$36 sps:$4 sm:$0xff]   ;;  %v1331_v17 = vld [vmem:[%s1641_s0 + $0x64] ss:$36 sps:$4 sm:$0xff]  }
  0x1b   :  { %1114 = vmatpush3.bf16.msra.mxu0 %v1268_v25  ;;  %v1323_v11 = vld [vmem:[%s1641_s0 + $0x18] ss:$36 sps:$4 sm:$0xff]   ;;  %v1330_v16 = vld [vmem:[%s1640_s1 + $0x210] sm:$0xff]   ;;  %v1333_v18 = vld [vmem:[%s1641_s0 + $0x60] ss:$36 sps:$4 sm:$0xff]  }
  0x1c   :  { %1115 = vmatprep.subr.bf16.mxu0 %v1271_v28  ;;  %v1327_v14 = vld [vmem:[%s1641_s0 + $0x5c] ss:$36 sps:$4 sm:$0xff]   ;;  %v1336_v22 = vld [vmem:[%s1640_s1 + $0x228] sm:$0xff]   ;;  %v1337_v23 = vld [vmem:[%s1640_s1 + $0x230] sm:$0xff]  }
  0x1d   :  { %1142 = vmatpush3.bf16.msra.mxu1 %v1270_v27  ;;  %v1329_v15 = vld [vmem:[%s1641_s0 + $0x58] ss:$36 sps:$4 sm:$0xff]   ;;  %v1335_v20 = vld [vmem:[%s1640_s1 + $0x220] sm:$0xff]   ;;  %v1340_v25 = vld [vmem:[%s1641_s0 + $0x68] ss:$36 sps:$4 sm:$0xff]  }
  0x1e   :  { %1143 = vmatprep.subr.bf16.mxu1 %v1273_v30  ;;  %v1334_v19 = vld [vmem:[%s1640_s1 + $0x218] sm:$0xff]   ;;  %v1339_v21 = vld [vmem:[%s1641_s0 + $0x20] ss:$36 sps:$4 sm:$0xff]  }
  0x1f   :  { %1116 = vmatpush3.bf16.msra.mxu0 %v1272_v29  ;;  %v1338_v24 = vld [vmem:[%s1640_s1 + $0x238] sm:$0xff]   ;;  %v991_v27 = vld [vmem:[%s1642_s2] ss:$0 sm:$0xff] }
  0x20   :  { %1157 = vmatprep.subr.bf16.mxu0 %v1278_v34 }
  0x21   :  { %1144 = vmatpush3.bf16.msra.mxu1 %v1277_v33 }
  0x22   :  { %743 = vmatmul.mubr.bf16.vlgmr.msra.gmra.mrb[0].mxu0 %v1274_v31  ;;  %1185 = vmatprep.subr.bf16.mxu1 %v1283_v38 }
  0x23   :  { %1158 = vmatpush3.bf16.msra.mxu0 %v1282_v37  ;;  %750 = vmatprep.mubr.bf16.mxu0 %v1302_v57 }
  0x24   :  { %792 = vmatmul.mubr.bf16.vlgmr.msra.gmra.mrb[0].mxu1 %v1279_v35  ;;  %1159 = vmatprep.subr.bf16.mxu0 %v1285_v40 }
  0x25   :  { %1186 = vmatpush3.bf16.msra.mxu1 %v1284_v39  ;;  %799 = vmatprep.mubr.bf16.mxu1 %v1307_v61 }
  0x26   :  { %1187 = vmatprep.subr.bf16.mxu1 %v1287_v42 }
  0x27   :  { %1160 = vmatpush3.bf16.msra.mxu0 %v1286_v41 }
  0x28   :  { %1161 = vmatprep.subr.bf16.mxu0 %v1289_v44 }
  0x29   :  { %1188 = vmatpush3.bf16.msra.mxu1 %v1288_v43 }
  0x2a   :  { %1189 = vmatprep.subr.bf16.mxu1 %v1291_v46  ;;  %751 = vmatmul.mubr.bf16.gmra.mrb[4].mxu0 %v1305_v59 }
  0x2b   :  { %1162 = vmatpush3.bf16.msra.mxu0 %v1290_v45  ;;  %840 = vmatprep.mubr.bf16.mxu0 %v1320_v8 }
  0x2c   :  { %1163 = vmatprep.subr.bf16.mxu0 %v1293_v48  ;;  %800 = vmatmul.mubr.bf16.gmra.mrb[4].mxu1 %v1310_v63 }
  0x2d   :  { %1190 = vmatpush3.bf16.msra.mxu1 %v1292_v47  ;;  %889 = vmatprep.mubr.bf16.mxu1 %v1325_v12 }
  0x2e   :  { %1191 = vmatprep.subr.bf16.mxu1 %v1295_v50 }
  0x2f   :  { %1164 = vmatpush3.bf16.msra.mxu0 %v1294_v49 }
  0x30   :  { %1165 = vmatprep.subr.bf16.mxu0 %v1297_v52 }
  0x31   :  { %1192 = vmatpush3.bf16.msra.mxu1 %v1296_v51 }
  0x32   :  { %1193 = vmatprep.subr.bf16.mxu1 %v1299_v54 }
  0x33   :  { %1166 = vmatpush3.bf16.msra.mxu0 %v1298_v53 }
  0x34   :  { %1167 = vmatprep.subr.bf16.mxu0 %v1301_v56 }
  0x35   :  { %1194 = vmatpush3.bf16.msra.mxu1 %v1300_v55 }
  0x36   :  { %1195 = vmatprep.subr.bf16.mxu1 %v1306_v60 }
  0x37   :  { %1168 = vmatpush3.bf16.msra.mxu0 %v1304_v58 }
  0x38   :  { %1169 = vmatprep.subr.bf16.mxu0 %v1311_v0 }
  0x39   :  { %1196 = vmatpush3.bf16.msra.mxu1 %v1309_v62 }
  0x3a   :  { %1197 = vmatprep.subr.bf16.mxu1 %v1313_v2 }
  0x3b   :  { %1170 = vmatpush3.bf16.msra.mxu0 %v1312_v1 }
  0x3c   :  { %1171 = vmatprep.subr.bf16.mxu0 %v1315_v4 }
  0x3d   :  { %1198 = vmatpush3.bf16.msra.mxu1 %v1314_v3 }
  0x3e   :  { %1199 = vmatprep.subr.bf16.mxu1 %v1317_v6 }
  0x3f   :  { %1172 = vmatpush3.bf16.msra.mxu0 %v1316_v5 }
  0x40   :  { %1223 = vmatprep.subr.bf16.mxu0 %v1322_v10 }
  0x41   :  { %1200 = vmatpush3.bf16.msra.mxu1 %v1321_v9 }
  0x42   :  { %841 = vmatmul.mubr.bf16.vlgmr.msra.gmra.mrb[8].mxu0 %v1318_v7 }
  0x43   :  { %1224 = vmatpush3.bf16.msra.mxu0 %v1322_v10  ;;  %848 = vmatprep.mubr.bf16.mxu0 %v1327_v14 }
  0x44   :  { %890 = vmatmul.mubr.bf16.vlgmr.msra.gmra.mrb[8].mxu1 %v1323_v11  ;;  %1225 = vmatprep.subr.bf16.mxu0 %v1326_v13 }
  0x45   :  { %897 = vmatprep.mubr.bf16.mxu1 %v1331_v17 }
  0x47   :  { %1226 = vmatpush3.bf16.msra.mxu0 %v1326_v13 }
  0x48   :  { %1227 = vmatprep.subr.bf16.mxu0 %v1330_v16 }
  0x4a   :  { %849 = vmatmul.mubr.bf16.gmra.mrb[12].mxu0 %v1329_v15 }
  0x4b   :  { %1228 = vmatpush3.bf16.msra.mxu0 %v1330_v16  ;;  %1239 = vmatprep.mubr.bf16.mxu0 %v1339_v21 }
  0x4c   :  { %898 = vmatmul.mubr.bf16.gmra.mrb[12].mxu1 %v1333_v18  ;;  %1229 = vmatprep.subr.bf16.mxu0 %v1334_v19 }
  0x4f   :  { %1230 = vmatpush3.bf16.msra.mxu0 %v1334_v19 }
  0x50   :  { %1231 = vmatprep.subr.bf16.mxu0 %v1335_v20 }
  0x53   :  { %1232 = vmatpush3.bf16.msra.mxu0 %v1335_v20 }
  0x54   :  { %1233 = vmatprep.subr.bf16.mxu0 %v1336_v22 }
  0x57   :  { %1234 = vmatpush3.bf16.msra.mxu0 %v1336_v22 }
  0x58   :  { %1235 = vmatprep.subr.bf16.mxu0 %v1337_v23 }
  0x5b   :  { %1236 = vmatpush3.bf16.msra.mxu0 %v1337_v23 }
  0x5c   :  { %1237 = vmatprep.subr.bf16.mxu0 %v1338_v24 }
  0x5f   :  { %1238 = vmatpush3.bf16.msra.mxu0 %v1338_v24 }
  0x62   :  { %1240 = vmatmul.mubr.bf16.vlgmr.msra.gmra.mrb[16].mxu0 %v1340_v25 }
  0xf5   :  { %v1117_v26 = vpop.f32.mrb[0].mxu0 }
  0xf6   :  { %v1118_v28 = vpop.f32.mrb[1].mxu0 }
  0xf7   :  { %v1119_v29 = vadd.f32 %v1118_v28, %v1117_v26  ;;  %v1120_v30 = vpop.f32.mrb[2].mxu0  ;;  %v1145_v31 = vpop.f32.mrb[0].mxu1 }
  0xf8   :  { %v1121_v32 = vpop.f32.mrb[3].mxu0  ;;  %v1146_v35 = vpop.f32.mrb[1].mxu1 }
  0xf9   :  { %v745_v33 = vadd.f32 %v1119_v29, %v991_v27  ;;  %v1122_v34 = vadd.f32 %v1121_v32, %v1120_v30  ;;  %v1147_v36 = vadd.f32 %v1146_v35, %v1145_v31  ;;  %v1148_v37 = vpop.f32.mrb[2].mxu1 }
  0xfa   :  { %v1149_v39 = vpop.f32.mrb[3].mxu1 }
  0xfb   :  { %v748_v38 = vadd.f32 %v1122_v34, %v991_v27  ;;  %v794_v40 = vadd.f32 %v1147_v36, %v745_v33  ;;  %v1150_v41 = vadd.f32 %v1149_v39, %v1148_v37 }
  0xfd   :  { %v797_v42 = vadd.f32 %v1150_v41, %v748_v38  ;;  %v1123_v43 = vpop.f32.mrb[4].mxu0 }
  0xfe   :  { %v1124_v44 = vpop.f32.mrb[5].mxu0 }
  0xff   :  { %v1125_v45 = vadd.f32 %v1124_v44, %v1123_v43  ;;  %v1126_v46 = vpop.f32.mrb[6].mxu0  ;;  %v1151_v47 = vpop.f32.mrb[4].mxu1 }
 0x100   :  { %v1127_v48 = vpop.f32.mrb[7].mxu0  ;;  %v1152_v51 = vpop.f32.mrb[5].mxu1 }
 0x101   :  { %v753_v49 = vadd.f32 %v1125_v45, %v991_v27  ;;  %v1128_v50 = vadd.f32 %v1127_v48, %v1126_v46  ;;  %v1153_v52 = vadd.f32 %v1152_v51, %v1151_v47  ;;  %v1154_v53 = vpop.f32.mrb[6].mxu1 }
 0x102   :  { %v1155_v55 = vpop.f32.mrb[7].mxu1 }
 0x103   :  { %v756_v54 = vadd.f32 %v1128_v50, %v991_v27  ;;  %v802_v56 = vadd.f32 %v1153_v52, %v753_v49  ;;  %v1156_v57 = vadd.f32 %v1155_v55, %v1154_v53 }
 0x105   :  { %v805_v58 = vadd.f32 %v1156_v57, %v756_v54 }
 0x115   :  { %v1173_v59 = vpop.f32.mrb[8].mxu0 }
 0x116   :  { %v1174_v60 = vpop.f32.mrb[9].mxu0 }
 0x117   :  { %v1175_v61 = vadd.f32 %v1174_v60, %v1173_v59  ;;  %v1176_v62 = vpop.f32.mrb[10].mxu0  ;;  %v1201_v63 = vpop.f32.mrb[8].mxu1 }
 0x118   :  { %v1177_v0 = vpop.f32.mrb[11].mxu0  ;;  %v1202_v3 = vpop.f32.mrb[9].mxu1 }
 0x119   :  { %v843_v1 = vadd.f32 %v1175_v61, %v794_v40  ;;  %v1178_v2 = vadd.f32 %v1177_v0, %v1176_v62  ;;  %v1203_v4 = vadd.f32 %v1202_v3, %v1201_v63  ;;  %v1204_v5 = vpop.f32.mrb[10].mxu1 }
 0x11a   :  { %v1205_v7 = vpop.f32.mrb[11].mxu1 }
 0x11b   :  { %v846_v6 = vadd.f32 %v1178_v2, %v797_v42  ;;  %v1206_v8 = vadd.f32 %v1205_v7, %v1204_v5  ;;  %v892_v9 = vadd.f32 %v1203_v4, %v843_v1 }
 0x11d   :  { %v1179_v10 = vpop.f32.mrb[12].mxu0  ;;  %v895_v12 = vadd.f32 %v1206_v8, %v846_v6 }
 0x11e   :  { %v1180_v11 = vpop.f32.mrb[13].mxu0 }
 0x11f   :  { %v1181_v13 = vadd.f32 %v1180_v11, %v1179_v10  ;;  %v1182_v14 = vpop.f32.mrb[14].mxu0  ;;  %v1207_v15 = vpop.f32.mrb[12].mxu1 }
 0x120   :  { %v1183_v16 = vpop.f32.mrb[15].mxu0  ;;  %v1208_v19 = vpop.f32.mrb[13].mxu1 }
 0x121   :  { %v851_v17 = vadd.f32 %v1181_v13, %v802_v56  ;;  %v1184_v18 = vadd.f32 %v1183_v16, %v1182_v14  ;;  %v1209_v20 = vadd.f32 %v1208_v19, %v1207_v15  ;;  %v1210_v21 = vpop.f32.mrb[14].mxu1 }
 0x122   :  { %v1211_v23 = vpop.f32.mrb[15].mxu1 }
 0x123   :  { %v854_v22 = vadd.f32 %v1184_v18, %v805_v58  ;;  %v1212_v24 = vadd.f32 %v1211_v23, %v1210_v21  ;;  %v900_v25 = vadd.f32 %v1209_v20, %v851_v17 }
 0x125   :  { %v903_v26 = vadd.f32 %v1212_v24, %v854_v22 }
 0x135   :  { %v1241_v27 = vpop.f32.mrb[16].mxu0 }
 0x136   :  { %v949_v28 = vadd.f32 %v1241_v27, %v900_v25  ;;  %v940_v29 = vpop.f32.mrb[17].mxu0 }
 0x137   :  { %v941_v30 = vadd.f32 %v940_v29, %v892_v9  ;;  %v1242_v31 = vpop.f32.mrb[18].mxu0 }
 0x138   :  { %v961_v32 = vmul.f32 0.1, %v949_v28  ;;  %v952_v33 = vadd.f32 %v1242_v31, %v903_v26  ;;  %v943_v34 = vpop.f32.mrb[19].mxu0  ;;  %vm957_vm0 = vcmp.ge.f32.partialorder %v949_v28, 0.0 }
 0x139   :  { %v959_v35 = vmul.f32 0.1, %v941_v30  ;;  %v944_v36 = vadd.f32 %v943_v34, %v895_v12  ;;  %vm955_vm1 = vcmp.ge.f32.partialorder %v941_v30, 0.0 }
 0x13a   :  { %vm958_vm2 = vcmp.ge.f32.partialorder %v952_v33, 0.0  ;;  %v962_v37 = vmul.f32 0.1, %v952_v33  ;;  %v965_v39 = vsel %vm957_vm0, %v949_v28, %v961_v32 }
 0x13b   :  { %vm956_vm3 = vcmp.ge.f32.partialorder %v944_v36, 0.0  ;;  %v960_v38 = vmul.f32 0.1, %v944_v36  ;;  %v963_v41 = vsel %vm955_vm1, %v941_v30, %v959_v35 }
 0x13c   :  { %v966_v40 = vsel %vm958_vm2, %v952_v33, %v962_v37 }
 0x13d   :  { %v1098_v42 = vpack.c.bf16 %v966_v40, %v965_v39  ;;  %v964_v43 = vsel %vm956_vm3, %v944_v36, %v960_v38 }
 0x13e   :  { %v1093_v44 = vpack.c.bf16 %v964_v43, %v963_v41 }
 0x13f   :  { %1100 = vst [vmem:[%s1643_s3 + $0x8] sm:$0xff] %v1098_v42  }
 0x140   :  { %1094 = vst [vmem:[%s1643_s3] sm:$0xff] %v1093_v44  }

// kernel: feat_extractor.10
= control target key start
LH: loop header
LB: loop body
LE: loop exit
PB: predicated region body
PF: predicated region fallthrough
CT: control target
= control target key end

     0   :  { %vm1127_vm0 = vmmov 0   ;;  %s1385_s1 = inlined_call_operand.vmem [shape: bf16[1152,128], index: 1, kind: input, shape index: {}]   ;;  %s1386_s0 = inlined_call_operand.vmem [shape: bf16[8,1152], index: 0, kind: input, shape index: {}]   ;;  %s1387_s2 = inlined_call_operand.vmem [shape: f32[1,128], index: 2, kind: input, shape index: {}]   ;;  %s1388_s3 = inlined_call_operand.vmem [shape: bf16[8,128], index: 3, kind: output, shape index: {}]  }
   0x1   :  { %v1045_v0 = vld [vmem:[%s1385_s1 + $0x40] sm:$0xff]   ;;  %v1049_v4 = vld [vmem:[%s1385_s1 + $0x48] sm:$0xff]   ;;  %v1053_v8 = vld [vmem:[%s1385_s1 + $0x50] sm:$0xff]  }
   0x2   :  { %v1046_v1 = vld [vmem:[%s1385_s1] sm:$0xff]   ;;  %926 = vmatprep.subr.bf16.mxu0 %v1045_v0  ;;  %v1050_v5 = vld [vmem:[%s1385_s1 + $0x8] sm:$0xff]   ;;  %v1054_v9 = vld [vmem:[%s1385_s1 + $0x10] sm:$0xff]  }
   0x3   :  { %v1047_v2 = vld [vmem:[%s1385_s1 + $0xc0] sm:$0xff]   ;;  %927 = vmatpush3.bf16.msra.mxu0 %v1046_v1  ;;  %v1051_v6 = vld [vmem:[%s1385_s1 + $0xc8] sm:$0xff]   ;;  %v1055_v10 = vld [vmem:[%s1385_s1 + $0xd0] sm:$0xff]  }
   0x4   :  { %v1048_v3 = vld [vmem:[%s1385_s1 + $0x80] sm:$0xff]   ;;  %948 = vmatprep.subr.bf16.mxu1 %v1047_v2  ;;  %928 = vmatprep.subr.bf16.mxu0 %v1049_v4  ;;  %v1052_v7 = vld [vmem:[%s1385_s1 + $0x88] sm:$0xff]   ;;  %v1056_v11 = vld [vmem:[%s1385_s1 + $0x90] sm:$0xff]  }
   0x5   :  { %949 = vmatpush3.bf16.msra.mxu1 %v1048_v3  ;;  %v1057_v12 = vld [vmem:[%s1385_s1 + $0x58] sm:$0xff]   ;;  %v1061_v16 = vld [vmem:[%s1385_s1 + $0x60] sm:$0xff]   ;;  %v1065_v20 = vld [vmem:[%s1385_s1 + $0x68] sm:$0xff]  }
   0x6   :  { %950 = vmatprep.subr.bf16.mxu1 %v1051_v6  ;;  %v1058_v13 = vld [vmem:[%s1385_s1 + $0x18] sm:$0xff]   ;;  %v1062_v17 = vld [vmem:[%s1385_s1 + $0x20] sm:$0xff]   ;;  %v1066_v21 = vld [vmem:[%s1385_s1 + $0x28] sm:$0xff]  }
   0x7   :  { %929 = vmatpush3.bf16.msra.mxu0 %v1050_v5  ;;  %v1059_v14 = vld [vmem:[%s1385_s1 + $0xd8] sm:$0xff]   ;;  %v1063_v18 = vld [vmem:[%s1385_s1 + $0xe0] sm:$0xff]   ;;  %v1067_v22 = vld [vmem:[%s1385_s1 + $0xe8] sm:$0xff]  }
   0x8   :  { %930 = vmatprep.subr.bf16.mxu0 %v1053_v8  ;;  %v1060_v15 = vld [vmem:[%s1385_s1 + $0x98] sm:$0xff]   ;;  %v1064_v19 = vld [vmem:[%s1385_s1 + $0xa0] sm:$0xff]   ;;  %v1068_v23 = vld [vmem:[%s1385_s1 + $0xa8] sm:$0xff]  }
   0x9   :  { %951 = vmatpush3.bf16.msra.mxu1 %v1052_v7  ;;  %v1069_v24 = vld [vmem:[%s1385_s1 + $0x70] sm:$0xff]   ;;  %v1073_v28 = vld [vmem:[%s1385_s1 + $0x78] sm:$0xff]   ;;  %v15_v31 = vld [vmem:[%s1386_s0] sm:$0xff] }
   0xa   :  { %952 = vmatprep.subr.bf16.mxu1 %v1055_v10  ;;  %v1070_v25 = vld [vmem:[%s1385_s1 + $0x30] sm:$0xff]   ;;  %v1074_v29 = vld [vmem:[%s1385_s1 + $0x38] sm:$0xff]   ;;  %v845_v32 = vcombine.low %v15_v31, %v15_v31  ;;  %v846_v33 = vcombine.high %v15_v31, %v15_v31  ;;  %v1079_v35 = vld [vmem:[%s1385_s1 + $0x140] sm:$0xff]  }
   0xb   :  { %931 = vmatpush3.bf16.msra.mxu0 %v1054_v9  ;;  %v1071_v26 = vld [vmem:[%s1385_s1 + $0xf0] sm:$0xff]   ;;  %v1075_v30 = vld [vmem:[%s1385_s1 + $0xf8] sm:$0xff]   ;;  %v16_v36 = vld [vmem:[%s1386_s0 + $0x8] sm:$0xff]  ;;  %v1126_v9 = vmov 0.0  }
   0xc   :  { %932 = vmatprep.subr.bf16.mxu0 %v1057_v12  ;;  %v1072_v27 = vld [vmem:[%s1385_s1 + $0xb0] sm:$0xff]   ;;  %v1078_v34 = vld [vmem:[%s1385_s1 + $0xb8] sm:$0xff]   ;;  %667 = vmatprep.mubr.bf16.mxu0 %v846_v33  ;;  %v847_v37 = vcombine.low %v16_v36, %v16_v36  ;;  %v848_v38 = vcombine.high %v16_v36, %v16_v36  ;;  %v1082_v39 = vld [vmem:[%s1385_s1 + $0x100] sm:$0xff]  }
   0xd   :  { %953 = vmatpush3.bf16.msra.mxu1 %v1056_v11  ;;  %v1083_v40 = vld [vmem:[%s1385_s1 + $0x1c0] sm:$0xff]   ;;  %v1085_v42 = vld [vmem:[%s1385_s1 + $0x148] sm:$0xff]   ;;  %v1089_v46 = vld [vmem:[%s1385_s1 + $0x150] sm:$0xff]  }
   0xe   :  { %954 = vmatprep.subr.bf16.mxu1 %v1059_v14  ;;  %707 = vmatprep.mubr.bf16.mxu1 %v848_v38  ;;  %v1084_v41 = vld [vmem:[%s1385_s1 + $0x180] sm:$0xff]   ;;  %v1086_v43 = vld [vmem:[%s1385_s1 + $0x108] sm:$0xff]   ;;  %v1090_v47 = vld [vmem:[%s1385_s1 + $0x110] sm:$0xff]  }
   0xf   :  { %933 = vmatpush3.bf16.msra.mxu0 %v1058_v13  ;;  %v1087_v44 = vld [vmem:[%s1385_s1 + $0x1c8] sm:$0xff]   ;;  %v1091_v48 = vld [vmem:[%s1385_s1 + $0x1d0] sm:$0xff]   ;;  %v1093_v50 = vld [vmem:[%s1385_s1 + $0x158] sm:$0xff]  }
  0x10   :  { %934 = vmatprep.subr.bf16.mxu0 %v1061_v16  ;;  %v1088_v45 = vld [vmem:[%s1385_s1 + $0x188] sm:$0xff]   ;;  %v1092_v49 = vld [vmem:[%s1385_s1 + $0x190] sm:$0xff]   ;;  %v1094_v51 = vld [vmem:[%s1385_s1 + $0x118] sm:$0xff]  }
  0x11   :  { %955 = vmatpush3.bf16.msra.mxu1 %v1060_v15  ;;  %v1095_v52 = vld [vmem:[%s1385_s1 + $0x1d8] sm:$0xff]   ;;  %v1097_v54 = vld [vmem:[%s1385_s1 + $0x160] sm:$0xff]   ;;  %v1101_v58 = vld [vmem:[%s1385_s1 + $0x168] sm:$0xff]  }
  0x12   :  { %956 = vmatprep.subr.bf16.mxu1 %v1063_v18  ;;  %v1096_v53 = vld [vmem:[%s1385_s1 + $0x198] sm:$0xff]   ;;  %v1098_v55 = vld [vmem:[%s1385_s1 + $0x120] sm:$0xff]   ;;  %v1102_v59 = vld [vmem:[%s1385_s1 + $0x128] sm:$0xff]  }
  0x13   :  { %935 = vmatpush3.bf16.msra.mxu0 %v1062_v17  ;;  %v1099_v56 = vld [vmem:[%s1385_s1 + $0x1e0] sm:$0xff]   ;;  %v1103_v60 = vld [vmem:[%s1385_s1 + $0x1e8] sm:$0xff]   ;;  %v1105_v62 = vld [vmem:[%s1385_s1 + $0x170] sm:$0xff]  }
  0x14   :  { %936 = vmatprep.subr.bf16.mxu0 %v1065_v20  ;;  %v1100_v57 = vld [vmem:[%s1385_s1 + $0x1a0] sm:$0xff]   ;;  %v1104_v61 = vld [vmem:[%s1385_s1 + $0x1a8] sm:$0xff]   ;;  %v1106_v63 = vld [vmem:[%s1385_s1 + $0x130] sm:$0xff]  }
  0x15   :  { %957 = vmatpush3.bf16.msra.mxu1 %v1064_v19  ;;  %v1107_v0 = vld [vmem:[%s1385_s1 + $0x1f0] sm:$0xff]   ;;  %v1109_v2 = vld [vmem:[%s1385_s1 + $0x178] sm:$0xff]   ;;  %v1117_v13 = vld [vmem:[%s1385_s1 + $0x200] sm:$0xff]  }
  0x16   :  { %958 = vmatprep.subr.bf16.mxu1 %v1067_v22  ;;  %v1108_v1 = vld [vmem:[%s1385_s1 + $0x1b0] sm:$0xff]   ;;  %v1110_v3 = vld [vmem:[%s1385_s1 + $0x138] sm:$0xff]   ;;  %v1118_v14 = vld [vmem:[%s1385_s1 + $0x208] sm:$0xff]  }
  0x17   :  { %937 = vmatpush3.bf16.msra.mxu0 %v1066_v21  ;;  %v1111_v4 = vld [vmem:[%s1385_s1 + $0x1f8] sm:$0xff]   ;;  %v17_v5 = vld [vmem:[%s1386_s0 + $0x10] sm:$0xff]  ;;  %v1121_v17 = vld [vmem:[%s1385_s1 + $0x220] sm:$0xff]  }
  0x18   :  { %938 = vmatprep.subr.bf16.mxu0 %v1069_v24  ;;  %v849_v6 = vcombine.low %v17_v5, %v17_v5  ;;  %v850_v7 = vcombine.high %v17_v5, %v17_v5  ;;  %v1114_v8 = vld [vmem:[%s1385_s1 + $0x1b8] sm:$0xff]   ;;  %v1119_v15 = vld [vmem:[%s1385_s1 + $0x210] sm:$0xff]   ;;  %v1122_v18 = vld [vmem:[%s1385_s1 + $0x228] sm:$0xff]  }
  0x19   :  { %959 = vmatpush3.bf16.msra.mxu1 %v1068_v23  ;;  %v18_v10 = vld [vmem:[%s1386_s0 + $0x18] sm:$0xff]  ;;  %v1123_v19 = vld [vmem:[%s1385_s1 + $0x230] sm:$0xff]   ;;  %v1125_v21 = vld [vmem:[%s1386_s0 + $0x20] ss:$0 sps:$4 sm:$0xff]  }
  0x1a   :  { %960 = vmatprep.subr.bf16.mxu1 %v1071_v26  ;;  %v851_v11 = vcombine.low %v18_v10, %v18_v10  ;;  %v852_v12 = vcombine.high %v18_v10, %v18_v10  ;;  %v1120_v16 = vld [vmem:[%s1385_s1 + $0x218] sm:$0xff]   ;;  %v844_v23 = vld [vmem:[%s1387_s2] ss:$0 sm:$0xff] }
  0x1b   :  { %939 = vmatpush3.bf16.msra.mxu0 %v1070_v25  ;;  %v1124_v20 = vld [vmem:[%s1385_s1 + $0x238] sm:$0xff]  }
  0x1c   :  { %940 = vmatprep.subr.bf16.mxu0 %v1073_v28 }
  0x1d   :  { %961 = vmatpush3.bf16.msra.mxu1 %v1072_v27 }
  0x1e   :  { %962 = vmatprep.subr.bf16.mxu1 %v1075_v30 }
  0x1f   :  { %941 = vmatpush3.bf16.msra.mxu0 %v1074_v29 }
  0x20   :  { %970 = vmatprep.subr.bf16.mxu0 %v1079_v35 }
  0x21   :  { %963 = vmatpush3.bf16.msra.mxu1 %v1078_v34 }
  0x22   :  { %668 = vmatmul.mubr.bf16.vlgmr.msra.gmra.mrb[0].mxu0 %v845_v32  ;;  %992 = vmatprep.subr.bf16.mxu1 %v1083_v40 }
  0x23   :  { %971 = vmatpush3.bf16.msra.mxu0 %v1082_v39  ;;  %747 = vmatprep.mubr.bf16.mxu0 %v850_v7 }
  0x24   :  { %708 = vmatmul.mubr.bf16.vlgmr.msra.gmra.mrb[0].mxu1 %v847_v37  ;;  %972 = vmatprep.subr.bf16.mxu0 %v1085_v42 }
  0x25   :  { %993 = vmatpush3.bf16.msra.mxu1 %v1084_v41  ;;  %787 = vmatprep.mubr.bf16.mxu1 %v852_v12 }
  0x26   :  { %994 = vmatprep.subr.bf16.mxu1 %v1087_v44 }
  0x27   :  { %973 = vmatpush3.bf16.msra.mxu0 %v1086_v43 }
  0x28   :  { %974 = vmatprep.subr.bf16.mxu0 %v1089_v46 }
  0x29   :  { %995 = vmatpush3.bf16.msra.mxu1 %v1088_v45 }
  0x2a   :  { %996 = vmatprep.subr.bf16.mxu1 %v1091_v48 }
  0x2b   :  { %975 = vmatpush3.bf16.msra.mxu0 %v1090_v47 }
  0x2c   :  { %976 = vmatprep.subr.bf16.mxu0 %v1093_v50 }
  0x2d   :  { %997 = vmatpush3.bf16.msra.mxu1 %v1092_v49 }
  0x2e   :  { %998 = vmatprep.subr.bf16.mxu1 %v1095_v52 }
  0x2f   :  { %977 = vmatpush3.bf16.msra.mxu0 %v1094_v51 }
  0x30   :  { %978 = vmatprep.subr.bf16.mxu0 %v1097_v54 }
  0x31   :  { %999 = vmatpush3.bf16.msra.mxu1 %v1096_v53 }
  0x32   :  { %1000 = vmatprep.subr.bf16.mxu1 %v1099_v56 }
  0x33   :  { %979 = vmatpush3.bf16.msra.mxu0 %v1098_v55 }
  0x34   :  { %980 = vmatprep.subr.bf16.mxu0 %v1101_v58 }
  0x35   :  { %1001 = vmatpush3.bf16.msra.mxu1 %v1100_v57 }
  0x36   :  { %1002 = vmatprep.subr.bf16.mxu1 %v1103_v60 }
  0x37   :  { %981 = vmatpush3.bf16.msra.mxu0 %v1102_v59 }
  0x38   :  { %982 = vmatprep.subr.bf16.mxu0 %v1105_v62 }
  0x39   :  { %1003 = vmatpush3.bf16.msra.mxu1 %v1104_v61 }
  0x3a   :  { %1004 = vmatprep.subr.bf16.mxu1 %v1107_v0 }
  0x3b   :  { %983 = vmatpush3.bf16.msra.mxu0 %v1106_v63 }
  0x3c   :  { %984 = vmatprep.subr.bf16.mxu0 %v1109_v2 }
  0x3d   :  { %1005 = vmatpush3.bf16.msra.mxu1 %v1108_v1 }
  0x3e   :  { %1006 = vmatprep.subr.bf16.mxu1 %v1111_v4 }
  0x3f   :  { %985 = vmatpush3.bf16.msra.mxu0 %v1110_v3 }
  0x40   :  { %1023 = vmatprep.subr.bf16.mxu0 %v1126_v9 }
  0x41   :  { %1007 = vmatpush3.bf16.msra.mxu1 %v1114_v8 }
  0x42   :  { %748 = vmatmul.mubr.bf16.vlgmr.msra.gmra.mrb[4].mxu0 %v849_v6 }
  0x43   :  { %1024 = vmatpush3.bf16.msra.mxu0 %v1117_v13  ;;  %1039 = vmatprep.mubr.msk.bf16.mxu0 %vm1127_vm0, %v1126_v9 }
  0x44   :  { %788 = vmatmul.mubr.bf16.vlgmr.msra.gmra.mrb[4].mxu1 %v851_v11  ;;  %1025 = vmatprep.subr.bf16.mxu0 %v1126_v9 }
  0x47   :  { %1026 = vmatpush3.bf16.msra.mxu0 %v1118_v14 }
  0x48   :  { %1027 = vmatprep.subr.bf16.mxu0 %v1126_v9 }
  0x4b   :  { %1028 = vmatpush3.bf16.msra.mxu0 %v1119_v15 }
  0x4c   :  { %1029 = vmatprep.subr.bf16.mxu0 %v1126_v9 }
  0x4f   :  { %1030 = vmatpush3.bf16.msra.mxu0 %v1120_v16 }
  0x50   :  { %1031 = vmatprep.subr.bf16.mxu0 %v1126_v9 }
  0x53   :  { %1032 = vmatpush3.bf16.msra.mxu0 %v1121_v17 }
  0x54   :  { %1033 = vmatprep.subr.bf16.mxu0 %v1126_v9 }
  0x57   :  { %1034 = vmatpush3.bf16.msra.mxu0 %v1122_v18 }
  0x58   :  { %1035 = vmatprep.subr.bf16.mxu0 %v1126_v9 }
  0x5b   :  { %1036 = vmatpush3.bf16.msra.mxu0 %v1123_v19 }
  0x5c   :  { %1037 = vmatprep.subr.bf16.mxu0 %v1126_v9 }
  0x5f   :  { %1038 = vmatpush3.bf16.msra.mxu0 %v1124_v20 }
  0x62   :  { %1040 = vmatmul.mubr.bf16.vlgmr.msra.gmra.mrb[8].mxu0 %v1125_v21 }
  0xf5   :  { %v942_v22 = vpop.f32.mrb[0].mxu0 }
  0xf6   :  { %v943_v24 = vpop.f32.mrb[1].mxu0 }
  0xf7   :  { %v944_v25 = vadd.f32 %v943_v24, %v942_v22  ;;  %v945_v26 = vpop.f32.mrb[2].mxu0  ;;  %v964_v27 = vpop.f32.mrb[0].mxu1 }
  0xf8   :  { %v946_v28 = vpop.f32.mrb[3].mxu0  ;;  %v965_v29 = vpop.f32.mrb[1].mxu1 }
  0xf9   :  { %v670_v30 = vadd.f32 %v944_v25, %v844_v23  ;;  %v966_v31 = vadd.f32 %v965_v29, %v964_v27  ;;  %v967_v32 = vpop.f32.mrb[2].mxu1 }
  0xfa   :  { %v968_v33 = vpop.f32.mrb[3].mxu1 }
  0xfb   :  { %v710_v34 = vadd.f32 %v966_v31, %v670_v30 }
 0x115   :  { %v986_v35 = vpop.f32.mrb[4].mxu0 }
 0x116   :  { %v987_v36 = vpop.f32.mrb[5].mxu0 }
 0x117   :  { %v988_v37 = vadd.f32 %v987_v36, %v986_v35  ;;  %v989_v38 = vpop.f32.mrb[6].mxu0  ;;  %v1008_v39 = vpop.f32.mrb[4].mxu1 }
 0x118   :  { %v990_v40 = vpop.f32.mrb[7].mxu0  ;;  %v1009_v41 = vpop.f32.mrb[5].mxu1 }
 0x119   :  { %v750_v42 = vadd.f32 %v988_v37, %v710_v34  ;;  %v1010_v43 = vadd.f32 %v1009_v41, %v1008_v39  ;;  %v1011_v44 = vpop.f32.mrb[6].mxu1 }
 0x11a   :  { %v1012_v45 = vpop.f32.mrb[7].mxu1 }
 0x11b   :  { %v790_v46 = vadd.f32 %v1010_v43, %v750_v42 }
 0x135   :  { %v829_v47 = vpop.f32.mrb[8].mxu0 }
 0x136   :  { %v830_v48 = vadd.f32 %v829_v47, %v790_v46  ;;  %v1041_v49 = vpop.f32.mrb[9].mxu0 }
 0x137   :  { %v832_v50 = vpop.f32.mrb[10].mxu0 }
 0x138   :  { %vm835_vm1 = vcmp.ge.f32.partialorder %v830_v48, 0.0  ;;  %v836_v51 = vmul.f32 0.1, %v830_v48  ;;  %v1042_v52 = vpop.f32.mrb[11].mxu0 }
 0x13a   :  { %v837_v53 = vsel %vm835_vm1, %v830_v48, %v836_v51 }
 0x13b   :  { %v838_v54 = vpack.c.bf16 %v837_v53, %v837_v53 }
 0x13d   :  { %839 = vst [vmem:[%s1388_s3] sm:$0xf] %v838_v54 }

// kernel: feat_extractor.12
= control target key start
LH: loop header
LB: loop body
LE: loop exit
PB: predicated region body
PF: predicated region fallthrough
CT: control target
= control target key end

     0   :  { %s2035_s1 = inlined_call_operand.vmem [shape: bf16[1152,256], index: 1, kind: input, shape index: {}]   ;;  %s2036_s0 = inlined_call_operand.vmem [shape: bf16[8,1152], index: 0, kind: input, shape index: {}]   ;;  %s2037_s2 = inlined_call_operand.vmem [shape: f32[1,256], index: 2, kind: input, shape index: {}]   ;;  %s2038_s3 = inlined_call_operand.vmem [shape: bf16[8,256], index: 3, kind: output, shape index: {}]  }
   0x1   :  { %v1324_v0 = vld [vmem:[%s2035_s1 + $0x4] ss:$8 sps:$4 sm:$0xff]   ;;  %v1328_v2 = vld [vmem:[%s2035_s1] ss:$8 sps:$4 sm:$0xff]   ;;  %v1330_v4 = vld [vmem:[%s2035_s1 + $0x14] ss:$8 sps:$4 sm:$0xff]  }
   0x2   :  { %v1326_v1 = vld [vmem:[%s2035_s1 + $0x204] ss:$8 sps:$4 sm:$0xff]   ;;  %928 = vmatprep.subr.bf16.mxu1 %v1324_v0  ;;  %v1329_v3 = vld [vmem:[%s2035_s1 + $0x200] ss:$8 sps:$4 sm:$0xff]   ;;  %v1332_v5 = vld [vmem:[%s2035_s1 + $0x214] ss:$8 sps:$4 sm:$0xff]  }
   0x3   :  { %1010 = vmatprep.subr.bf16.mxu0 %v1326_v1  ;;  %929 = vmatpush1.bf16.msra.mxu1 %v1328_v2  ;;  %v1334_v6 = vld [vmem:[%s2035_s1 + $0x10] ss:$8 sps:$4 sm:$0xff]   ;;  %v1336_v8 = vld [vmem:[%s2035_s1 + $0x24] ss:$8 sps:$4 sm:$0xff]   ;;  %v1340_v10 = vld [vmem:[%s2035_s1 + $0x20] ss:$8 sps:$4 sm:$0xff]  }
   0x4   :  { %1011 = vmatpush1.bf16.msra.mxu0 %v1329_v3  ;;  %930 = vmatprep.subr.bf16.mxu1 %v1330_v4  ;;  %v1335_v7 = vld [vmem:[%s2035_s1 + $0x210] ss:$8 sps:$4 sm:$0xff]   ;;  %v1338_v9 = vld [vmem:[%s2035_s1 + $0x224] ss:$8 sps:$4 sm:$0xff]   ;;  %v1341_v11 = vld [vmem:[%s2035_s1 + $0x220] ss:$8 sps:$4 sm:$0xff]  }
   0x5   :  { %1012 = vmatprep.subr.bf16.mxu0 %v1332_v5  ;;  %v1342_v12 = vld [vmem:[%s2035_s1 + $0x34] ss:$8 sps:$4 sm:$0xff]   ;;  %v1346_v14 = vld [vmem:[%s2035_s1 + $0x30] ss:$8 sps:$4 sm:$0xff]   ;;  %v1348_v16 = vld [vmem:[%s2035_s1 + $0x44] ss:$8 sps:$4 sm:$0xff]  }
   0x6   :  { %v1344_v13 = vld [vmem:[%s2035_s1 + $0x234] ss:$8 sps:$4 sm:$0xff]   ;;  %v1347_v15 = vld [vmem:[%s2035_s1 + $0x230] ss:$8 sps:$4 sm:$0xff]   ;;  %v1350_v17 = vld [vmem:[%s2035_s1 + $0x244] ss:$8 sps:$4 sm:$0xff]  }
   0x7   :  { %931 = vmatpush1.bf16.msra.mxu1 %v1334_v6  ;;  %v1352_v18 = vld [vmem:[%s2035_s1 + $0x40] ss:$8 sps:$4 sm:$0xff]   ;;  %v1354_v20 = vld [vmem:[%s2035_s1 + $0x54] ss:$8 sps:$4 sm:$0xff]   ;;  %v1358_v22 = vld [vmem:[%s2035_s1 + $0x50] ss:$8 sps:$4 sm:$0xff]  }
   0x8   :  { %1013 = vmatpush1.bf16.msra.mxu0 %v1335_v7  ;;  %932 = vmatprep.subr.bf16.mxu1 %v1336_v8  ;;  %v1353_v19 = vld [vmem:[%s2035_s1 + $0x240] ss:$8 sps:$4 sm:$0xff]   ;;  %v1356_v21 = vld [vmem:[%s2035_s1 + $0x254] ss:$8 sps:$4 sm:$0xff]   ;;  %v1359_v23 = vld [vmem:[%s2035_s1 + $0x250] ss:$8 sps:$4 sm:$0xff]  }
   0x9   :  { %1014 = vmatprep.subr.bf16.mxu0 %v1338_v9  ;;  %v1360_v24 = vld [vmem:[%s2035_s1 + $0x64] ss:$8 sps:$4 sm:$0xff]   ;;  %v1364_v26 = vld [vmem:[%s2035_s1 + $0x60] ss:$8 sps:$4 sm:$0xff]   ;;  %v1366_v28 = vld [vmem:[%s2035_s1 + $0x74] ss:$8 sps:$4 sm:$0xff]  }
   0xa   :  { %v1362_v25 = vld [vmem:[%s2035_s1 + $0x264] ss:$8 sps:$4 sm:$0xff]   ;;  %v1365_v27 = vld [vmem:[%s2035_s1 + $0x260] ss:$8 sps:$4 sm:$0xff]   ;;  %v1368_v29 = vld [vmem:[%s2035_s1 + $0x274] ss:$8 sps:$4 sm:$0xff]  }
   0xb   :  { %933 = vmatpush1.bf16.msra.mxu1 %v1340_v10  ;;  %v1370_v30 = vld [vmem:[%s2035_s1 + $0x70] ss:$8 sps:$4 sm:$0xff]   ;;  %v1372_v32 = vld [vmem:[%s2035_s1 + $0x84] ss:$8 sps:$4 sm:$0xff]   ;;  %v1376_v34 = vld [vmem:[%s2035_s1 + $0x80] ss:$8 sps:$4 sm:$0xff]  }
   0xc   :  { %1015 = vmatpush1.bf16.msra.mxu0 %v1341_v11  ;;  %934 = vmatprep.subr.bf16.mxu1 %v1342_v12  ;;  %v1371_v31 = vld [vmem:[%s2035_s1 + $0x270] ss:$8 sps:$4 sm:$0xff]   ;;  %v1374_v33 = vld [vmem:[%s2035_s1 + $0x284] ss:$8 sps:$4 sm:$0xff]   ;;  %v1377_v35 = vld [vmem:[%s2035_s1 + $0x280] ss:$8 sps:$4 sm:$0xff]  }
   0xd   :  { %1016 = vmatprep.subr.bf16.mxu0 %v1344_v13  ;;  %v1378_v36 = vld [vmem:[%s2035_s1 + $0x94] ss:$8 sps:$4 sm:$0xff]   ;;  %v1382_v38 = vld [vmem:[%s2035_s1 + $0x90] ss:$8 sps:$4 sm:$0xff]   ;;  %v1384_v40 = vld [vmem:[%s2035_s1 + $0xa4] ss:$8 sps:$4 sm:$0xff]  }
   0xe   :  { %v1380_v37 = vld [vmem:[%s2035_s1 + $0x294] ss:$8 sps:$4 sm:$0xff]   ;;  %v1383_v39 = vld [vmem:[%s2035_s1 + $0x290] ss:$8 sps:$4 sm:$0xff]   ;;  %v1386_v41 = vld [vmem:[%s2035_s1 + $0x2a4] ss:$8 sps:$4 sm:$0xff]  }
   0xf   :  { %935 = vmatpush1.bf16.msra.mxu1 %v1346_v14  ;;  %v1388_v42 = vld [vmem:[%s2035_s1 + $0xa0] ss:$8 sps:$4 sm:$0xff]   ;;  %v1390_v44 = vld [vmem:[%s2035_s1 + $0xb4] ss:$8 sps:$4 sm:$0xff]   ;;  %v1394_v47 = vld [vmem:[%s2035_s1 + $0xb0] ss:$8 sps:$4 sm:$0xff]  }
  0x10   :  { %1017 = vmatpush1.bf16.msra.mxu0 %v1347_v15  ;;  %936 = vmatprep.subr.bf16.mxu1 %v1348_v16  ;;  %v1389_v43 = vld [vmem:[%s2035_s1 + $0x2a0] ss:$8 sps:$4 sm:$0xff]   ;;  %v1392_v45 = vld [vmem:[%s2035_s1 + $0x2b4] ss:$8 sps:$4 sm:$0xff]   ;;  %v1395_v49 = vld [vmem:[%s2035_s1 + $0x2b0] ss:$8 sps:$4 sm:$0xff]  }
  0x11   :  { %1018 = vmatprep.subr.bf16.mxu0 %v1350_v17  ;;  %v15_v46 = vld [vmem:[%s2036_s0] sm:$0xff]  ;;  %v17_v50 = vld [vmem:[%s2036_s0 + $0x10] sm:$0xff] }
  0x12   :  { %v1153_v48 = vcombine.high %v15_v46, %v15_v46  ;;  %v1396_v51 = vld [vmem:[%s2035_s1 + $0xc4] ss:$8 sps:$4 sm:$0xff]   ;;  %v1157_v53 = vcombine.high %v17_v50, %v17_v50  ;;  %v1400_v54 = vld [vmem:[%s2035_s1 + $0xc0] ss:$8 sps:$4 sm:$0xff]   ;;  %v1402_v56 = vld [vmem:[%s2035_s1 + $0xd4] ss:$8 sps:$4 sm:$0xff]   ;;  %v1152_v6 = vcombine.low %v15_v46, %v15_v46  ;;  %v1156_v7 = vcombine.low %v17_v50, %v17_v50 }
  0x13   :  { %937 = vmatpush1.bf16.msra.mxu1 %v1352_v18  ;;  %v1398_v52 = vld [vmem:[%s2035_s1 + $0x2c4] ss:$8 sps:$4 sm:$0xff]   ;;  %v1401_v55 = vld [vmem:[%s2035_s1 + $0x2c0] ss:$8 sps:$4 sm:$0xff]   ;;  %v1404_v57 = vld [vmem:[%s2035_s1 + $0x2d4] ss:$8 sps:$4 sm:$0xff]  }
  0x14   :  { %1019 = vmatpush1.bf16.msra.mxu0 %v1353_v19  ;;  %938 = vmatprep.subr.bf16.mxu1 %v1354_v20  ;;  %v1406_v58 = vld [vmem:[%s2035_s1 + $0xd0] ss:$8 sps:$4 sm:$0xff]   ;;  %v1408_v60 = vld [vmem:[%s2035_s1 + $0xe4] ss:$8 sps:$4 sm:$0xff]   ;;  %v1412_v62 = vld [vmem:[%s2035_s1 + $0xe0] ss:$8 sps:$4 sm:$0xff]  }
  0x15   :  { %1020 = vmatprep.subr.bf16.mxu0 %v1356_v21  ;;  %960 = vmatprep.mubr.bf16.mxu1 %v1153_v48  ;;  %v1407_v59 = vld [vmem:[%s2035_s1 + $0x2d0] ss:$8 sps:$4 sm:$0xff]   ;;  %v1410_v61 = vld [vmem:[%s2035_s1 + $0x2e4] ss:$8 sps:$4 sm:$0xff]   ;;  %v1413_v63 = vld [vmem:[%s2035_s1 + $0x2e0] ss:$8 sps:$4 sm:$0xff]  }
  0x16   :  { %1042 = vmatprep.mubr.bf16.mxu0 %v1157_v53  ;;  %v1414_v0 = vld [vmem:[%s2035_s1 + $0xf4] ss:$8 sps:$4 sm:$0xff]   ;;  %v1418_v2 = vld [vmem:[%s2035_s1 + $0xf0] ss:$8 sps:$4 sm:$0xff]   ;;  %v1424_v4 = vld [vmem:[%s2035_s1 + $0x104] ss:$8 sps:$4 sm:$0xff]  }
  0x17   :  { %939 = vmatpush1.bf16.msra.mxu1 %v1358_v22  ;;  %v1416_v1 = vld [vmem:[%s2035_s1 + $0x2f4] ss:$8 sps:$4 sm:$0xff]   ;;  %v1419_v3 = vld [vmem:[%s2035_s1 + $0x2f0] ss:$8 sps:$4 sm:$0xff]   ;;  %v1429_v5 = vld [vmem:[%s2035_s1 + $0x304] ss:$8 sps:$4 sm:$0xff]  }
  0x18   :  { %1021 = vmatpush1.bf16.msra.mxu0 %v1359_v23  ;;  %940 = vmatprep.subr.bf16.mxu1 %v1360_v24  ;;  %v1422_v8 = vld [vmem:[%s2035_s1 + $0x100] ss:$8 sps:$4 sm:$0xff]   ;;  %v1432_v10 = vld [vmem:[%s2035_s1 + $0x114] ss:$8 sps:$4 sm:$0xff]   ;;  %v1430_v12 = vld [vmem:[%s2035_s1 + $0x110] ss:$8 sps:$4 sm:$0xff]  }
  0x19   :  { %1022 = vmatprep.subr.bf16.mxu0 %v1362_v25  ;;  %v1427_v9 = vld [vmem:[%s2035_s1 + $0x300] ss:$8 sps:$4 sm:$0xff]   ;;  %v1435_v11 = vld [vmem:[%s2035_s1 + $0x314] ss:$8 sps:$4 sm:$0xff]   ;;  %v1433_v13 = vld [vmem:[%s2035_s1 + $0x310] ss:$8 sps:$4 sm:$0xff]  }
  0x1a   :  { %v1438_v14 = vld [vmem:[%s2035_s1 + $0x124] ss:$8 sps:$4 sm:$0xff]   ;;  %v1436_v16 = vld [vmem:[%s2035_s1 + $0x120] ss:$8 sps:$4 sm:$0xff]   ;;  %v1444_v18 = vld [vmem:[%s2035_s1 + $0x134] ss:$8 sps:$4 sm:$0xff]  }
  0x1b   :  { %941 = vmatpush1.bf16.msra.mxu1 %v1364_v26  ;;  %v1441_v15 = vld [vmem:[%s2035_s1 + $0x324] ss:$8 sps:$4 sm:$0xff]   ;;  %v1439_v17 = vld [vmem:[%s2035_s1 + $0x320] ss:$8 sps:$4 sm:$0xff]   ;;  %v1447_v19 = vld [vmem:[%s2035_s1 + $0x334] ss:$8 sps:$4 sm:$0xff]  }
  0x1c   :  { %1023 = vmatpush1.bf16.msra.mxu0 %v1365_v27  ;;  %942 = vmatprep.subr.bf16.mxu1 %v1366_v28  ;;  %v1442_v20 = vld [vmem:[%s2035_s1 + $0x130] ss:$8 sps:$4 sm:$0xff]   ;;  %v1450_v22 = vld [vmem:[%s2035_s1 + $0x144] ss:$8 sps:$4 sm:$0xff]   ;;  %v1448_v24 = vld [vmem:[%s2035_s1 + $0x140] ss:$8 sps:$4 sm:$0xff]  }
  0x1d   :  { %1024 = vmatprep.subr.bf16.mxu0 %v1368_v29  ;;  %v1445_v21 = vld [vmem:[%s2035_s1 + $0x330] ss:$8 sps:$4 sm:$0xff]   ;;  %v1453_v23 = vld [vmem:[%s2035_s1 + $0x344] ss:$8 sps:$4 sm:$0xff]   ;;  %v1451_v25 = vld [vmem:[%s2035_s1 + $0x340] ss:$8 sps:$4 sm:$0xff]  }
  0x1e   :  { %v1456_v26 = vld [vmem:[%s2035_s1 + $0x154] ss:$8 sps:$4 sm:$0xff]   ;;  %v1454_v28 = vld [vmem:[%s2035_s1 + $0x150] ss:$8 sps:$4 sm:$0xff]   ;;  %v1486_v50 = vld [vmem:[%s2035_s1 + $0x1a4] ss:$8 sps:$4 sm:$0xff]  }
  0x1f   :  { %943 = vmatpush1.bf16.msra.mxu1 %v1370_v30  ;;  %v1459_v27 = vld [vmem:[%s2035_s1 + $0x354] ss:$8 sps:$4 sm:$0xff]   ;;  %v1457_v29 = vld [vmem:[%s2035_s1 + $0x350] ss:$8 sps:$4 sm:$0xff]   ;;  %v1462_v30 = vld [vmem:[%s2035_s1 + $0x164] ss:$8 sps:$4 sm:$0xff]  }
  0x20   :  { %1025 = vmatpush1.bf16.msra.mxu0 %v1371_v31  ;;  %944 = vmatprep.subr.bf16.mxu1 %v1372_v32  ;;  %v1465_v31 = vld [vmem:[%s2035_s1 + $0x364] ss:$8 sps:$4 sm:$0xff]   ;;  %v1480_v46 = vld [vmem:[%s2035_s1 + $0x194] ss:$8 sps:$4 sm:$0xff]   ;;  %v1478_v48 = vld [vmem:[%s2035_s1 + $0x190] ss:$8 sps:$4 sm:$0xff]  }
  0x21   :  { %1026 = vmatprep.subr.bf16.mxu0 %v1374_v33  ;;  %v1849_v32 = vld [vmem:[%s2036_s0 + $0x8] sm:$0xff]  ;;  %v1854_v33 = vld [vmem:[%s2036_s0 + $0x18] sm:$0xff] }
  0x22   :  { %v1487_v53 = vld [vmem:[%s2035_s1 + $0x3a0] ss:$8 sps:$4 sm:$0xff]  }
  0x23   :  { %945 = vmatpush1.bf16.msra.mxu1 %v1376_v34  ;;  %v1460_v34 = vld [vmem:[%s2035_s1 + $0x160] ss:$8 sps:$4 sm:$0xff]  }
  0x24   :  { %1027 = vmatpush1.bf16.msra.mxu0 %v1377_v35  ;;  %946 = vmatprep.subr.bf16.mxu1 %v1378_v36  ;;  %v1463_v35 = vld [vmem:[%s2035_s1 + $0x360] ss:$8 sps:$4 sm:$0xff]   ;;  %v1155_v36 = vcombine.high %v1849_v32, %v1849_v32 }
  0x25   :  { %1028 = vmatprep.subr.bf16.mxu0 %v1380_v37  ;;  %v1159_v37 = vcombine.high %v1854_v33, %v1854_v33 }
  0x27   :  { %947 = vmatpush1.bf16.msra.mxu1 %v1382_v38  ;;  %v1468_v38 = vld [vmem:[%s2035_s1 + $0x174] ss:$8 sps:$4 sm:$0xff]  }
  0x28   :  { %1029 = vmatpush1.bf16.msra.mxu0 %v1383_v39  ;;  %948 = vmatprep.subr.bf16.mxu1 %v1384_v40  ;;  %v1471_v39 = vld [vmem:[%s2035_s1 + $0x374] ss:$8 sps:$4 sm:$0xff]   ;;  %v1466_v40 = vld [vmem:[%s2035_s1 + $0x170] ss:$8 sps:$4 sm:$0xff]  }
  0x29   :  { %1030 = vmatprep.subr.bf16.mxu0 %v1386_v41  ;;  %v1469_v41 = vld [vmem:[%s2035_s1 + $0x370] ss:$8 sps:$4 sm:$0xff]  }
  0x2b   :  { %949 = vmatpush1.bf16.msra.mxu1 %v1388_v42  ;;  %v1474_v42 = vld [vmem:[%s2035_s1 + $0x184] ss:$8 sps:$4 sm:$0xff]  }
  0x2c   :  { %1031 = vmatpush1.bf16.msra.mxu0 %v1389_v43  ;;  %950 = vmatprep.subr.bf16.mxu1 %v1390_v44  ;;  %v1477_v43 = vld [vmem:[%s2035_s1 + $0x384] ss:$8 sps:$4 sm:$0xff]   ;;  %v1472_v44 = vld [vmem:[%s2035_s1 + $0x180] ss:$8 sps:$4 sm:$0xff]  }
  0x2d   :  { %1032 = vmatprep.subr.bf16.mxu0 %v1392_v45  ;;  %v1475_v45 = vld [vmem:[%s2035_s1 + $0x380] ss:$8 sps:$4 sm:$0xff]  }
  0x2f   :  { %951 = vmatpush1.bf16.msra.mxu1 %v1394_v47  ;;  %v1483_v47 = vld [vmem:[%s2035_s1 + $0x394] ss:$8 sps:$4 sm:$0xff]  }
  0x30   :  { %1033 = vmatpush1.bf16.msra.mxu0 %v1395_v49  ;;  %952 = vmatprep.subr.bf16.mxu1 %v1396_v51  ;;  %v1481_v49 = vld [vmem:[%s2035_s1 + $0x390] ss:$8 sps:$4 sm:$0xff]   ;;  %v1489_v51 = vld [vmem:[%s2035_s1 + $0x3a4] ss:$8 sps:$4 sm:$0xff]  }
  0x31   :  { %1034 = vmatprep.subr.bf16.mxu0 %v1398_v52  ;;  %v1484_v52 = vld [vmem:[%s2035_s1 + $0x1a0] ss:$8 sps:$4 sm:$0xff]  }
  0x33   :  { %953 = vmatpush1.bf16.msra.mxu1 %v1400_v54  ;;  %v1492_v54 = vld [vmem:[%s2035_s1 + $0x1b4] ss:$8 sps:$4 sm:$0xff]  }
  0x34   :  { %1035 = vmatpush1.bf16.msra.mxu0 %v1401_v55  ;;  %954 = vmatprep.subr.bf16.mxu1 %v1402_v56  ;;  %v1495_v55 = vld [vmem:[%s2035_s1 + $0x3b4] ss:$8 sps:$4 sm:$0xff]   ;;  %v1490_v56 = vld [vmem:[%s2035_s1 + $0x1b0] ss:$8 sps:$4 sm:$0xff]  }
  0x35   :  { %1036 = vmatprep.subr.bf16.mxu0 %v1404_v57  ;;  %v1493_v57 = vld [vmem:[%s2035_s1 + $0x3b0] ss:$8 sps:$4 sm:$0xff]  }
  0x37   :  { %955 = vmatpush1.bf16.msra.mxu1 %v1406_v58  ;;  %v1498_v58 = vld [vmem:[%s2035_s1 + $0x1c4] ss:$8 sps:$4 sm:$0xff]  }
  0x38   :  { %1037 = vmatpush1.bf16.msra.mxu0 %v1407_v59  ;;  %956 = vmatprep.subr.bf16.mxu1 %v1408_v60  ;;  %v1501_v59 = vld [vmem:[%s2035_s1 + $0x3c4] ss:$8 sps:$4 sm:$0xff]   ;;  %v1496_v60 = vld [vmem:[%s2035_s1 + $0x1c0] ss:$8 sps:$4 sm:$0xff]  }
  0x39   :  { %1038 = vmatprep.subr.bf16.mxu0 %v1410_v61  ;;  %v1499_v61 = vld [vmem:[%s2035_s1 + $0x3c0] ss:$8 sps:$4 sm:$0xff]  }
  0x3b   :  { %957 = vmatpush1.bf16.msra.mxu1 %v1412_v62  ;;  %v1504_v62 = vld [vmem:[%s2035_s1 + $0x1d4] ss:$8 sps:$4 sm:$0xff]  }
  0x3c   :  { %1039 = vmatpush1.bf16.msra.mxu0 %v1413_v63  ;;  %958 = vmatprep.subr.bf16.mxu1 %v1414_v0  ;;  %v1507_v63 = vld [vmem:[%s2035_s1 + $0x3d4] ss:$8 sps:$4 sm:$0xff]   ;;  %v1502_v0 = vld [vmem:[%s2035_s1 + $0x1d0] ss:$8 sps:$4 sm:$0xff]  }
  0x3d   :  { %1040 = vmatprep.subr.bf16.mxu0 %v1416_v1  ;;  %v1505_v1 = vld [vmem:[%s2035_s1 + $0x3d0] ss:$8 sps:$4 sm:$0xff]  }
  0x3f   :  { %959 = vmatpush1.bf16.msra.mxu1 %v1418_v2  ;;  %v1510_v2 = vld [vmem:[%s2035_s1 + $0x1e4] ss:$8 sps:$4 sm:$0xff]  }
  0x40   :  { %1041 = vmatpush1.bf16.msra.mxu0 %v1419_v3  ;;  %969 = vmatprep.subr.bf16.mxu1 %v1424_v4  ;;  %v1513_v3 = vld [vmem:[%s2035_s1 + $0x3e4] ss:$8 sps:$4 sm:$0xff]   ;;  %v1508_v4 = vld [vmem:[%s2035_s1 + $0x1e0] ss:$8 sps:$4 sm:$0xff]  }
  0x41   :  { %1051 = vmatprep.subr.bf16.mxu0 %v1429_v5  ;;  %v1511_v5 = vld [vmem:[%s2035_s1 + $0x3e0] ss:$8 sps:$4 sm:$0xff]  }
  0x42   :  { %961 = vmatmul.mubr.bf16.vlgmr.msra.gmra.mrb[0].mxu1 %v1152_v6  ;;  %v1516_v6 = vld [vmem:[%s2035_s1 + $0x1f4] ss:$8 sps:$4 sm:$0xff]  }
  0x43   :  { %1043 = vmatmul.mubr.bf16.vlgmr.msra.gmra.mrb[0].mxu0 %v1156_v7  ;;  %970 = vmatpush1.bf16.msra.mxu1 %v1422_v8  ;;  %v1519_v7 = vld [vmem:[%s2035_s1 + $0x3f4] ss:$8 sps:$4 sm:$0xff]   ;;  %v1514_v8 = vld [vmem:[%s2035_s1 + $0x1f0] ss:$8 sps:$4 sm:$0xff]  }
  0x44   :  { %1052 = vmatpush1.bf16.msra.mxu0 %v1427_v9  ;;  %971 = vmatprep.subr.bf16.mxu1 %v1432_v10  ;;  %v1517_v9 = vld [vmem:[%s2035_s1 + $0x3f0] ss:$8 sps:$4 sm:$0xff]   ;;  %v1526_v10 = vld [vmem:[%s2035_s1 + $0x404] ss:$8 sps:$4 sm:$0xff]  }
  0x45   :  { %1053 = vmatprep.subr.bf16.mxu0 %v1435_v11  ;;  %1001 = vmatprep.mubr.bf16.mxu1 %v1155_v36  ;;  %v1154_v11 = vcombine.low %v1849_v32, %v1849_v32 }
  0x46   :  { %1083 = vmatprep.mubr.bf16.mxu0 %v1159_v37  ;;  %v164_v37 = vld [vmem:[%s2037_s2] sm:$0x3] }
  0x47   :  { %972 = vmatpush1.bf16.msra.mxu1 %v1430_v12  ;;  %v1158_v12 = vcombine.low %v1854_v33, %v1854_v33 }
  0x48   :  { %1054 = vmatpush1.bf16.msra.mxu0 %v1433_v13  ;;  %973 = vmatprep.subr.bf16.mxu1 %v1438_v14  ;;  %v1524_v13 = vld [vmem:[%s2035_s1 + $0x400] ss:$8 sps:$4 sm:$0xff]   ;;  %v1529_v14 = vld [vmem:[%s2035_s1 + $0x414] ss:$8 sps:$4 sm:$0xff]  }
  0x49   :  { %1055 = vmatprep.subr.bf16.mxu0 %v1441_v15  ;;  %v1527_v15 = vld [vmem:[%s2035_s1 + $0x410] ss:$8 sps:$4 sm:$0xff]  }
  0x4b   :  { %974 = vmatpush1.bf16.msra.mxu1 %v1436_v16  ;;  %v1549_v16 = vmov 0  }
  0x4c   :  { %1056 = vmatpush1.bf16.msra.mxu0 %v1439_v17  ;;  %975 = vmatprep.subr.bf16.mxu1 %v1444_v18  ;;  %v1532_v17 = vld [vmem:[%s2035_s1 + $0x424] ss:$8 sps:$4 sm:$0xff]   ;;  %v1530_v18 = vld [vmem:[%s2035_s1 + $0x420] ss:$8 sps:$4 sm:$0xff]  }
  0x4d   :  { %1057 = vmatprep.subr.bf16.mxu0 %v1447_v19  ;;  %v1535_v19 = vld [vmem:[%s2035_s1 + $0x434] ss:$8 sps:$4 sm:$0xff]  }
  0x4f   :  { %976 = vmatpush1.bf16.msra.mxu1 %v1442_v20  ;;  %v1533_v20 = vld [vmem:[%s2035_s1 + $0x430] ss:$8 sps:$4 sm:$0xff]  }
  0x50   :  { %1058 = vmatpush1.bf16.msra.mxu0 %v1445_v21  ;;  %977 = vmatprep.subr.bf16.mxu1 %v1450_v22  ;;  %v1538_v21 = vld [vmem:[%s2035_s1 + $0x444] ss:$8 sps:$4 sm:$0xff]   ;;  %v1536_v22 = vld [vmem:[%s2035_s1 + $0x440] ss:$8 sps:$4 sm:$0xff]  }
  0x51   :  { %1059 = vmatprep.subr.bf16.mxu0 %v1453_v23  ;;  %v1541_v23 = vld [vmem:[%s2035_s1 + $0x454] ss:$8 sps:$4 sm:$0xff]  }
  0x53   :  { %978 = vmatpush1.bf16.msra.mxu1 %v1448_v24  ;;  %v1539_v24 = vld [vmem:[%s2035_s1 + $0x450] ss:$8 sps:$4 sm:$0xff]  }
  0x54   :  { %1060 = vmatpush1.bf16.msra.mxu0 %v1451_v25  ;;  %979 = vmatprep.subr.bf16.mxu1 %v1456_v26  ;;  %v1544_v25 = vld [vmem:[%s2035_s1 + $0x464] ss:$8 sps:$4 sm:$0xff]   ;;  %v1542_v26 = vld [vmem:[%s2035_s1 + $0x460] ss:$8 sps:$4 sm:$0xff]  }
  0x55   :  { %1061 = vmatprep.subr.bf16.mxu0 %v1459_v27  ;;  %v1547_v27 = vld [vmem:[%s2035_s1 + $0x474] ss:$8 sps:$4 sm:$0xff]  }
  0x57   :  { %980 = vmatpush1.bf16.msra.mxu1 %v1454_v28  ;;  %v1545_v28 = vld [vmem:[%s2035_s1 + $0x470] ss:$8 sps:$4 sm:$0xff]  }
  0x58   :  { %1062 = vmatpush1.bf16.msra.mxu0 %v1457_v29  ;;  %981 = vmatprep.subr.bf16.mxu1 %v1462_v30  ;;  %v1548_v29 = vld [vmem:[%s2036_s0 + $0x20] ss:$0 sps:$4 sm:$0xff]  }
  0x59   :  { %1063 = vmatprep.subr.bf16.mxu0 %v1465_v31 }
  0x5b   :  { %982 = vmatpush1.bf16.msra.mxu1 %v1460_v34  ;;  %v166_v34 = vlaneseq }
  0x5c   :  { %1064 = vmatpush1.bf16.msra.mxu0 %v1463_v35  ;;  %983 = vmatprep.subr.bf16.mxu1 %v1468_v38 }
  0x5d   :  { %1065 = vmatprep.subr.bf16.mxu0 %v1471_v39  ;;  %v167_v35 = vshrl.u32 %v166_v34, 7 }
  0x5f   :  { %984 = vmatpush1.bf16.msra.mxu1 %v1466_v40  ;;  %v168_v36 = vsub.s32 0, %v167_v35  ;;  %v172_v38 = vsub.s32 1, %v167_v35 }
  0x60   :  { %1066 = vmatpush1.bf16.msra.mxu0 %v1469_v41  ;;  %985 = vmatprep.subr.bf16.mxu1 %v1474_v42 }
  0x61   :  { %1067 = vmatprep.subr.bf16.mxu0 %v1477_v43  ;;  %v169_v39 = vrot.slane %v164_v37, %v168_v36  ;;  %v173_v40 = vrot.slane %v164_v37, %v172_v38 }
  0x63   :  { %986 = vmatpush1.bf16.msra.mxu1 %v1472_v44 }
  0x64   :  { %1068 = vmatpush1.bf16.msra.mxu0 %v1475_v45  ;;  %987 = vmatprep.subr.bf16.mxu1 %v1480_v46 }
  0x65   :  { %1069 = vmatprep.subr.bf16.mxu0 %v1483_v47 }
  0x67   :  { %988 = vmatpush1.bf16.msra.mxu1 %v1478_v48 }
  0x68   :  { %1070 = vmatpush1.bf16.msra.mxu0 %v1481_v49  ;;  %989 = vmatprep.subr.bf16.mxu1 %v1486_v50 }
  0x69   :  { %1071 = vmatprep.subr.bf16.mxu0 %v1489_v51 }
  0x6b   :  { %990 = vmatpush1.bf16.msra.mxu1 %v1484_v52 }
  0x6c   :  { %1072 = vmatpush1.bf16.msra.mxu0 %v1487_v53  ;;  %991 = vmatprep.subr.bf16.mxu1 %v1492_v54 }
  0x6d   :  { %1073 = vmatprep.subr.bf16.mxu0 %v1495_v55 }
  0x6f   :  { %992 = vmatpush1.bf16.msra.mxu1 %v1490_v56 }
  0x70   :  { %1074 = vmatpush1.bf16.msra.mxu0 %v1493_v57  ;;  %993 = vmatprep.subr.bf16.mxu1 %v1498_v58 }
  0x71   :  { %1075 = vmatprep.subr.bf16.mxu0 %v1501_v59 }
  0x73   :  { %994 = vmatpush1.bf16.msra.mxu1 %v1496_v60 }
  0x74   :  { %1076 = vmatpush1.bf16.msra.mxu0 %v1499_v61  ;;  %995 = vmatprep.subr.bf16.mxu1 %v1504_v62 }
  0x75   :  { %1077 = vmatprep.subr.bf16.mxu0 %v1507_v63 }
  0x77   :  { %996 = vmatpush1.bf16.msra.mxu1 %v1502_v0 }
  0x78   :  { %1078 = vmatpush1.bf16.msra.mxu0 %v1505_v1  ;;  %997 = vmatprep.subr.bf16.mxu1 %v1510_v2 }
  0x79   :  { %1079 = vmatprep.subr.bf16.mxu0 %v1513_v3 }
  0x7b   :  { %998 = vmatpush1.bf16.msra.mxu1 %v1508_v4 }
  0x7c   :  { %1080 = vmatpush1.bf16.msra.mxu0 %v1511_v5  ;;  %999 = vmatprep.subr.bf16.mxu1 %v1516_v6 }
  0x7d   :  { %1081 = vmatprep.subr.bf16.mxu0 %v1519_v7 }
  0x7f   :  { %1000 = vmatpush1.bf16.msra.mxu1 %v1514_v8 }
  0x80   :  { %1082 = vmatpush1.bf16.msra.mxu0 %v1517_v9 }
  0x81   :  { %1092 = vmatprep.subr.bf16.mxu0 %v1526_v10 }
  0x82   :  { %1002 = vmatmul.mubr.bf16.vlgmr.msra.gmra.mrb[0].mxu1 %v1154_v11 }
  0x83   :  { %1084 = vmatmul.mubr.bf16.vlgmr.msra.gmra.mrb[0].mxu0 %v1158_v12 }
  0x84   :  { %1093 = vmatpush1.bf16.msra.mxu0 %v1524_v13  ;;  %1124 = vmatprep.mubr.bf16.mxu0 %v1549_v16 }
  0x85   :  { %1094 = vmatprep.subr.bf16.mxu0 %v1529_v14 }
  0x88   :  { %1095 = vmatpush1.bf16.msra.mxu0 %v1527_v15 }
  0x89   :  { %1096 = vmatprep.subr.bf16.mxu0 %v1532_v17 }
  0x8c   :  { %1097 = vmatpush1.bf16.msra.mxu0 %v1530_v18 }
  0x8d   :  { %1098 = vmatprep.subr.bf16.mxu0 %v1535_v19 }
  0x90   :  { %1099 = vmatpush1.bf16.msra.mxu0 %v1533_v20 }
  0x91   :  { %1100 = vmatprep.subr.bf16.mxu0 %v1538_v21 }
  0x94   :  { %1101 = vmatpush1.bf16.msra.mxu0 %v1536_v22 }
  0x95   :  { %1102 = vmatprep.subr.bf16.mxu0 %v1541_v23 }
  0x98   :  { %1103 = vmatpush1.bf16.msra.mxu0 %v1539_v24 }
  0x99   :  { %1104 = vmatprep.subr.bf16.mxu0 %v1544_v25 }
  0x9c   :  { %1105 = vmatpush1.bf16.msra.mxu0 %v1542_v26 }
  0x9d   :  { %1106 = vmatprep.subr.bf16.mxu0 %v1547_v27 }
  0xa0   :  { %1107 = vmatpush1.bf16.msra.mxu0 %v1545_v28 }
  0xa3   :  { %1125 = vmatmul.mubr.bf16.vlgmr.msra.gmra.mrb[0].mxu0 %v1548_v29 }
 0x155   :  { %v1003_v30 = vpop.f32.mrb[0].mxu1 }
 0x156   :  { %v1005_v31 = vpop.f32.mrb[1].mxu1  ;;  %v1307_v41 = vadd.f32 %v1003_v30, %v169_v39 }
 0x157   :  { %v1007_v32 = vpop.f32.mrb[2].mxu1  ;;  %v1309_v42 = vadd.f32 %v1005_v31, %v173_v40 }
 0x158   :  { %v1008_v33 = vpop.f32.mrb[3].mxu1 }
 0x176   :  { %v1126_v43 = vpop.f32.mrb[0].mxu0 }
 0x177   :  { %v1308_v44 = vadd.f32 %v1307_v41, %v1126_v43  ;;  %v1128_v45 = vpop.f32.mrb[1].mxu0 }
 0x178   :  { %v1310_v46 = vadd.f32 %v1309_v42, %v1128_v45  ;;  %v1130_v47 = vpop.f32.mrb[2].mxu0 }
 0x179   :  { %vm1133_vm0 = vcmp.ge.f32.partialorder %v1308_v44, 0.0  ;;  %v1135_v48 = vmul.f32 0.1, %v1308_v44  ;;  %v1131_v49 = vpop.f32.mrb[3].mxu0 }
 0x17a   :  { %vm1134_vm1 = vcmp.ge.f32.partialorder %v1310_v46, 0.0  ;;  %v1136_v50 = vmul.f32 0.1, %v1310_v46 }
 0x17b   :  { %v1137_v51 = vsel %vm1133_vm0, %v1308_v44, %v1135_v48 }
 0x17c   :  { %v1138_v52 = vsel %vm1134_vm1, %v1310_v46, %v1136_v50 }
 0x17d   :  { %v1306_v53 = vpack.c.bf16 %v1138_v52, %v1137_v51 }
 0x17f   :  { %1147 = vst [vmem:[%s2038_s3] sm:$0xff] %v1306_v53 }

// kernel: feat_extractor.13
= control target key start
LH: loop header
LB: loop body
LE: loop exit
PB: predicated region body
PF: predicated region fallthrough
CT: control target
= control target key end

     0   :  { %s3963_s1 = inlined_call_operand.vmem [shape: bf16[2304,256], index: 1, kind: input, shape index: {}]   ;;  %s3964_s0 = inlined_call_operand.vmem [shape: bf16[8,2304], index: 0, kind: input, shape index: {}]   ;;  %s3965_s2 = inlined_call_operand.vmem [shape: f32[1,256], index: 2, kind: input, shape index: {}]   ;;  %s3966_s3 = inlined_call_operand.vmem [shape: bf16[8,256], index: 3, kind: output, shape index: {}]  }
   0x1   :  { %v2554_v0 = vld [vmem:[%s3963_s1 + $0x4] ss:$8 sps:$4 sm:$0xff]   ;;  %v2558_v2 = vld [vmem:[%s3963_s1] ss:$8 sps:$4 sm:$0xff]   ;;  %v2560_v4 = vld [vmem:[%s3963_s1 + $0x14] ss:$8 sps:$4 sm:$0xff]  }
   0x2   :  { %v2556_v1 = vld [vmem:[%s3963_s1 + $0x404] ss:$8 sps:$4 sm:$0xff]   ;;  %1826 = vmatprep.subr.bf16.mxu1 %v2554_v0  ;;  %v2559_v3 = vld [vmem:[%s3963_s1 + $0x400] ss:$8 sps:$4 sm:$0xff]   ;;  %v2562_v5 = vld [vmem:[%s3963_s1 + $0x414] ss:$8 sps:$4 sm:$0xff]  }
   0x3   :  { %1990 = vmatprep.subr.bf16.mxu0 %v2556_v1  ;;  %1827 = vmatpush1.bf16.msra.mxu1 %v2558_v2  ;;  %v2564_v6 = vld [vmem:[%s3963_s1 + $0x10] ss:$8 sps:$4 sm:$0xff]   ;;  %v2566_v8 = vld [vmem:[%s3963_s1 + $0x24] ss:$8 sps:$4 sm:$0xff]   ;;  %v2570_v10 = vld [vmem:[%s3963_s1 + $0x20] ss:$8 sps:$4 sm:$0xff]  }
   0x4   :  { %1991 = vmatpush1.bf16.msra.mxu0 %v2559_v3  ;;  %1828 = vmatprep.subr.bf16.mxu1 %v2560_v4  ;;  %v2565_v7 = vld [vmem:[%s3963_s1 + $0x410] ss:$8 sps:$4 sm:$0xff]   ;;  %v2568_v9 = vld [vmem:[%s3963_s1 + $0x424] ss:$8 sps:$4 sm:$0xff]   ;;  %v2571_v11 = vld [vmem:[%s3963_s1 + $0x420] ss:$8 sps:$4 sm:$0xff]  }
   0x5   :  { %1992 = vmatprep.subr.bf16.mxu0 %v2562_v5  ;;  %v2572_v12 = vld [vmem:[%s3963_s1 + $0x34] ss:$8 sps:$4 sm:$0xff]   ;;  %v2576_v14 = vld [vmem:[%s3963_s1 + $0x30] ss:$8 sps:$4 sm:$0xff]   ;;  %v2578_v16 = vld [vmem:[%s3963_s1 + $0x44] ss:$8 sps:$4 sm:$0xff]  }
   0x6   :  { %v2574_v13 = vld [vmem:[%s3963_s1 + $0x434] ss:$8 sps:$4 sm:$0xff]   ;;  %v2577_v15 = vld [vmem:[%s3963_s1 + $0x430] ss:$8 sps:$4 sm:$0xff]   ;;  %v2580_v17 = vld [vmem:[%s3963_s1 + $0x444] ss:$8 sps:$4 sm:$0xff]  }
   0x7   :  { %1829 = vmatpush1.bf16.msra.mxu1 %v2564_v6  ;;  %v2582_v18 = vld [vmem:[%s3963_s1 + $0x40] ss:$8 sps:$4 sm:$0xff]   ;;  %v2584_v20 = vld [vmem:[%s3963_s1 + $0x54] ss:$8 sps:$4 sm:$0xff]   ;;  %v2588_v22 = vld [vmem:[%s3963_s1 + $0x50] ss:$8 sps:$4 sm:$0xff]  }
   0x8   :  { %1993 = vmatpush1.bf16.msra.mxu0 %v2565_v7  ;;  %1830 = vmatprep.subr.bf16.mxu1 %v2566_v8  ;;  %v2583_v19 = vld [vmem:[%s3963_s1 + $0x440] ss:$8 sps:$4 sm:$0xff]   ;;  %v2586_v21 = vld [vmem:[%s3963_s1 + $0x454] ss:$8 sps:$4 sm:$0xff]   ;;  %v2589_v23 = vld [vmem:[%s3963_s1 + $0x450] ss:$8 sps:$4 sm:$0xff]  }
   0x9   :  { %1994 = vmatprep.subr.bf16.mxu0 %v2568_v9  ;;  %v2590_v24 = vld [vmem:[%s3963_s1 + $0x64] ss:$8 sps:$4 sm:$0xff]   ;;  %v2594_v26 = vld [vmem:[%s3963_s1 + $0x60] ss:$8 sps:$4 sm:$0xff]   ;;  %v2596_v28 = vld [vmem:[%s3963_s1 + $0x74] ss:$8 sps:$4 sm:$0xff]  }
   0xa   :  { %v2592_v25 = vld [vmem:[%s3963_s1 + $0x464] ss:$8 sps:$4 sm:$0xff]   ;;  %v2595_v27 = vld [vmem:[%s3963_s1 + $0x460] ss:$8 sps:$4 sm:$0xff]   ;;  %v2598_v29 = vld [vmem:[%s3963_s1 + $0x474] ss:$8 sps:$4 sm:$0xff]  }
   0xb   :  { %1831 = vmatpush1.bf16.msra.mxu1 %v2570_v10  ;;  %v2600_v30 = vld [vmem:[%s3963_s1 + $0x70] ss:$8 sps:$4 sm:$0xff]   ;;  %v2602_v32 = vld [vmem:[%s3963_s1 + $0x84] ss:$8 sps:$4 sm:$0xff]   ;;  %v2606_v34 = vld [vmem:[%s3963_s1 + $0x80] ss:$8 sps:$4 sm:$0xff]  }
   0xc   :  { %1995 = vmatpush1.bf16.msra.mxu0 %v2571_v11  ;;  %1832 = vmatprep.subr.bf16.mxu1 %v2572_v12  ;;  %v2601_v31 = vld [vmem:[%s3963_s1 + $0x470] ss:$8 sps:$4 sm:$0xff]   ;;  %v2604_v33 = vld [vmem:[%s3963_s1 + $0x484] ss:$8 sps:$4 sm:$0xff]   ;;  %v2607_v35 = vld [vmem:[%s3963_s1 + $0x480] ss:$8 sps:$4 sm:$0xff]  }
   0xd   :  { %1996 = vmatprep.subr.bf16.mxu0 %v2574_v13  ;;  %v2608_v36 = vld [vmem:[%s3963_s1 + $0x94] ss:$8 sps:$4 sm:$0xff]   ;;  %v2612_v38 = vld [vmem:[%s3963_s1 + $0x90] ss:$8 sps:$4 sm:$0xff]   ;;  %v2614_v40 = vld [vmem:[%s3963_s1 + $0xa4] ss:$8 sps:$4 sm:$0xff]  }
   0xe   :  { %v2610_v37 = vld [vmem:[%s3963_s1 + $0x494] ss:$8 sps:$4 sm:$0xff]   ;;  %v2613_v39 = vld [vmem:[%s3963_s1 + $0x490] ss:$8 sps:$4 sm:$0xff]   ;;  %v2616_v41 = vld [vmem:[%s3963_s1 + $0x4a4] ss:$8 sps:$4 sm:$0xff]  }
   0xf   :  { %1833 = vmatpush1.bf16.msra.mxu1 %v2576_v14  ;;  %v2618_v42 = vld [vmem:[%s3963_s1 + $0xa0] ss:$8 sps:$4 sm:$0xff]   ;;  %v2620_v44 = vld [vmem:[%s3963_s1 + $0xb4] ss:$8 sps:$4 sm:$0xff]   ;;  %v2624_v47 = vld [vmem:[%s3963_s1 + $0xb0] ss:$8 sps:$4 sm:$0xff]  }
  0x10   :  { %1997 = vmatpush1.bf16.msra.mxu0 %v2577_v15  ;;  %1834 = vmatprep.subr.bf16.mxu1 %v2578_v16  ;;  %v2619_v43 = vld [vmem:[%s3963_s1 + $0x4a0] ss:$8 sps:$4 sm:$0xff]   ;;  %v2622_v45 = vld [vmem:[%s3963_s1 + $0x4b4] ss:$8 sps:$4 sm:$0xff]   ;;  %v2625_v49 = vld [vmem:[%s3963_s1 + $0x4b0] ss:$8 sps:$4 sm:$0xff]  }
  0x11   :  { %1998 = vmatprep.subr.bf16.mxu0 %v2580_v17  ;;  %v14_v46 = vld [vmem:[%s3964_s0] sm:$0xff]  ;;  %v2632_v56 = vld [vmem:[%s3963_s1 + $0xd4] ss:$8 sps:$4 sm:$0xff]   ;;  %v2636_v58 = vld [vmem:[%s3963_s1 + $0xd0] ss:$8 sps:$4 sm:$0xff]  }
  0x12   :  { %v2215_v48 = vcombine.high %v14_v46, %v14_v46  ;;  %v18_v50 = vld [vmem:[%s3964_s0 + $0x20] sm:$0xff]  ;;  %v2634_v57 = vld [vmem:[%s3963_s1 + $0x4d4] ss:$8 sps:$4 sm:$0xff]   ;;  %v2637_v59 = vld [vmem:[%s3963_s1 + $0x4d0] ss:$8 sps:$4 sm:$0xff]   ;;  %v2214_v6 = vcombine.low %v14_v46, %v14_v46 }
  0x13   :  { %1835 = vmatpush1.bf16.msra.mxu1 %v2582_v18  ;;  %v2626_v51 = vld [vmem:[%s3963_s1 + $0xc4] ss:$8 sps:$4 sm:$0xff]   ;;  %v2223_v53 = vcombine.high %v18_v50, %v18_v50  ;;  %v2630_v54 = vld [vmem:[%s3963_s1 + $0xc0] ss:$8 sps:$4 sm:$0xff]   ;;  %v2644_v0 = vld [vmem:[%s3963_s1 + $0xf4] ss:$8 sps:$4 sm:$0xff]   ;;  %v2222_v7 = vcombine.low %v18_v50, %v18_v50 }
  0x14   :  { %1999 = vmatpush1.bf16.msra.mxu0 %v2583_v19  ;;  %1836 = vmatprep.subr.bf16.mxu1 %v2584_v20  ;;  %v2628_v52 = vld [vmem:[%s3963_s1 + $0x4c4] ss:$8 sps:$4 sm:$0xff]   ;;  %v2631_v55 = vld [vmem:[%s3963_s1 + $0x4c0] ss:$8 sps:$4 sm:$0xff]   ;;  %v2646_v1 = vld [vmem:[%s3963_s1 + $0x4f4] ss:$8 sps:$4 sm:$0xff]  }
  0x15   :  { %2000 = vmatprep.subr.bf16.mxu0 %v2586_v21  ;;  %1858 = vmatprep.mubr.bf16.mxu1 %v2215_v48  ;;  %v2638_v60 = vld [vmem:[%s3963_s1 + $0xe4] ss:$8 sps:$4 sm:$0xff]   ;;  %v2642_v62 = vld [vmem:[%s3963_s1 + $0xe0] ss:$8 sps:$4 sm:$0xff]   ;;  %v2648_v2 = vld [vmem:[%s3963_s1 + $0xf0] ss:$8 sps:$4 sm:$0xff]  }
  0x16   :  { %2022 = vmatprep.mubr.bf16.mxu0 %v2223_v53  ;;  %v2640_v61 = vld [vmem:[%s3963_s1 + $0x4e4] ss:$8 sps:$4 sm:$0xff]   ;;  %v2643_v63 = vld [vmem:[%s3963_s1 + $0x4e0] ss:$8 sps:$4 sm:$0xff]   ;;  %v2649_v3 = vld [vmem:[%s3963_s1 + $0x4f0] ss:$8 sps:$4 sm:$0xff]  }
  0x17   :  { %1837 = vmatpush1.bf16.msra.mxu1 %v2588_v22  ;;  %v2654_v4 = vld [vmem:[%s3963_s1 + $0x104] ss:$8 sps:$4 sm:$0xff]   ;;  %v2652_v8 = vld [vmem:[%s3963_s1 + $0x100] ss:$8 sps:$4 sm:$0xff]   ;;  %v2662_v10 = vld [vmem:[%s3963_s1 + $0x114] ss:$8 sps:$4 sm:$0xff]  }
  0x18   :  { %2001 = vmatpush1.bf16.msra.mxu0 %v2589_v23  ;;  %1838 = vmatprep.subr.bf16.mxu1 %v2590_v24  ;;  %v2659_v5 = vld [vmem:[%s3963_s1 + $0x504] ss:$8 sps:$4 sm:$0xff]   ;;  %v2657_v9 = vld [vmem:[%s3963_s1 + $0x500] ss:$8 sps:$4 sm:$0xff]   ;;  %v2665_v11 = vld [vmem:[%s3963_s1 + $0x514] ss:$8 sps:$4 sm:$0xff]  }
  0x19   :  { %2002 = vmatprep.subr.bf16.mxu0 %v2592_v25  ;;  %v2660_v12 = vld [vmem:[%s3963_s1 + $0x110] ss:$8 sps:$4 sm:$0xff]   ;;  %v2668_v14 = vld [vmem:[%s3963_s1 + $0x124] ss:$8 sps:$4 sm:$0xff]   ;;  %v2666_v16 = vld [vmem:[%s3963_s1 + $0x120] ss:$8 sps:$4 sm:$0xff]  }
  0x1a   :  { %v2663_v13 = vld [vmem:[%s3963_s1 + $0x510] ss:$8 sps:$4 sm:$0xff]   ;;  %v2671_v15 = vld [vmem:[%s3963_s1 + $0x524] ss:$8 sps:$4 sm:$0xff]   ;;  %v2669_v17 = vld [vmem:[%s3963_s1 + $0x520] ss:$8 sps:$4 sm:$0xff]  }
  0x1b   :  { %1839 = vmatpush1.bf16.msra.mxu1 %v2594_v26  ;;  %v2674_v18 = vld [vmem:[%s3963_s1 + $0x134] ss:$8 sps:$4 sm:$0xff]   ;;  %v2672_v20 = vld [vmem:[%s3963_s1 + $0x130] ss:$8 sps:$4 sm:$0xff]   ;;  %v2680_v22 = vld [vmem:[%s3963_s1 + $0x144] ss:$8 sps:$4 sm:$0xff]  }
  0x1c   :  { %2003 = vmatpush1.bf16.msra.mxu0 %v2595_v27  ;;  %1840 = vmatprep.subr.bf16.mxu1 %v2596_v28  ;;  %v2677_v19 = vld [vmem:[%s3963_s1 + $0x534] ss:$8 sps:$4 sm:$0xff]   ;;  %v2675_v21 = vld [vmem:[%s3963_s1 + $0x530] ss:$8 sps:$4 sm:$0xff]   ;;  %v2683_v23 = vld [vmem:[%s3963_s1 + $0x544] ss:$8 sps:$4 sm:$0xff]  }
  0x1d   :  { %2004 = vmatprep.subr.bf16.mxu0 %v2598_v29  ;;  %v2678_v24 = vld [vmem:[%s3963_s1 + $0x140] ss:$8 sps:$4 sm:$0xff]   ;;  %v2686_v26 = vld [vmem:[%s3963_s1 + $0x154] ss:$8 sps:$4 sm:$0xff]   ;;  %v2684_v28 = vld [vmem:[%s3963_s1 + $0x150] ss:$8 sps:$4 sm:$0xff]  }
  0x1e   :  { %v2681_v25 = vld [vmem:[%s3963_s1 + $0x540] ss:$8 sps:$4 sm:$0xff]   ;;  %v2689_v27 = vld [vmem:[%s3963_s1 + $0x554] ss:$8 sps:$4 sm:$0xff]   ;;  %v2687_v29 = vld [vmem:[%s3963_s1 + $0x550] ss:$8 sps:$4 sm:$0xff]  }
  0x1f   :  { %1841 = vmatpush1.bf16.msra.mxu1 %v2600_v30  ;;  %v2692_v30 = vld [vmem:[%s3963_s1 + $0x164] ss:$8 sps:$4 sm:$0xff]   ;;  %v2710_v46 = vld [vmem:[%s3963_s1 + $0x194] ss:$8 sps:$4 sm:$0xff]   ;;  %v2708_v48 = vld [vmem:[%s3963_s1 + $0x190] ss:$8 sps:$4 sm:$0xff]  }
  0x20   :  { %2005 = vmatpush1.bf16.msra.mxu0 %v2601_v31  ;;  %1842 = vmatprep.subr.bf16.mxu1 %v2602_v32  ;;  %v2695_v31 = vld [vmem:[%s3963_s1 + $0x564] ss:$8 sps:$4 sm:$0xff]   ;;  %v2717_v53 = vld [vmem:[%s3963_s1 + $0x5a0] ss:$8 sps:$4 sm:$0xff]  }
  0x21   :  { %2006 = vmatprep.subr.bf16.mxu0 %v2604_v33  ;;  %v3303_v32 = vld [vmem:[%s3964_s0 + $0x8] sm:$0xff] }
  0x22   :  { %v2690_v33 = vld [vmem:[%s3963_s1 + $0x160] ss:$8 sps:$4 sm:$0xff]   ;;  %v2716_v50 = vld [vmem:[%s3963_s1 + $0x1a4] ss:$8 sps:$4 sm:$0xff]  }
  0x23   :  { %1843 = vmatpush1.bf16.msra.mxu1 %v2606_v34  ;;  %v2693_v34 = vld [vmem:[%s3963_s1 + $0x560] ss:$8 sps:$4 sm:$0xff]  }
  0x24   :  { %2007 = vmatpush1.bf16.msra.mxu0 %v2607_v35  ;;  %1844 = vmatprep.subr.bf16.mxu1 %v2608_v36  ;;  %v2217_v35 = vcombine.high %v3303_v32, %v3303_v32  ;;  %v3316_v36 = vld [vmem:[%s3964_s0 + $0x28] sm:$0xff] }
  0x25   :  { %2008 = vmatprep.subr.bf16.mxu0 %v2610_v37  ;;  %v2698_v37 = vld [vmem:[%s3963_s1 + $0x174] ss:$8 sps:$4 sm:$0xff]  }
  0x27   :  { %1845 = vmatpush1.bf16.msra.mxu1 %v2612_v38  ;;  %v2225_v38 = vcombine.high %v3316_v36, %v3316_v36 }
  0x28   :  { %2009 = vmatpush1.bf16.msra.mxu0 %v2613_v39  ;;  %1846 = vmatprep.subr.bf16.mxu1 %v2614_v40  ;;  %v2701_v39 = vld [vmem:[%s3963_s1 + $0x574] ss:$8 sps:$4 sm:$0xff]   ;;  %v2696_v40 = vld [vmem:[%s3963_s1 + $0x170] ss:$8 sps:$4 sm:$0xff]  }
  0x29   :  { %2010 = vmatprep.subr.bf16.mxu0 %v2616_v41  ;;  %v2699_v41 = vld [vmem:[%s3963_s1 + $0x570] ss:$8 sps:$4 sm:$0xff]  }
  0x2b   :  { %1847 = vmatpush1.bf16.msra.mxu1 %v2618_v42  ;;  %v2704_v42 = vld [vmem:[%s3963_s1 + $0x184] ss:$8 sps:$4 sm:$0xff]  }
  0x2c   :  { %2011 = vmatpush1.bf16.msra.mxu0 %v2619_v43  ;;  %1848 = vmatprep.subr.bf16.mxu1 %v2620_v44  ;;  %v2707_v43 = vld [vmem:[%s3963_s1 + $0x584] ss:$8 sps:$4 sm:$0xff]   ;;  %v2702_v44 = vld [vmem:[%s3963_s1 + $0x180] ss:$8 sps:$4 sm:$0xff]  }
  0x2d   :  { %2012 = vmatprep.subr.bf16.mxu0 %v2622_v45  ;;  %v2705_v45 = vld [vmem:[%s3963_s1 + $0x580] ss:$8 sps:$4 sm:$0xff]  }
  0x2f   :  { %1849 = vmatpush1.bf16.msra.mxu1 %v2624_v47  ;;  %v2713_v47 = vld [vmem:[%s3963_s1 + $0x594] ss:$8 sps:$4 sm:$0xff]  }
  0x30   :  { %2013 = vmatpush1.bf16.msra.mxu0 %v2625_v49  ;;  %1850 = vmatprep.subr.bf16.mxu1 %v2626_v51  ;;  %v2711_v49 = vld [vmem:[%s3963_s1 + $0x590] ss:$8 sps:$4 sm:$0xff]   ;;  %v2719_v51 = vld [vmem:[%s3963_s1 + $0x5a4] ss:$8 sps:$4 sm:$0xff]  }
  0x31   :  { %2014 = vmatprep.subr.bf16.mxu0 %v2628_v52  ;;  %v2714_v52 = vld [vmem:[%s3963_s1 + $0x1a0] ss:$8 sps:$4 sm:$0xff]  }
  0x33   :  { %1851 = vmatpush1.bf16.msra.mxu1 %v2630_v54  ;;  %v2722_v54 = vld [vmem:[%s3963_s1 + $0x1b4] ss:$8 sps:$4 sm:$0xff]  }
  0x34   :  { %2015 = vmatpush1.bf16.msra.mxu0 %v2631_v55  ;;  %1852 = vmatprep.subr.bf16.mxu1 %v2632_v56  ;;  %v2725_v55 = vld [vmem:[%s3963_s1 + $0x5b4] ss:$8 sps:$4 sm:$0xff]   ;;  %v2720_v56 = vld [vmem:[%s3963_s1 + $0x1b0] ss:$8 sps:$4 sm:$0xff]  }
  0x35   :  { %2016 = vmatprep.subr.bf16.mxu0 %v2634_v57  ;;  %v2723_v57 = vld [vmem:[%s3963_s1 + $0x5b0] ss:$8 sps:$4 sm:$0xff]  }
  0x37   :  { %1853 = vmatpush1.bf16.msra.mxu1 %v2636_v58  ;;  %v2728_v58 = vld [vmem:[%s3963_s1 + $0x1c4] ss:$8 sps:$4 sm:$0xff]  }
  0x38   :  { %2017 = vmatpush1.bf16.msra.mxu0 %v2637_v59  ;;  %1854 = vmatprep.subr.bf16.mxu1 %v2638_v60  ;;  %v2731_v59 = vld [vmem:[%s3963_s1 + $0x5c4] ss:$8 sps:$4 sm:$0xff]   ;;  %v2726_v60 = vld [vmem:[%s3963_s1 + $0x1c0] ss:$8 sps:$4 sm:$0xff]  }
  0x39   :  { %2018 = vmatprep.subr.bf16.mxu0 %v2640_v61  ;;  %v2729_v61 = vld [vmem:[%s3963_s1 + $0x5c0] ss:$8 sps:$4 sm:$0xff]  }
  0x3b   :  { %1855 = vmatpush1.bf16.msra.mxu1 %v2642_v62  ;;  %v2734_v62 = vld [vmem:[%s3963_s1 + $0x1d4] ss:$8 sps:$4 sm:$0xff]  }
  0x3c   :  { %2019 = vmatpush1.bf16.msra.mxu0 %v2643_v63  ;;  %1856 = vmatprep.subr.bf16.mxu1 %v2644_v0  ;;  %v2737_v63 = vld [vmem:[%s3963_s1 + $0x5d4] ss:$8 sps:$4 sm:$0xff]   ;;  %v2732_v0 = vld [vmem:[%s3963_s1 + $0x1d0] ss:$8 sps:$4 sm:$0xff]  }
  0x3d   :  { %2020 = vmatprep.subr.bf16.mxu0 %v2646_v1  ;;  %v2735_v1 = vld [vmem:[%s3963_s1 + $0x5d0] ss:$8 sps:$4 sm:$0xff]  }
  0x3f   :  { %1857 = vmatpush1.bf16.msra.mxu1 %v2648_v2  ;;  %v2740_v2 = vld [vmem:[%s3963_s1 + $0x1e4] ss:$8 sps:$4 sm:$0xff]  }
  0x40   :  { %2021 = vmatpush1.bf16.msra.mxu0 %v2649_v3  ;;  %1867 = vmatprep.subr.bf16.mxu1 %v2654_v4  ;;  %v2743_v3 = vld [vmem:[%s3963_s1 + $0x5e4] ss:$8 sps:$4 sm:$0xff]   ;;  %v2738_v4 = vld [vmem:[%s3963_s1 + $0x1e0] ss:$8 sps:$4 sm:$0xff]  }
  0x41   :  { %2031 = vmatprep.subr.bf16.mxu0 %v2659_v5  ;;  %v2741_v5 = vld [vmem:[%s3963_s1 + $0x5e0] ss:$8 sps:$4 sm:$0xff]  }
  0x42   :  { %1859 = vmatmul.mubr.bf16.vlgmr.msra.gmra.mrb[0].mxu1 %v2214_v6  ;;  %v2746_v6 = vld [vmem:[%s3963_s1 + $0x1f4] ss:$8 sps:$4 sm:$0xff]  }
  0x43   :  { %2023 = vmatmul.mubr.bf16.vlgmr.msra.gmra.mrb[0].mxu0 %v2222_v7  ;;  %1868 = vmatpush1.bf16.msra.mxu1 %v2652_v8  ;;  %v2749_v7 = vld [vmem:[%s3963_s1 + $0x5f4] ss:$8 sps:$4 sm:$0xff]   ;;  %v2744_v8 = vld [vmem:[%s3963_s1 + $0x1f0] ss:$8 sps:$4 sm:$0xff]  }
  0x44   :  { %2032 = vmatpush1.bf16.msra.mxu0 %v2657_v9  ;;  %1869 = vmatprep.subr.bf16.mxu1 %v2662_v10  ;;  %v2747_v9 = vld [vmem:[%s3963_s1 + $0x5f0] ss:$8 sps:$4 sm:$0xff]   ;;  %v2754_v10 = vld [vmem:[%s3963_s1 + $0x204] ss:$8 sps:$4 sm:$0xff]  }
  0x45   :  { %2033 = vmatprep.subr.bf16.mxu0 %v2665_v11  ;;  %1899 = vmatprep.mubr.bf16.mxu1 %v2217_v35  ;;  %v2759_v11 = vld [vmem:[%s3963_s1 + $0x604] ss:$8 sps:$4 sm:$0xff]   ;;  %v2781_v35 = vld [vmem:[%s3963_s1 + $0x640] ss:$8 sps:$4 sm:$0xff]  }
  0x46   :  { %2063 = vmatprep.mubr.bf16.mxu0 %v2225_v38  ;;  %v2784_v38 = vld [vmem:[%s3963_s1 + $0x250] ss:$8 sps:$4 sm:$0xff]  }
  0x47   :  { %1870 = vmatpush1.bf16.msra.mxu1 %v2660_v12  ;;  %v2216_v12 = vcombine.low %v3303_v32, %v3303_v32  ;;  %v2780_v32 = vld [vmem:[%s3963_s1 + $0x244] ss:$8 sps:$4 sm:$0xff]  }
  0x48   :  { %2034 = vmatpush1.bf16.msra.mxu0 %v2663_v13  ;;  %1871 = vmatprep.subr.bf16.mxu1 %v2668_v14  ;;  %v2752_v13 = vld [vmem:[%s3963_s1 + $0x200] ss:$8 sps:$4 sm:$0xff]   ;;  %v2224_v14 = vcombine.low %v3316_v36, %v3316_v36  ;;  %v2786_v36 = vld [vmem:[%s3963_s1 + $0x254] ss:$8 sps:$4 sm:$0xff]  }
  0x49   :  { %2035 = vmatprep.subr.bf16.mxu0 %v2671_v15  ;;  %v2757_v15 = vld [vmem:[%s3963_s1 + $0x600] ss:$8 sps:$4 sm:$0xff]  }
  0x4b   :  { %1872 = vmatpush1.bf16.msra.mxu1 %v2666_v16  ;;  %v2762_v16 = vld [vmem:[%s3963_s1 + $0x214] ss:$8 sps:$4 sm:$0xff]  }
  0x4c   :  { %2036 = vmatpush1.bf16.msra.mxu0 %v2669_v17  ;;  %1873 = vmatprep.subr.bf16.mxu1 %v2674_v18  ;;  %v2765_v17 = vld [vmem:[%s3963_s1 + $0x614] ss:$8 sps:$4 sm:$0xff]  }
  0x4d   :  { %2037 = vmatprep.subr.bf16.mxu0 %v2677_v19  ;;  %v3453_v18 = vld [vmem:[%s3964_s0 + $0x10] sm:$0xff] }
  0x4e   :  { %v2219_v19 = vcombine.high %v3453_v18, %v3453_v18 }
  0x4f   :  { %1874 = vmatpush1.bf16.msra.mxu1 %v2672_v20  ;;  %v3460_v20 = vld [vmem:[%s3964_s0 + $0x30] sm:$0xff] }
  0x50   :  { %2038 = vmatpush1.bf16.msra.mxu0 %v2675_v21  ;;  %1875 = vmatprep.subr.bf16.mxu1 %v2680_v22  ;;  %v2760_v21 = vld [vmem:[%s3963_s1 + $0x210] ss:$8 sps:$4 sm:$0xff]  }
  0x51   :  { %2039 = vmatprep.subr.bf16.mxu0 %v2683_v23  ;;  %v2763_v22 = vld [vmem:[%s3963_s1 + $0x610] ss:$8 sps:$4 sm:$0xff]   ;;  %v2227_v23 = vcombine.high %v3460_v20, %v3460_v20 }
  0x53   :  { %1876 = vmatpush1.bf16.msra.mxu1 %v2678_v24  ;;  %v2768_v24 = vld [vmem:[%s3963_s1 + $0x224] ss:$8 sps:$4 sm:$0xff]  }
  0x54   :  { %2040 = vmatpush1.bf16.msra.mxu0 %v2681_v25  ;;  %1877 = vmatprep.subr.bf16.mxu1 %v2686_v26  ;;  %v2771_v25 = vld [vmem:[%s3963_s1 + $0x624] ss:$8 sps:$4 sm:$0xff]   ;;  %v2766_v26 = vld [vmem:[%s3963_s1 + $0x220] ss:$8 sps:$4 sm:$0xff]  }
  0x55   :  { %2041 = vmatprep.subr.bf16.mxu0 %v2689_v27  ;;  %v2769_v27 = vld [vmem:[%s3963_s1 + $0x620] ss:$8 sps:$4 sm:$0xff]  }
  0x57   :  { %1878 = vmatpush1.bf16.msra.mxu1 %v2684_v28  ;;  %v2774_v28 = vld [vmem:[%s3963_s1 + $0x234] ss:$8 sps:$4 sm:$0xff]  }
  0x58   :  { %2042 = vmatpush1.bf16.msra.mxu0 %v2687_v29  ;;  %1879 = vmatprep.subr.bf16.mxu1 %v2692_v30  ;;  %v2777_v29 = vld [vmem:[%s3963_s1 + $0x634] ss:$8 sps:$4 sm:$0xff]   ;;  %v2772_v30 = vld [vmem:[%s3963_s1 + $0x230] ss:$8 sps:$4 sm:$0xff]  }
  0x59   :  { %2043 = vmatprep.subr.bf16.mxu0 %v2695_v31  ;;  %v2775_v31 = vld [vmem:[%s3963_s1 + $0x630] ss:$8 sps:$4 sm:$0xff]  }
  0x5b   :  { %1880 = vmatpush1.bf16.msra.mxu1 %v2690_v33  ;;  %v2783_v33 = vld [vmem:[%s3963_s1 + $0x644] ss:$8 sps:$4 sm:$0xff]  }
  0x5c   :  { %2044 = vmatpush1.bf16.msra.mxu0 %v2693_v34  ;;  %1881 = vmatprep.subr.bf16.mxu1 %v2698_v37  ;;  %v2778_v34 = vld [vmem:[%s3963_s1 + $0x240] ss:$8 sps:$4 sm:$0xff]   ;;  %v2789_v37 = vld [vmem:[%s3963_s1 + $0x654] ss:$8 sps:$4 sm:$0xff]  }
  0x5d   :  { %2045 = vmatprep.subr.bf16.mxu0 %v2701_v39  ;;  %v2787_v39 = vld [vmem:[%s3963_s1 + $0x650] ss:$8 sps:$4 sm:$0xff]  }
  0x5f   :  { %1882 = vmatpush1.bf16.msra.mxu1 %v2696_v40  ;;  %v2792_v40 = vld [vmem:[%s3963_s1 + $0x264] ss:$8 sps:$4 sm:$0xff]  }
  0x60   :  { %2046 = vmatpush1.bf16.msra.mxu0 %v2699_v41  ;;  %1883 = vmatprep.subr.bf16.mxu1 %v2704_v42  ;;  %v2795_v41 = vld [vmem:[%s3963_s1 + $0x664] ss:$8 sps:$4 sm:$0xff]   ;;  %v2790_v42 = vld [vmem:[%s3963_s1 + $0x260] ss:$8 sps:$4 sm:$0xff]  }
  0x61   :  { %2047 = vmatprep.subr.bf16.mxu0 %v2707_v43  ;;  %v2793_v43 = vld [vmem:[%s3963_s1 + $0x660] ss:$8 sps:$4 sm:$0xff]  }
  0x63   :  { %1884 = vmatpush1.bf16.msra.mxu1 %v2702_v44  ;;  %v2798_v44 = vld [vmem:[%s3963_s1 + $0x274] ss:$8 sps:$4 sm:$0xff]  }
  0x64   :  { %2048 = vmatpush1.bf16.msra.mxu0 %v2705_v45  ;;  %1885 = vmatprep.subr.bf16.mxu1 %v2710_v46  ;;  %v2801_v45 = vld [vmem:[%s3963_s1 + $0x674] ss:$8 sps:$4 sm:$0xff]   ;;  %v2796_v46 = vld [vmem:[%s3963_s1 + $0x270] ss:$8 sps:$4 sm:$0xff]  }
  0x65   :  { %2049 = vmatprep.subr.bf16.mxu0 %v2713_v47  ;;  %v2799_v47 = vld [vmem:[%s3963_s1 + $0x670] ss:$8 sps:$4 sm:$0xff]  }
  0x67   :  { %1886 = vmatpush1.bf16.msra.mxu1 %v2708_v48  ;;  %v2804_v48 = vld [vmem:[%s3963_s1 + $0x284] ss:$8 sps:$4 sm:$0xff]  }
  0x68   :  { %2050 = vmatpush1.bf16.msra.mxu0 %v2711_v49  ;;  %1887 = vmatprep.subr.bf16.mxu1 %v2716_v50  ;;  %v2807_v49 = vld [vmem:[%s3963_s1 + $0x684] ss:$8 sps:$4 sm:$0xff]   ;;  %v2802_v50 = vld [vmem:[%s3963_s1 + $0x280] ss:$8 sps:$4 sm:$0xff]  }
  0x69   :  { %2051 = vmatprep.subr.bf16.mxu0 %v2719_v51  ;;  %v2805_v51 = vld [vmem:[%s3963_s1 + $0x680] ss:$8 sps:$4 sm:$0xff]  }
  0x6b   :  { %1888 = vmatpush1.bf16.msra.mxu1 %v2714_v52  ;;  %v2810_v52 = vld [vmem:[%s3963_s1 + $0x294] ss:$8 sps:$4 sm:$0xff]  }
  0x6c   :  { %2052 = vmatpush1.bf16.msra.mxu0 %v2717_v53  ;;  %1889 = vmatprep.subr.bf16.mxu1 %v2722_v54  ;;  %v2813_v53 = vld [vmem:[%s3963_s1 + $0x694] ss:$8 sps:$4 sm:$0xff]   ;;  %v2808_v54 = vld [vmem:[%s3963_s1 + $0x290] ss:$8 sps:$4 sm:$0xff]  }
  0x6d   :  { %2053 = vmatprep.subr.bf16.mxu0 %v2725_v55  ;;  %v2811_v55 = vld [vmem:[%s3963_s1 + $0x690] ss:$8 sps:$4 sm:$0xff]  }
  0x6f   :  { %1890 = vmatpush1.bf16.msra.mxu1 %v2720_v56  ;;  %v2816_v56 = vld [vmem:[%s3963_s1 + $0x2a4] ss:$8 sps:$4 sm:$0xff]  }
  0x70   :  { %2054 = vmatpush1.bf16.msra.mxu0 %v2723_v57  ;;  %1891 = vmatprep.subr.bf16.mxu1 %v2728_v58  ;;  %v2819_v57 = vld [vmem:[%s3963_s1 + $0x6a4] ss:$8 sps:$4 sm:$0xff]   ;;  %v2814_v58 = vld [vmem:[%s3963_s1 + $0x2a0] ss:$8 sps:$4 sm:$0xff]  }
  0x71   :  { %2055 = vmatprep.subr.bf16.mxu0 %v2731_v59  ;;  %v2817_v59 = vld [vmem:[%s3963_s1 + $0x6a0] ss:$8 sps:$4 sm:$0xff]  }
  0x73   :  { %1892 = vmatpush1.bf16.msra.mxu1 %v2726_v60  ;;  %v2822_v60 = vld [vmem:[%s3963_s1 + $0x2b4] ss:$8 sps:$4 sm:$0xff]  }
  0x74   :  { %2056 = vmatpush1.bf16.msra.mxu0 %v2729_v61  ;;  %1893 = vmatprep.subr.bf16.mxu1 %v2734_v62  ;;  %v2825_v61 = vld [vmem:[%s3963_s1 + $0x6b4] ss:$8 sps:$4 sm:$0xff]   ;;  %v2820_v62 = vld [vmem:[%s3963_s1 + $0x2b0] ss:$8 sps:$4 sm:$0xff]  }
  0x75   :  { %2057 = vmatprep.subr.bf16.mxu0 %v2737_v63  ;;  %v2823_v63 = vld [vmem:[%s3963_s1 + $0x6b0] ss:$8 sps:$4 sm:$0xff]  }
  0x77   :  { %1894 = vmatpush1.bf16.msra.mxu1 %v2732_v0  ;;  %v2828_v0 = vld [vmem:[%s3963_s1 + $0x2c4] ss:$8 sps:$4 sm:$0xff]  }
  0x78   :  { %2058 = vmatpush1.bf16.msra.mxu0 %v2735_v1  ;;  %1895 = vmatprep.subr.bf16.mxu1 %v2740_v2  ;;  %v2831_v1 = vld [vmem:[%s3963_s1 + $0x6c4] ss:$8 sps:$4 sm:$0xff]   ;;  %v2826_v2 = vld [vmem:[%s3963_s1 + $0x2c0] ss:$8 sps:$4 sm:$0xff]  }
  0x79   :  { %2059 = vmatprep.subr.bf16.mxu0 %v2743_v3  ;;  %v2829_v3 = vld [vmem:[%s3963_s1 + $0x6c0] ss:$8 sps:$4 sm:$0xff]  }
  0x7b   :  { %1896 = vmatpush1.bf16.msra.mxu1 %v2738_v4  ;;  %v2834_v4 = vld [vmem:[%s3963_s1 + $0x2d4] ss:$8 sps:$4 sm:$0xff]  }
  0x7c   :  { %2060 = vmatpush1.bf16.msra.mxu0 %v2741_v5  ;;  %1897 = vmatprep.subr.bf16.mxu1 %v2746_v6  ;;  %v2837_v5 = vld [vmem:[%s3963_s1 + $0x6d4] ss:$8 sps:$4 sm:$0xff]   ;;  %v2832_v6 = vld [vmem:[%s3963_s1 + $0x2d0] ss:$8 sps:$4 sm:$0xff]  }
  0x7d   :  { %2061 = vmatprep.subr.bf16.mxu0 %v2749_v7  ;;  %v2835_v7 = vld [vmem:[%s3963_s1 + $0x6d0] ss:$8 sps:$4 sm:$0xff]  }
  0x7f   :  { %1898 = vmatpush1.bf16.msra.mxu1 %v2744_v8  ;;  %v2840_v8 = vld [vmem:[%s3963_s1 + $0x2e4] ss:$8 sps:$4 sm:$0xff]  }
  0x80   :  { %2062 = vmatpush1.bf16.msra.mxu0 %v2747_v9  ;;  %1908 = vmatprep.subr.bf16.mxu1 %v2754_v10  ;;  %v2843_v9 = vld [vmem:[%s3963_s1 + $0x6e4] ss:$8 sps:$4 sm:$0xff]   ;;  %v2838_v10 = vld [vmem:[%s3963_s1 + $0x2e0] ss:$8 sps:$4 sm:$0xff]  }
  0x81   :  { %2072 = vmatprep.subr.bf16.mxu0 %v2759_v11  ;;  %v2841_v11 = vld [vmem:[%s3963_s1 + $0x6e0] ss:$8 sps:$4 sm:$0xff]  }
  0x82   :  { %1900 = vmatmul.mubr.bf16.vlgmr.msra.gmra.mrb[0].mxu1 %v2216_v12  ;;  %v2846_v12 = vld [vmem:[%s3963_s1 + $0x2f4] ss:$8 sps:$4 sm:$0xff]  }
  0x83   :  { %2064 = vmatmul.mubr.bf16.vlgmr.msra.gmra.mrb[0].mxu0 %v2224_v14  ;;  %1909 = vmatpush1.bf16.msra.mxu1 %v2752_v13  ;;  %v2849_v13 = vld [vmem:[%s3963_s1 + $0x6f4] ss:$8 sps:$4 sm:$0xff]   ;;  %v2844_v14 = vld [vmem:[%s3963_s1 + $0x2f0] ss:$8 sps:$4 sm:$0xff]  }
  0x84   :  { %2073 = vmatpush1.bf16.msra.mxu0 %v2757_v15  ;;  %1910 = vmatprep.subr.bf16.mxu1 %v2762_v16  ;;  %v2847_v15 = vld [vmem:[%s3963_s1 + $0x6f0] ss:$8 sps:$4 sm:$0xff]   ;;  %v2854_v16 = vld [vmem:[%s3963_s1 + $0x304] ss:$8 sps:$4 sm:$0xff]  }
  0x85   :  { %2074 = vmatprep.subr.bf16.mxu0 %v2765_v17  ;;  %1940 = vmatprep.mubr.bf16.mxu1 %v2219_v19  ;;  %v2859_v17 = vld [vmem:[%s3963_s1 + $0x704] ss:$8 sps:$4 sm:$0xff]   ;;  %v2852_v19 = vld [vmem:[%s3963_s1 + $0x300] ss:$8 sps:$4 sm:$0xff]  }
  0x86   :  { %2104 = vmatprep.mubr.bf16.mxu0 %v2227_v23  ;;  %v2226_v23 = vcombine.low %v3460_v20, %v3460_v20 }
  0x87   :  { %1911 = vmatpush1.bf16.msra.mxu1 %v2760_v21  ;;  %v2857_v21 = vld [vmem:[%s3963_s1 + $0x700] ss:$8 sps:$4 sm:$0xff]  }
  0x88   :  { %2075 = vmatpush1.bf16.msra.mxu0 %v2763_v22  ;;  %1912 = vmatprep.subr.bf16.mxu1 %v2768_v24  ;;  %v2218_v22 = vcombine.low %v3453_v18, %v3453_v18  ;;  %v3657_v24 = vld [vmem:[%s3964_s0 + $0x18] sm:$0xff] }
  0x89   :  { %2076 = vmatprep.subr.bf16.mxu0 %v2771_v25  ;;  %v3662_v25 = vld [vmem:[%s3964_s0 + $0x38] sm:$0xff]  ;;  %v2221_v20 = vcombine.high %v3657_v24, %v3657_v24 }
  0x8a   :  { %v2865_v18 = vld [vmem:[%s3963_s1 + $0x714] ss:$8 sps:$4 sm:$0xff]  }
  0x8b   :  { %1913 = vmatpush1.bf16.msra.mxu1 %v2766_v26  ;;  %v2862_v26 = vld [vmem:[%s3963_s1 + $0x314] ss:$8 sps:$4 sm:$0xff]  }
  0x8c   :  { %2077 = vmatpush1.bf16.msra.mxu0 %v2769_v27  ;;  %1914 = vmatprep.subr.bf16.mxu1 %v2774_v28  ;;  %v2229_v27 = vcombine.high %v3662_v25, %v3662_v25  ;;  %v2860_v28 = vld [vmem:[%s3963_s1 + $0x310] ss:$8 sps:$4 sm:$0xff]  }
  0x8d   :  { %2078 = vmatprep.subr.bf16.mxu0 %v2777_v29  ;;  %v2863_v29 = vld [vmem:[%s3963_s1 + $0x710] ss:$8 sps:$4 sm:$0xff]  }
  0x8f   :  { %1915 = vmatpush1.bf16.msra.mxu1 %v2772_v30  ;;  %v2868_v30 = vld [vmem:[%s3963_s1 + $0x324] ss:$8 sps:$4 sm:$0xff]  }
  0x90   :  { %2079 = vmatpush1.bf16.msra.mxu0 %v2775_v31  ;;  %1916 = vmatprep.subr.bf16.mxu1 %v2780_v32  ;;  %v2871_v31 = vld [vmem:[%s3963_s1 + $0x724] ss:$8 sps:$4 sm:$0xff]   ;;  %v2866_v32 = vld [vmem:[%s3963_s1 + $0x320] ss:$8 sps:$4 sm:$0xff]  }
  0x91   :  { %2080 = vmatprep.subr.bf16.mxu0 %v2783_v33  ;;  %v2869_v33 = vld [vmem:[%s3963_s1 + $0x720] ss:$8 sps:$4 sm:$0xff]  }
  0x93   :  { %1917 = vmatpush1.bf16.msra.mxu1 %v2778_v34  ;;  %v2874_v34 = vld [vmem:[%s3963_s1 + $0x334] ss:$8 sps:$4 sm:$0xff]  }
  0x94   :  { %2081 = vmatpush1.bf16.msra.mxu0 %v2781_v35  ;;  %1918 = vmatprep.subr.bf16.mxu1 %v2786_v36  ;;  %v2877_v35 = vld [vmem:[%s3963_s1 + $0x734] ss:$8 sps:$4 sm:$0xff]   ;;  %v2872_v36 = vld [vmem:[%s3963_s1 + $0x330] ss:$8 sps:$4 sm:$0xff]  }
  0x95   :  { %2082 = vmatprep.subr.bf16.mxu0 %v2789_v37  ;;  %v2875_v37 = vld [vmem:[%s3963_s1 + $0x730] ss:$8 sps:$4 sm:$0xff]  }
  0x97   :  { %1919 = vmatpush1.bf16.msra.mxu1 %v2784_v38  ;;  %v2880_v38 = vld [vmem:[%s3963_s1 + $0x344] ss:$8 sps:$4 sm:$0xff]  }
  0x98   :  { %2083 = vmatpush1.bf16.msra.mxu0 %v2787_v39  ;;  %1920 = vmatprep.subr.bf16.mxu1 %v2792_v40  ;;  %v2883_v39 = vld [vmem:[%s3963_s1 + $0x744] ss:$8 sps:$4 sm:$0xff]   ;;  %v2878_v40 = vld [vmem:[%s3963_s1 + $0x340] ss:$8 sps:$4 sm:$0xff]  }
  0x99   :  { %2084 = vmatprep.subr.bf16.mxu0 %v2795_v41  ;;  %v2881_v41 = vld [vmem:[%s3963_s1 + $0x740] ss:$8 sps:$4 sm:$0xff]  }
  0x9b   :  { %1921 = vmatpush1.bf16.msra.mxu1 %v2790_v42  ;;  %v2886_v42 = vld [vmem:[%s3963_s1 + $0x354] ss:$8 sps:$4 sm:$0xff]  }
  0x9c   :  { %2085 = vmatpush1.bf16.msra.mxu0 %v2793_v43  ;;  %1922 = vmatprep.subr.bf16.mxu1 %v2798_v44  ;;  %v2889_v43 = vld [vmem:[%s3963_s1 + $0x754] ss:$8 sps:$4 sm:$0xff]   ;;  %v2884_v44 = vld [vmem:[%s3963_s1 + $0x350] ss:$8 sps:$4 sm:$0xff]  }
  0x9d   :  { %2086 = vmatprep.subr.bf16.mxu0 %v2801_v45  ;;  %v2887_v45 = vld [vmem:[%s3963_s1 + $0x750] ss:$8 sps:$4 sm:$0xff]  }
  0x9f   :  { %1923 = vmatpush1.bf16.msra.mxu1 %v2796_v46  ;;  %v2892_v46 = vld [vmem:[%s3963_s1 + $0x364] ss:$8 sps:$4 sm:$0xff]  }
  0xa0   :  { %2087 = vmatpush1.bf16.msra.mxu0 %v2799_v47  ;;  %1924 = vmatprep.subr.bf16.mxu1 %v2804_v48  ;;  %v2895_v47 = vld [vmem:[%s3963_s1 + $0x764] ss:$8 sps:$4 sm:$0xff]   ;;  %v2890_v48 = vld [vmem:[%s3963_s1 + $0x360] ss:$8 sps:$4 sm:$0xff]  }
  0xa1   :  { %2088 = vmatprep.subr.bf16.mxu0 %v2807_v49  ;;  %v2893_v49 = vld [vmem:[%s3963_s1 + $0x760] ss:$8 sps:$4 sm:$0xff]  }
  0xa3   :  { %1925 = vmatpush1.bf16.msra.mxu1 %v2802_v50  ;;  %v2898_v50 = vld [vmem:[%s3963_s1 + $0x374] ss:$8 sps:$4 sm:$0xff]  }
  0xa4   :  { %2089 = vmatpush1.bf16.msra.mxu0 %v2805_v51  ;;  %1926 = vmatprep.subr.bf16.mxu1 %v2810_v52  ;;  %v2901_v51 = vld [vmem:[%s3963_s1 + $0x774] ss:$8 sps:$4 sm:$0xff]   ;;  %v2896_v52 = vld [vmem:[%s3963_s1 + $0x370] ss:$8 sps:$4 sm:$0xff]  }
  0xa5   :  { %2090 = vmatprep.subr.bf16.mxu0 %v2813_v53  ;;  %v2899_v53 = vld [vmem:[%s3963_s1 + $0x770] ss:$8 sps:$4 sm:$0xff]  }
  0xa7   :  { %1927 = vmatpush1.bf16.msra.mxu1 %v2808_v54  ;;  %v2904_v54 = vld [vmem:[%s3963_s1 + $0x384] ss:$8 sps:$4 sm:$0xff]  }
  0xa8   :  { %2091 = vmatpush1.bf16.msra.mxu0 %v2811_v55  ;;  %1928 = vmatprep.subr.bf16.mxu1 %v2816_v56  ;;  %v2907_v55 = vld [vmem:[%s3963_s1 + $0x784] ss:$8 sps:$4 sm:$0xff]   ;;  %v2902_v56 = vld [vmem:[%s3963_s1 + $0x380] ss:$8 sps:$4 sm:$0xff]  }
  0xa9   :  { %2092 = vmatprep.subr.bf16.mxu0 %v2819_v57  ;;  %v2905_v57 = vld [vmem:[%s3963_s1 + $0x780] ss:$8 sps:$4 sm:$0xff]  }
  0xab   :  { %1929 = vmatpush1.bf16.msra.mxu1 %v2814_v58  ;;  %v2910_v58 = vld [vmem:[%s3963_s1 + $0x394] ss:$8 sps:$4 sm:$0xff]  }
  0xac   :  { %2093 = vmatpush1.bf16.msra.mxu0 %v2817_v59  ;;  %1930 = vmatprep.subr.bf16.mxu1 %v2822_v60  ;;  %v2913_v59 = vld [vmem:[%s3963_s1 + $0x794] ss:$8 sps:$4 sm:$0xff]   ;;  %v2908_v60 = vld [vmem:[%s3963_s1 + $0x390] ss:$8 sps:$4 sm:$0xff]  }
  0xad   :  { %2094 = vmatprep.subr.bf16.mxu0 %v2825_v61  ;;  %v2911_v61 = vld [vmem:[%s3963_s1 + $0x790] ss:$8 sps:$4 sm:$0xff]  }
  0xaf   :  { %1931 = vmatpush1.bf16.msra.mxu1 %v2820_v62  ;;  %v2916_v62 = vld [vmem:[%s3963_s1 + $0x3a4] ss:$8 sps:$4 sm:$0xff]  }
  0xb0   :  { %2095 = vmatpush1.bf16.msra.mxu0 %v2823_v63  ;;  %1932 = vmatprep.subr.bf16.mxu1 %v2828_v0  ;;  %v2919_v63 = vld [vmem:[%s3963_s1 + $0x7a4] ss:$8 sps:$4 sm:$0xff]   ;;  %v2914_v0 = vld [vmem:[%s3963_s1 + $0x3a0] ss:$8 sps:$4 sm:$0xff]  }
  0xb1   :  { %2096 = vmatprep.subr.bf16.mxu0 %v2831_v1  ;;  %v2917_v1 = vld [vmem:[%s3963_s1 + $0x7a0] ss:$8 sps:$4 sm:$0xff]  }
  0xb3   :  { %1933 = vmatpush1.bf16.msra.mxu1 %v2826_v2  ;;  %v2922_v2 = vld [vmem:[%s3963_s1 + $0x3b4] ss:$8 sps:$4 sm:$0xff]  }
  0xb4   :  { %2097 = vmatpush1.bf16.msra.mxu0 %v2829_v3  ;;  %1934 = vmatprep.subr.bf16.mxu1 %v2834_v4  ;;  %v2925_v3 = vld [vmem:[%s3963_s1 + $0x7b4] ss:$8 sps:$4 sm:$0xff]   ;;  %v2920_v4 = vld [vmem:[%s3963_s1 + $0x3b0] ss:$8 sps:$4 sm:$0xff]  }
  0xb5   :  { %2098 = vmatprep.subr.bf16.mxu0 %v2837_v5  ;;  %v2923_v5 = vld [vmem:[%s3963_s1 + $0x7b0] ss:$8 sps:$4 sm:$0xff]  }
  0xb7   :  { %1935 = vmatpush1.bf16.msra.mxu1 %v2832_v6  ;;  %v2928_v6 = vld [vmem:[%s3963_s1 + $0x3c4] ss:$8 sps:$4 sm:$0xff]  }
  0xb8   :  { %2099 = vmatpush1.bf16.msra.mxu0 %v2835_v7  ;;  %1936 = vmatprep.subr.bf16.mxu1 %v2840_v8  ;;  %v2931_v7 = vld [vmem:[%s3963_s1 + $0x7c4] ss:$8 sps:$4 sm:$0xff]   ;;  %v2926_v8 = vld [vmem:[%s3963_s1 + $0x3c0] ss:$8 sps:$4 sm:$0xff]  }
  0xb9   :  { %2100 = vmatprep.subr.bf16.mxu0 %v2843_v9  ;;  %v2929_v9 = vld [vmem:[%s3963_s1 + $0x7c0] ss:$8 sps:$4 sm:$0xff]  }
  0xbb   :  { %1937 = vmatpush1.bf16.msra.mxu1 %v2838_v10  ;;  %v2934_v10 = vld [vmem:[%s3963_s1 + $0x3d4] ss:$8 sps:$4 sm:$0xff]  }
  0xbc   :  { %2101 = vmatpush1.bf16.msra.mxu0 %v2841_v11  ;;  %1938 = vmatprep.subr.bf16.mxu1 %v2846_v12  ;;  %v2937_v11 = vld [vmem:[%s3963_s1 + $0x7d4] ss:$8 sps:$4 sm:$0xff]   ;;  %v2932_v12 = vld [vmem:[%s3963_s1 + $0x3d0] ss:$8 sps:$4 sm:$0xff]  }
  0xbd   :  { %2102 = vmatprep.subr.bf16.mxu0 %v2849_v13  ;;  %v2935_v13 = vld [vmem:[%s3963_s1 + $0x7d0] ss:$8 sps:$4 sm:$0xff]  }
  0xbf   :  { %1939 = vmatpush1.bf16.msra.mxu1 %v2844_v14  ;;  %v2940_v14 = vld [vmem:[%s3963_s1 + $0x3e4] ss:$8 sps:$4 sm:$0xff]  }
  0xc0   :  { %2103 = vmatpush1.bf16.msra.mxu0 %v2847_v15  ;;  %1949 = vmatprep.subr.bf16.mxu1 %v2854_v16  ;;  %v2943_v15 = vld [vmem:[%s3963_s1 + $0x7e4] ss:$8 sps:$4 sm:$0xff]   ;;  %v2938_v16 = vld [vmem:[%s3963_s1 + $0x3e0] ss:$8 sps:$4 sm:$0xff]  }
  0xc1   :  { %2113 = vmatprep.subr.bf16.mxu0 %v2859_v17  ;;  %v2941_v17 = vld [vmem:[%s3963_s1 + $0x7e0] ss:$8 sps:$4 sm:$0xff]  }
  0xc2   :  { %1941 = vmatmul.mubr.bf16.vlgmr.msra.gmra.mrb[0].mxu1 %v2218_v22  ;;  %v2944_v22 = vld [vmem:[%s3963_s1 + $0x3f0] ss:$8 sps:$4 sm:$0xff]  }
  0xc3   :  { %2105 = vmatmul.mubr.bf16.vlgmr.msra.gmra.mrb[0].mxu0 %v2226_v23  ;;  %1950 = vmatpush1.bf16.msra.mxu1 %v2852_v19  ;;  %v2946_v19 = vld [vmem:[%s3963_s1 + $0x3f4] ss:$8 sps:$4 sm:$0xff]   ;;  %v2947_v23 = vld [vmem:[%s3963_s1 + $0x7f0] ss:$8 sps:$4 sm:$0xff]  }
  0xc4   :  { %2114 = vmatpush1.bf16.msra.mxu0 %v2857_v21  ;;  %1951 = vmatprep.subr.bf16.mxu1 %v2862_v26  ;;  %v2949_v21 = vld [vmem:[%s3963_s1 + $0x7f4] ss:$8 sps:$4 sm:$0xff]   ;;  %v2956_v26 = vld [vmem:[%s3963_s1 + $0x804] ss:$8 sps:$4 sm:$0xff]  }
  0xc5   :  { %2115 = vmatprep.subr.bf16.mxu0 %v2865_v18  ;;  %1981 = vmatprep.mubr.bf16.mxu1 %v2221_v20  ;;  %v3854_v18 = vld [vmem:[%s3964_s0 + $0x40] sm:$0xff]  ;;  %v2220_v20 = vcombine.low %v3657_v24, %v3657_v24  ;;  %v2957_v24 = vld [vmem:[%s3963_s1 + $0x810] ss:$8 sps:$4 sm:$0xff]  }
  0xc6   :  { %2145 = vmatprep.mubr.bf16.mxu0 %v2229_v27  ;;  %v2228_v27 = vcombine.low %v3662_v25, %v3662_v25  ;;  %v2962_v25 = vld [vmem:[%s3963_s1 + $0x824] ss:$8 sps:$4 sm:$0xff]  }
  0xc7   :  { %1952 = vmatpush1.bf16.msra.mxu1 %v2860_v28  ;;  %v2954_v28 = vld [vmem:[%s3963_s1 + $0x800] ss:$8 sps:$4 sm:$0xff]  }
  0xc8   :  { %2116 = vmatpush1.bf16.msra.mxu0 %v2863_v29  ;;  %1953 = vmatprep.subr.bf16.mxu1 %v2868_v30  ;;  %v2231_v29 = vcombine.high %v3854_v18, %v3854_v18  ;;  %v2959_v30 = vld [vmem:[%s3963_s1 + $0x814] ss:$8 sps:$4 sm:$0xff]  }
  0xc9   :  { %2117 = vmatprep.subr.bf16.mxu0 %v2871_v31  ;;  %v2960_v31 = vld [vmem:[%s3963_s1 + $0x820] ss:$8 sps:$4 sm:$0xff]  }
  0xcb   :  { %1954 = vmatpush1.bf16.msra.mxu1 %v2866_v32  ;;  %v2965_v32 = vld [vmem:[%s3963_s1 + $0x834] ss:$8 sps:$4 sm:$0xff]  }
  0xcc   :  { %2118 = vmatpush1.bf16.msra.mxu0 %v2869_v33  ;;  %1955 = vmatprep.subr.bf16.mxu1 %v2874_v34  ;;  %v2963_v33 = vld [vmem:[%s3963_s1 + $0x830] ss:$8 sps:$4 sm:$0xff]   ;;  %v2968_v34 = vld [vmem:[%s3963_s1 + $0x844] ss:$8 sps:$4 sm:$0xff]  }
  0xcd   :  { %2119 = vmatprep.subr.bf16.mxu0 %v2877_v35  ;;  %v2966_v35 = vld [vmem:[%s3963_s1 + $0x840] ss:$8 sps:$4 sm:$0xff]  }
  0xcf   :  { %1956 = vmatpush1.bf16.msra.mxu1 %v2872_v36  ;;  %v2971_v36 = vld [vmem:[%s3963_s1 + $0x854] ss:$8 sps:$4 sm:$0xff]  }
  0xd0   :  { %2120 = vmatpush1.bf16.msra.mxu0 %v2875_v37  ;;  %1957 = vmatprep.subr.bf16.mxu1 %v2880_v38  ;;  %v2969_v37 = vld [vmem:[%s3963_s1 + $0x850] ss:$8 sps:$4 sm:$0xff]   ;;  %v2974_v38 = vld [vmem:[%s3963_s1 + $0x864] ss:$8 sps:$4 sm:$0xff]  }
  0xd1   :  { %2121 = vmatprep.subr.bf16.mxu0 %v2883_v39  ;;  %v2972_v39 = vld [vmem:[%s3963_s1 + $0x860] ss:$8 sps:$4 sm:$0xff]  }
  0xd3   :  { %1958 = vmatpush1.bf16.msra.mxu1 %v2878_v40  ;;  %v2977_v40 = vld [vmem:[%s3963_s1 + $0x874] ss:$8 sps:$4 sm:$0xff]  }
  0xd4   :  { %2122 = vmatpush1.bf16.msra.mxu0 %v2881_v41  ;;  %1959 = vmatprep.subr.bf16.mxu1 %v2886_v42  ;;  %v2975_v41 = vld [vmem:[%s3963_s1 + $0x870] ss:$8 sps:$4 sm:$0xff]   ;;  %v2980_v42 = vld [vmem:[%s3963_s1 + $0x884] ss:$8 sps:$4 sm:$0xff]  }
  0xd5   :  { %2123 = vmatprep.subr.bf16.mxu0 %v2889_v43  ;;  %v2978_v43 = vld [vmem:[%s3963_s1 + $0x880] ss:$8 sps:$4 sm:$0xff]  }
  0xd7   :  { %1960 = vmatpush1.bf16.msra.mxu1 %v2884_v44  ;;  %v2983_v44 = vld [vmem:[%s3963_s1 + $0x894] ss:$8 sps:$4 sm:$0xff]  }
  0xd8   :  { %2124 = vmatpush1.bf16.msra.mxu0 %v2887_v45  ;;  %1961 = vmatprep.subr.bf16.mxu1 %v2892_v46  ;;  %v2981_v45 = vld [vmem:[%s3963_s1 + $0x890] ss:$8 sps:$4 sm:$0xff]   ;;  %v2986_v46 = vld [vmem:[%s3963_s1 + $0x8a4] ss:$8 sps:$4 sm:$0xff]  }
  0xd9   :  { %2125 = vmatprep.subr.bf16.mxu0 %v2895_v47  ;;  %v2984_v47 = vld [vmem:[%s3963_s1 + $0x8a0] ss:$8 sps:$4 sm:$0xff]  }
  0xdb   :  { %1962 = vmatpush1.bf16.msra.mxu1 %v2890_v48  ;;  %v2989_v48 = vld [vmem:[%s3963_s1 + $0x8b4] ss:$8 sps:$4 sm:$0xff]  }
  0xdc   :  { %2126 = vmatpush1.bf16.msra.mxu0 %v2893_v49  ;;  %1963 = vmatprep.subr.bf16.mxu1 %v2898_v50  ;;  %v2987_v49 = vld [vmem:[%s3963_s1 + $0x8b0] ss:$8 sps:$4 sm:$0xff]   ;;  %v2992_v50 = vld [vmem:[%s3963_s1 + $0x8c4] ss:$8 sps:$4 sm:$0xff]  }
  0xdd   :  { %2127 = vmatprep.subr.bf16.mxu0 %v2901_v51  ;;  %v2990_v51 = vld [vmem:[%s3963_s1 + $0x8c0] ss:$8 sps:$4 sm:$0xff]  }
  0xdf   :  { %1964 = vmatpush1.bf16.msra.mxu1 %v2896_v52  ;;  %v2995_v52 = vld [vmem:[%s3963_s1 + $0x8d4] ss:$8 sps:$4 sm:$0xff]  }
  0xe0   :  { %2128 = vmatpush1.bf16.msra.mxu0 %v2899_v53  ;;  %1965 = vmatprep.subr.bf16.mxu1 %v2904_v54  ;;  %v2993_v53 = vld [vmem:[%s3963_s1 + $0x8d0] ss:$8 sps:$4 sm:$0xff]   ;;  %v2998_v54 = vld [vmem:[%s3963_s1 + $0x8e4] ss:$8 sps:$4 sm:$0xff]  }
  0xe1   :  { %2129 = vmatprep.subr.bf16.mxu0 %v2907_v55  ;;  %v2996_v55 = vld [vmem:[%s3963_s1 + $0x8e0] ss:$8 sps:$4 sm:$0xff]  }
  0xe3   :  { %1966 = vmatpush1.bf16.msra.mxu1 %v2902_v56  ;;  %v3001_v56 = vld [vmem:[%s3963_s1 + $0x8f4] ss:$8 sps:$4 sm:$0xff]  }
  0xe4   :  { %2130 = vmatpush1.bf16.msra.mxu0 %v2905_v57  ;;  %1967 = vmatprep.subr.bf16.mxu1 %v2910_v58  ;;  %v2999_v57 = vld [vmem:[%s3963_s1 + $0x8f0] ss:$8 sps:$4 sm:$0xff]   ;;  %v2230_v58 = vcombine.low %v3854_v18, %v3854_v18 }
  0xe5   :  { %2131 = vmatprep.subr.bf16.mxu0 %v2913_v59 }
  0xe7   :  { %1968 = vmatpush1.bf16.msra.mxu1 %v2908_v60 }
  0xe8   :  { %2132 = vmatpush1.bf16.msra.mxu0 %v2911_v61  ;;  %1969 = vmatprep.subr.bf16.mxu1 %v2916_v62 }
  0xe9   :  { %2133 = vmatprep.subr.bf16.mxu0 %v2919_v63  ;;  %v313_v63 = vlaneseq }
  0xeb   :  { %1970 = vmatpush1.bf16.msra.mxu1 %v2914_v0  ;;  %v314_v0 = vshrl.u32 %v313_v63, 7 }
  0xec   :  { %2134 = vmatpush1.bf16.msra.mxu0 %v2917_v1  ;;  %1971 = vmatprep.subr.bf16.mxu1 %v2922_v2  ;;  %v311_v2 = vld [vmem:[%s3965_s2] sm:$0x3] }
  0xed   :  { %2135 = vmatprep.subr.bf16.mxu0 %v2925_v3  ;;  %v315_v1 = vsub.s32 0, %v314_v0  ;;  %v319_v3 = vsub.s32 1, %v314_v0 }
  0xef   :  { %1972 = vmatpush1.bf16.msra.mxu1 %v2920_v4  ;;  %v316_v4 = vrot.slane %v311_v2, %v315_v1 }
  0xf0   :  { %2136 = vmatpush1.bf16.msra.mxu0 %v2923_v5  ;;  %1973 = vmatprep.subr.bf16.mxu1 %v2928_v6  ;;  %v320_v5 = vrot.slane %v311_v2, %v319_v3 }
  0xf1   :  { %2137 = vmatprep.subr.bf16.mxu0 %v2931_v7 }
  0xf3   :  { %1974 = vmatpush1.bf16.msra.mxu1 %v2926_v8 }
  0xf4   :  { %2138 = vmatpush1.bf16.msra.mxu0 %v2929_v9  ;;  %1975 = vmatprep.subr.bf16.mxu1 %v2934_v10 }
  0xf5   :  { %2139 = vmatprep.subr.bf16.mxu0 %v2937_v11 }
  0xf7   :  { %1976 = vmatpush1.bf16.msra.mxu1 %v2932_v12 }
  0xf8   :  { %2140 = vmatpush1.bf16.msra.mxu0 %v2935_v13  ;;  %1977 = vmatprep.subr.bf16.mxu1 %v2940_v14 }
  0xf9   :  { %2141 = vmatprep.subr.bf16.mxu0 %v2943_v15 }
  0xfb   :  { %1978 = vmatpush1.bf16.msra.mxu1 %v2938_v16 }
  0xfc   :  { %2142 = vmatpush1.bf16.msra.mxu0 %v2941_v17  ;;  %1979 = vmatprep.subr.bf16.mxu1 %v2946_v19 }
  0xfd   :  { %2143 = vmatprep.subr.bf16.mxu0 %v2949_v21 }
  0xff   :  { %1980 = vmatpush1.bf16.msra.mxu1 %v2944_v22 }
 0x100   :  { %2144 = vmatpush1.bf16.msra.mxu0 %v2947_v23 }
 0x101   :  { %2154 = vmatprep.subr.bf16.mxu0 %v2956_v26 }
 0x102   :  { %1982 = vmatmul.mubr.bf16.vlgmr.msra.gmra.mrb[0].mxu1 %v2220_v20 }
 0x103   :  { %2146 = vmatmul.mubr.bf16.vlgmr.msra.gmra.mrb[0].mxu0 %v2228_v27 }
 0x104   :  { %2155 = vmatpush1.bf16.msra.mxu0 %v2954_v28  ;;  %2186 = vmatprep.mubr.bf16.mxu0 %v2231_v29 }
 0x105   :  { %2156 = vmatprep.subr.bf16.mxu0 %v2959_v30 }
 0x108   :  { %2157 = vmatpush1.bf16.msra.mxu0 %v2957_v24 }
 0x109   :  { %2158 = vmatprep.subr.bf16.mxu0 %v2962_v25 }
 0x10c   :  { %2159 = vmatpush1.bf16.msra.mxu0 %v2960_v31 }
 0x10d   :  { %2160 = vmatprep.subr.bf16.mxu0 %v2965_v32 }
 0x110   :  { %2161 = vmatpush1.bf16.msra.mxu0 %v2963_v33 }
 0x111   :  { %2162 = vmatprep.subr.bf16.mxu0 %v2968_v34 }
 0x114   :  { %2163 = vmatpush1.bf16.msra.mxu0 %v2966_v35 }
 0x115   :  { %2164 = vmatprep.subr.bf16.mxu0 %v2971_v36 }
 0x118   :  { %2165 = vmatpush1.bf16.msra.mxu0 %v2969_v37 }
 0x119   :  { %2166 = vmatprep.subr.bf16.mxu0 %v2974_v38 }
 0x11c   :  { %2167 = vmatpush1.bf16.msra.mxu0 %v2972_v39 }
 0x11d   :  { %2168 = vmatprep.subr.bf16.mxu0 %v2977_v40 }
 0x120   :  { %2169 = vmatpush1.bf16.msra.mxu0 %v2975_v41 }
 0x121   :  { %2170 = vmatprep.subr.bf16.mxu0 %v2980_v42 }
 0x124   :  { %2171 = vmatpush1.bf16.msra.mxu0 %v2978_v43 }
 0x125   :  { %2172 = vmatprep.subr.bf16.mxu0 %v2983_v44 }
 0x128   :  { %2173 = vmatpush1.bf16.msra.mxu0 %v2981_v45 }
 0x129   :  { %2174 = vmatprep.subr.bf16.mxu0 %v2986_v46 }
 0x12c   :  { %2175 = vmatpush1.bf16.msra.mxu0 %v2984_v47 }
 0x12d   :  { %2176 = vmatprep.subr.bf16.mxu0 %v2989_v48 }
 0x130   :  { %2177 = vmatpush1.bf16.msra.mxu0 %v2987_v49 }
 0x131   :  { %2178 = vmatprep.subr.bf16.mxu0 %v2992_v50 }
 0x134   :  { %2179 = vmatpush1.bf16.msra.mxu0 %v2990_v51 }
 0x135   :  { %2180 = vmatprep.subr.bf16.mxu0 %v2995_v52 }
 0x138   :  { %2181 = vmatpush1.bf16.msra.mxu0 %v2993_v53 }
 0x139   :  { %2182 = vmatprep.subr.bf16.mxu0 %v2998_v54 }
 0x13c   :  { %2183 = vmatpush1.bf16.msra.mxu0 %v2996_v55 }
 0x13d   :  { %2184 = vmatprep.subr.bf16.mxu0 %v3001_v56 }
 0x140   :  { %2185 = vmatpush1.bf16.msra.mxu0 %v2999_v57 }
 0x143   :  { %2187 = vmatmul.mubr.bf16.vlgmr.msra.gmra.mrb[0].mxu0 %v2230_v58 }
 0x1d5   :  { %v1983_v59 = vpop.f32.mrb[0].mxu1 }
 0x1d6   :  { %v1985_v60 = vpop.f32.mrb[1].mxu1  ;;  %v2522_v6 = vadd.f32 %v1983_v59, %v316_v4 }
 0x1d7   :  { %v1987_v61 = vpop.f32.mrb[2].mxu1  ;;  %v2524_v7 = vadd.f32 %v1985_v60, %v320_v5 }
 0x1d8   :  { %v1988_v62 = vpop.f32.mrb[3].mxu1 }
 0x216   :  { %v2188_v8 = vpop.f32.mrb[0].mxu0 }
 0x217   :  { %v2523_v9 = vadd.f32 %v2522_v6, %v2188_v8  ;;  %v2190_v10 = vpop.f32.mrb[1].mxu0 }
 0x218   :  { %v2525_v11 = vadd.f32 %v2524_v7, %v2190_v10  ;;  %v2192_v12 = vpop.f32.mrb[2].mxu0 }
 0x219   :  { %vm2195_vm0 = vcmp.ge.f32.partialorder %v2523_v9, 0.0  ;;  %v2197_v13 = vmul.f32 0.1, %v2523_v9  ;;  %v2193_v14 = vpop.f32.mrb[3].mxu0 }
 0x21a   :  { %vm2196_vm1 = vcmp.ge.f32.partialorder %v2525_v11, 0.0  ;;  %v2198_v15 = vmul.f32 0.1, %v2525_v11 }
 0x21b   :  { %v2199_v16 = vsel %vm2195_vm0, %v2523_v9, %v2197_v13 }
 0x21c   :  { %v2200_v17 = vsel %vm2196_vm1, %v2525_v11, %v2198_v15 }
 0x21d   :  { %v2521_v19 = vpack.c.bf16 %v2200_v17, %v2199_v16 }
 0x21f   :  { %2209 = vst [vmem:[%s3966_s3] sm:$0xff] %v2521_v19 }

</bundles_post_ra>
